<compile_context>
chip_gen: v7x
topology: tpu7x:2x2x1
jax: 0.10.0
libtpu: 0.0.40
codegen_flags: <defaults>
</compile_context>

<pallas_src>
import functools

import numpy as np

import jax
import jax.numpy as jnp
from jax.experimental import pallas as pl
from jax.experimental.pallas import tpu as pltpu


# --------------------------- device-dependent knobs ---------------------------
@functools.lru_cache(maxsize=1)
def _device_kind():
    try:
        return jax.devices()[0].device_kind.lower()
    except Exception:
        return ""


def _vmem_cap_bytes():
    dk = _device_kind()
    if any(g in dk for g in ("v2", "v3", "v4", "v5", "v6")):
        return 100 * 1024 * 1024          # 128 MiB physical VMEM parts: use most of it
    return 56 * 1024 * 1024               # v7x / unknown: 64 MiB physical per TensorCore


def _wants_f32_macs(in_dtype):
    # v5e has no bf16 VALU -> bf16 MACs are emulated anyway; widen to f32 there.
    return in_dtype != jnp.float32 and "v5" in _device_kind()


# ----------------------------- Pallas kernel ---------------------------------
def _copyconv_kernel(x_ref, w_ref, b_ref, o_ref, *, K, TH, Ho, LW, C, L, n_parity, cdt):
    # x_ref: (4, 1, Hp2, Wp2*C)  parity-split padded input, lanes = (out-col, channel)
    # w_ref: (2, K, K, LW)       fused per-branch depthwise weights, pre-tiled + pre-cast
    # b_ref: (2, 1, LW)          fused per-branch bias, pre-tiled + pre-cast
    # o_ref: (1, 2, TH, LW)      output row/lane tile, both branches (0 = S, 1 = M)
    if TH == Ho:                           # single row tile -> fully static slicing
        row0 = 0
    else:
        row0 = pl.program_id(1) * TH
        if TH % 8 == 0:
            row0 = pl.multiple_of(row0, 8)
    if L == 1:                             # single lane tile -> fully static slicing
        lane0 = 0
    else:
        lane0 = pl.program_id(2) * LW
        if LW % 128 == 0:
            lane0 = pl.multiple_of(lane0, 128)

    HALO = (K // 2) * C                    # 3*C extra lanes cover the widest column tap

    # 1 or 2 partial accumulators per branch (tap-row parity) -> shorter dep chains while
    # staying inside the vreg file.  Bias is folded into the first accumulator's init.
    acc = [[None] * n_parity for _ in range(2)]
    acc[0][0] = jnp.broadcast_to(b_ref[0], (TH, LW))
    acc[1][0] = jnp.broadcast_to(b_ref[1], (TH, LW))

    for p in range(K):                     # unrolled 7x7 tap loop (the MAC hot path)
        g = p % n_parity
        i0 = p // 2
        for cpar in range(2):              # column parity plane
            r = 2 * (p % 2) + cpar
            # One full-width load per (tap row, column parity): 14 loads instead of 49
            # misaligned window loads; per-tap column shifts become in-register slices.
            xw = x_ref[r, 0, pl.ds(row0 + i0, TH), pl.ds(lane0, LW + HALO)]
            if xw.dtype != cdt:            # only on the widened-MAC (v5e bf16) path
                xw = xw.astype(cdt)
            for q in range(cpar, K, 2):
                j0 = q // 2
                xs = xw[:, j0 * C:j0 * C + LW]
                for br in range(2):        # both branches reuse the same input window
                    prod = xs * w_ref[br, p, q, :]
                    a = acc[br][g]
                    acc[br][g] = prod if a is None else a + prod

    for br in range(2):
        res = acc[br][0].astype(jnp.float32)
        for g in range(1, n_parity):
            res = res + acc[br][g].astype(jnp.float32)
        o_ref[0, br] = res.astype(o_ref.dtype)


# ------------------------- parameter init / fusion ----------------------------
def init_params(key, C):
    shapes = {
        's_w33': (C, 1, 3, 3), 's_b33': (C,),
        's_w3w': (C, 1, 1, 3), 's_w3h': (C, 1, 3, 1),
        's_w22': (C, 1, 2, 2), 's_b22': (C,),
        'm_w77': (C, 1, 7, 7), 'm_b77': (C,),
        'm_w53': (C, 1, 5, 3), 'm_b53': (C,),
        'm_w35': (C, 1, 3, 5), 'm_b35': (C,),
        'm_w7w': (C, 1, 1, 7), 'm_w7h': (C, 1, 7, 1),
        'm_w5w': (C, 1, 1, 5), 'm_w5h': (C, 1, 5, 1),
    }
    names = sorted(shapes)
    keys = jax.random.split(key, len(names))
    return {n: 0.1 * jax.random.normal(k, shapes[n], jnp.float32)
            for n, k in zip(names, keys)}


def fuse_params(p, C):
    """Exact re-parameterization (stride=2) -> (2, C, 7, 7) weights + (2, C) bias."""
    # --- RepDWConvS(stride=2): conv_3_3 + conv_3_h(conv_3_w(.)) + conv_2_2(dilation=2) ---
    w22d = jnp.zeros((C, 1, 3, 3), jnp.float32).at[:, :, ::2, ::2].set(p['s_w22'])
    stack3 = jnp.einsum('bcnx,bcyn->bcyx', p['s_w3w'], p['s_w3h'])
    w_s = p['s_w33'] + stack3 + w22d
    b_s = p['s_b33'] + p['s_b22']
    w_s = jnp.pad(w_s, ((0, 0), (0, 0), (2, 2), (2, 2)))            # 3x3 -> 7x7 (pad 3)
    # --- RepDWConvM(stride=2) ---
    w53 = jnp.pad(p['m_w53'], ((0, 0), (0, 0), (1, 1), (2, 2)))
    w35 = jnp.pad(p['m_w35'], ((0, 0), (0, 0), (2, 2), (1, 1)))
    stack7 = jnp.einsum('bcnx,bcyn->bcyx', p['m_w7w'], p['m_w7h'])
    stack5 = jnp.pad(jnp.einsum('bcnx,bcyn->bcyx', p['m_w5w'], p['m_w5h']),
                     ((0, 0), (0, 0), (1, 1), (1, 1)))
    w_m = p['m_w77'] + w53 + w35 + stack7 + stack5
    b_m = p['m_b77'] + p['m_b53'] + p['m_b35']
    W = jnp.stack([w_s[:, 0], w_m[:, 0]], axis=0)                   # (2, C, 7, 7)
    B = jnp.stack([b_s, b_m], axis=0)                               # (2, C)
    return W, B


# ------------------------------- tiling helpers --------------------------------
def _pick_row_tile(Ho, cap):
    """Largest divisor of Ho that is a multiple of 8 and <= cap (else Ho itself)."""
    best = None
    for d in range(8, min(Ho, max(cap, 0)) + 1, 8):
        if Ho % d == 0:
            best = d
    return best if best is not None else Ho


def _pick_lane_tile(Wo, C, max_lanes):
    """Lane tile = w_tile*C with w_tile | Wo, multiple of 128 lanes, <= max_lanes; else WoC."""
    WoC = Wo * C
    if WoC <= max_lanes:
        return WoC
    best = None
    for wt in range(1, Wo + 1):
        if Wo % wt:
            continue
        lw = wt * C
        if lw <= max_lanes and lw % 128 == 0:
            best = lw
    return best if best is not None else WoC


# ------------------------------- wrapper --------------------------------------
@functools.partial(jax.jit, static_argnames=("row_tile", "mac_f32"))
def copy_conv_forward(x, W, B, *, row_tile=64, mac_f32=None):
    """x: (N, C, H, W) NCHW.  W: (2, C, 7, 7), B: (2, C) fused (branch 0=S, 1=M).
    Returns (N, 2C, ceil(H/2), ceil(W/2)) NCHW; first C channels = S branch, next C = M."""
    N, C, H, Wd = x.shape
    K = 7
    # Odd spatial dims: right/bottom zero-pad to even == PyTorch's ceil-mode output.
    He, We = H + (H % 2), Wd + (Wd % 2)
    Ho, Wo = He // 2, We // 2
    Hp2, Wp2 = (He + 6) // 2, (We + 6) // 2
    WoC, WpC = Wo * C, Wp2 * C

    if mac_f32 is None:
        mac_f32 = _wants_f32_macs(x.dtype)
    cdt = np.dtype(jnp.float32) if (mac_f32 or x.dtype == jnp.float32) else np.dtype(x.dtype)

    # pad + ONE combined transpose: NCHW -> parity-split, lanes = (out-col, channel).
    xpad = jnp.pad(x, ((0, 0), (0, 0), (3, 3 + He - H), (3, 3 + We - Wd)))
    xr = xpad.reshape(N, C, Hp2, 2, Wp2, 2)
    x_s2d = jnp.transpose(xr, (3, 5, 0, 2, 4, 1)).reshape(4, N, Hp2, WpC)
    # (Keeping activations in this merged (W,C)-lane layout across neighbouring ops would
    #  remove this pass and the final output transpose; out of scope for a single op.)

    # Lane tile (last block dim must be a multiple of 128 lanes, or the full WoC).
    LW = _pick_lane_tile(Wo, C, max_lanes=512)
    L = WoC // LW

    # Bound accumulator vreg pressure: 2 branches x n_parity accumulators of (TH, LW).
    c_bytes = np.dtype(cdt).itemsize
    x_bytes = np.dtype(x.dtype).itemsize
    sub = 8 * (4 // c_bytes)                         # sublanes per vreg row group
    cols = -(-LW // 128)
    budget = 36                                      # vregs reserved for accumulators
    n_parity = 2
    rows = max(budget // (2 * n_parity * cols), 1)
    if rows * sub < 32:                              # prefer a bigger row tile over split accs
        n_parity = 1
        rows = max(budget // (2 * n_parity * cols), 1)
    TH = _pick_row_tile(Ho, min(row_tile, rows * sub))
    grid = (N, Ho // TH, L)

    # Weights / bias pre-tiled to the merged (out-col, channel) lane layout AND pre-cast to
    # the MAC dtype (no per-tap casts inside the kernel; bf16 halves their footprint).
    w_lane = jnp.tile(jnp.transpose(W, (0, 2, 3, 1)), (1, 1, 1, Wo)).astype(cdt)   # (2,K,K,WoC)
    b_lane = jnp.tile(B, (1, Wo)).reshape(2, 1, WoC).astype(cdt)                   # (2,1,WoC)

    # Weights/bias never change across the grid: single-buffer them when they are big
    # (v7x 64 MiB VMEM); tiny blocks keep the default double-buffered path.
    w_block = 2 * K * K * LW * c_bytes
    wb_mode = {} if w_block <= (1 << 20) else dict(pipeline_mode=pl.Buffered(1))

    # VMEM budget computed from the actual block sizes, capped per generation.
    in_block = 4 * Hp2 * WpC * x_bytes
    out_block = 2 * TH * LW * x_bytes
    need = 2 * in_block + 2 * (w_block + 2 * LW * c_bytes) + 2 * out_block + (4 << 20)
    vmem_limit = int(min(max(need, 32 << 20), _vmem_cap_bytes()))

    # Megacore: shard over batch; keep row/lane axes "arbitrary" when N >= 2 so both cores
    # do not each hold the full image (input block is whole-image resident).
    if N >= 2:
        dims = ("parallel", "arbitrary", "arbitrary")
    else:
        dims = ("parallel", "parallel", "arbitrary")

    kernel = functools.partial(_copyconv_kernel, K=K, TH=TH, Ho=Ho, LW=LW, C=C, L=L,
                               n_parity=n_parity, cdt=cdt)
    out = pl.pallas_call(
        kernel,
        out_shape=jax.ShapeDtypeStruct((N, 2, Ho, WoC), x.dtype),
        grid_spec=pltpu.PrefetchScalarGridSpec(
            num_scalar_prefetch=0,
            grid=grid,
            in_specs=[
                # Input stays resident across row/lane tiles (index map ignores t, l).
                pl.BlockSpec((4, 1, Hp2, WpC), lambda n, t, l: (0, n, 0, 0)),
                pl.BlockSpec((2, K, K, LW), lambda n, t, l: (0, 0, 0, l), **wb_mode),
                pl.BlockSpec((2, 1, LW), lambda n, t, l: (0, 0, l), **wb_mode),
            ],
            out_specs=pl.BlockSpec((1, 2, TH, LW), lambda n, t, l: (n, 0, t, l)),
        ),
        compiler_params=pltpu.CompilerParams(
            dimension_semantics=dims,
            vmem_limit_bytes=vmem_limit,
        ),
    )(x_s2d, w_lane, b_lane)

    # (N, 2, Ho, Wo*C) -> NCHW (N, 2C, Ho, Wo); single transpose pass.
    out = out.reshape(N, 2, Ho, Wo, C)
    return jnp.transpose(out, (0, 1, 4, 2, 3)).reshape(N, 2 * C, Ho, Wo)


# ------------------------------ pure-JAX reference -----------------------------
def _dwconv_ref(x, w, b, stride, padding, dilation=(1, 1)):
    out = jax.lax.conv_general_dilated(
        x, w, window_strides=stride, padding=padding, rhs_dilation=dilation,
        feature_group_count=x.shape[1],
        dimension_numbers=('NCHW', 'OIHW', 'NCHW'))
    if b is not None:
        out = out + b[None, :, None, None]
    return out


def copy_conv_ref(x, p):
    s = (_dwconv_ref(x, p['s_w33'], p['s_b33'], (2, 2), [(1, 1), (1, 1)])
         + _dwconv_ref(_dwconv_ref(x, p['s_w3w'], None, (1, 2), [(0, 0), (1, 1)]),
                       p['s_w3h'], None, (2, 1), [(1, 1), (0, 0)])
         + _dwconv_ref(x, p['s_w22'], p['s_b22'], (2, 2), [(1, 1), (1, 1)], dilation=(2, 2)))
    m = (_dwconv_ref(x, p['m_w77'], p['m_b77'], (2, 2), [(3, 3), (3, 3)])
         + _dwconv_ref(x, p['m_w53'], p['m_b53'], (2, 2), [(2, 2), (1, 1)])
         + _dwconv_ref(x, p['m_w35'], p['m_b35'], (2, 2), [(1, 1), (2, 2)])
         + _dwconv_ref(_dwconv_ref(x, p['m_w7w'], None, (1, 2), [(0, 0), (3, 3)]),
                       p['m_w7h'], None, (2, 1), [(3, 3), (0, 0)])
         + _dwconv_ref(_dwconv_ref(x, p['m_w5w'], None, (1, 2), [(0, 0), (2, 2)]),
                       p['m_w5h'], None, (2, 1), [(2, 2), (0, 0)]))
    return jnp.concatenate([s, m], axis=1)


if __name__ == "__main__":
    key = jax.random.PRNGKey(0)
    kx, kp = jax.random.split(key)
    N, C, H, Wd = 2, 4, 16, 16
    x = jax.random.normal(kx, (N, C, H, Wd), jnp.float32)
    params = init_params(kp, C)

    Wf, Bf = fuse_params(params, C)
    out = jax.block_until_ready(copy_conv_forward(x, Wf, Bf))

    ref = copy_conv_ref(x, params)
    assert out.shape == (N, 2 * C, H // 2, Wd // 2), out.shape
    err = float(jnp.max(jnp.abs(out - ref)))
    assert err < 1e-4, f"max abs error {err}"
    print("KERNEL_OK")
</pallas_src>

<mosaic_0001>
module attributes {stable_mosaic.version = 11 : i64} {
  func.func @_copyconv_kernel(%arg0: i32, %arg1: i32, %arg2: i32, %arg3: memref<4x1x11x44xf32, #tpu.memory_space<vmem>>, %arg4: memref<2x7x7x32xf32, #tpu.memory_space<vmem>>, %arg5: memref<2x1x32xf32, #tpu.memory_space<vmem>>, %arg6: memref<1x2x8x32xf32, #tpu.memory_space<vmem>>) attributes {dimension_semantics = [#tpu.dimension_semantics<parallel>, #tpu.dimension_semantics<arbitrary>, #tpu.dimension_semantics<arbitrary>], iteration_bounds = array<i64: 2, 1, 1>, scalar_prefetch = 0 : i64, scratch_operands = 0 : i64, tpu.core_type = #tpu.core_type<tc>, window_params = [{transform_indices = @transform_0, window_bounds = array<i64: 4, 1, 11, 44>}, {transform_indices = @transform_1, window_bounds = array<i64: 2, 7, 7, 32>}, {transform_indices = @transform_2, window_bounds = array<i64: 2, 1, 32>}, {transform_indices = @transform_3, window_bounds = array<i64: 1, 2, 8, 32>}]} {
    %c0 = arith.constant 0 : index
    %c0_0 = arith.constant 0 : index
    %c0_1 = arith.constant 0 : index
    %0 = vector.load %arg5[%c0, %c0_0, %c0_1] : memref<2x1x32xf32, #tpu.memory_space<vmem>>, vector<1x1x32xf32>
    %1 = vector.shape_cast %0 : vector<1x1x32xf32> to vector<1x32xf32>
    %2 = vector.shape_cast %1 : vector<1x32xf32> to vector<1x32xf32>
    %3 = vector.broadcast %2 : vector<1x32xf32> to vector<8x32xf32>
    %c1 = arith.constant 1 : index
    %c0_2 = arith.constant 0 : index
    %c0_3 = arith.constant 0 : index
    %4 = vector.load %arg5[%c1, %c0_2, %c0_3] : memref<2x1x32xf32, #tpu.memory_space<vmem>>, vector<1x1x32xf32>
    %5 = vector.shape_cast %4 : vector<1x1x32xf32> to vector<1x32xf32>
    %6 = vector.shape_cast %5 : vector<1x32xf32> to vector<1x32xf32>
    %7 = vector.broadcast %6 : vector<1x32xf32> to vector<8x32xf32>
    %c0_4 = arith.constant 0 : index
    %c0_5 = arith.constant 0 : index
    %c0_6 = arith.constant 0 : index
    %c0_7 = arith.constant 0 : index
    %8 = vector.load %arg3[%c0_4, %c0_5, %c0_6, %c0_7] : memref<4x1x11x44xf32, #tpu.memory_space<vmem>>, vector<1x1x8x44xf32>
    %9 = vector.shape_cast %8 : vector<1x1x8x44xf32> to vector<8x44xf32>
    %10 = vector.extract_strided_slice %9 {offsets = [0, 0], sizes = [8, 32], strides = [1, 1]} : vector<8x44xf32> to vector<8x32xf32>
    %c0_8 = arith.constant 0 : index
    %c0_9 = arith.constant 0 : index
    %c0_10 = arith.constant 0 : index
    %c0_11 = arith.constant 0 : index
    %11 = vector.load %arg4[%c0_8, %c0_9, %c0_10, %c0_11] : memref<2x7x7x32xf32, #tpu.memory_space<vmem>>, vector<1x1x1x32xf32>
    %12 = vector.shape_cast %11 : vector<1x1x1x32xf32> to vector<32xf32>
    %13 = vector.shape_cast %12 : vector<32xf32> to vector<1x32xf32>
    %14 = vector.broadcast %13 : vector<1x32xf32> to vector<8x32xf32>
    %15 = arith.mulf %10, %14 : vector<8x32xf32>
    %16 = arith.addf %3, %15 : vector<8x32xf32>
    %c1_12 = arith.constant 1 : index
    %c0_13 = arith.constant 0 : index
    %c0_14 = arith.constant 0 : index
    %c0_15 = arith.constant 0 : index
    %17 = vector.load %arg4[%c1_12, %c0_13, %c0_14, %c0_15] : memref<2x7x7x32xf32, #tpu.memory_space<vmem>>, vector<1x1x1x32xf32>
    %18 = vector.shape_cast %17 : vector<1x1x1x32xf32> to vector<32xf32>
    %19 = vector.shape_cast %18 : vector<32xf32> to vector<1x32xf32>
    %20 = vector.broadcast %19 : vector<1x32xf32> to vector<8x32xf32>
    %21 = arith.mulf %10, %20 : vector<8x32xf32>
    %22 = arith.addf %7, %21 : vector<8x32xf32>
    %23 = vector.extract_strided_slice %9 {offsets = [0, 4], sizes = [8, 32], strides = [1, 1]} : vector<8x44xf32> to vector<8x32xf32>
    %c0_16 = arith.constant 0 : index
    %c0_17 = arith.constant 0 : index
    %c2 = arith.constant 2 : index
    %c0_18 = arith.constant 0 : index
    %24 = vector.load %arg4[%c0_16, %c0_17, %c2, %c0_18] : memref<2x7x7x32xf32, #tpu.memory_space<vmem>>, vector<1x1x1x32xf32>
    %25 = vector.shape_cast %24 : vector<1x1x1x32xf32> to vector<32xf32>
    %26 = vector.shape_cast %25 : vector<32xf32> to vector<1x32xf32>
    %27 = vector.broadcast %26 : vector<1x32xf32> to vector<8x32xf32>
    %28 = arith.mulf %23, %27 : vector<8x32xf32>
    %29 = arith.addf %16, %28 : vector<8x32xf32>
    %c1_19 = arith.constant 1 : index
    %c0_20 = arith.constant 0 : index
    %c2_21 = arith.constant 2 : index
    %c0_22 = arith.constant 0 : index
    %30 = vector.load %arg4[%c1_19, %c0_20, %c2_21, %c0_22] : memref<2x7x7x32xf32, #tpu.memory_space<vmem>>, vector<1x1x1x32xf32>
    %31 = vector.shape_cast %30 : vector<1x1x1x32xf32> to vector<32xf32>
    %32 = vector.shape_cast %31 : vector<32xf32> to vector<1x32xf32>
    %33 = vector.broadcast %32 : vector<1x32xf32> to vector<8x32xf32>
    %34 = arith.mulf %23, %33 : vector<8x32xf32>
    %35 = arith.addf %22, %34 : vector<8x32xf32>
    %36 = vector.extract_strided_slice %9 {offsets = [0, 8], sizes = [8, 32], strides = [1, 1]} : vector<8x44xf32> to vector<8x32xf32>
    %c0_23 = arith.constant 0 : index
    %c0_24 = arith.constant 0 : index
    %c4 = arith.constant 4 : index
    %c0_25 = arith.constant 0 : index
    %37 = vector.load %arg4[%c0_23, %c0_24, %c4, %c0_25] : memref<2x7x7x32xf32, #tpu.memory_space<vmem>>, vector<1x1x1x32xf32>
    %38 = vector.shape_cast %37 : vector<1x1x1x32xf32> to vector<32xf32>
    %39 = vector.shape_cast %38 : vector<32xf32> to vector<1x32xf32>
    %40 = vector.broadcast %39 : vector<1x32xf32> to vector<8x32xf32>
    %41 = arith.mulf %36, %40 : vector<8x32xf32>
    %42 = arith.addf %29, %41 : vector<8x32xf32>
    %c1_26 = arith.constant 1 : index
    %c0_27 = arith.constant 0 : index
    %c4_28 = arith.constant 4 : index
    %c0_29 = arith.constant 0 : index
    %43 = vector.load %arg4[%c1_26, %c0_27, %c4_28, %c0_29] : memref<2x7x7x32xf32, #tpu.memory_space<vmem>>, vector<1x1x1x32xf32>
    %44 = vector.shape_cast %43 : vector<1x1x1x32xf32> to vector<32xf32>
    %45 = vector.shape_cast %44 : vector<32xf32> to vector<1x32xf32>
    %46 = vector.broadcast %45 : vector<1x32xf32> to vector<8x32xf32>
    %47 = arith.mulf %36, %46 : vector<8x32xf32>
    %48 = arith.addf %35, %47 : vector<8x32xf32>
    %49 = vector.extract_strided_slice %9 {offsets = [0, 12], sizes = [8, 32], strides = [1, 1]} : vector<8x44xf32> to vector<8x32xf32>
    %c0_30 = arith.constant 0 : index
    %c0_31 = arith.constant 0 : index
    %c6 = arith.constant 6 : index
    %c0_32 = arith.constant 0 : index
    %50 = vector.load %arg4[%c0_30, %c0_31, %c6, %c0_32] : memref<2x7x7x32xf32, #tpu.memory_space<vmem>>, vector<1x1x1x32xf32>
    %51 = vector.shape_cast %50 : vector<1x1x1x32xf32> to vector<32xf32>
    %52 = vector.shape_cast %51 : vector<32xf32> to vector<1x32xf32>
    %53 = vector.broadcast %52 : vector<1x32xf32> to vector<8x32xf32>
    %54 = arith.mulf %49, %53 : vector<8x32xf32>
    %55 = arith.addf %42, %54 : vector<8x32xf32>
    %c1_33 = arith.constant 1 : index
    %c0_34 = arith.constant 0 : index
    %c6_35 = arith.constant 6 : index
    %c0_36 = arith.constant 0 : index
    %56 = vector.load %arg4[%c1_33, %c0_34, %c6_35, %c0_36] : memref<2x7x7x32xf32, #tpu.memory_space<vmem>>, vector<1x1x1x32xf32>
    %57 = vector.shape_cast %56 : vector<1x1x1x32xf32> to vector<32xf32>
    %58 = vector.shape_cast %57 : vector<32xf32> to vector<1x32xf32>
    %59 = vector.broadcast %58 : vector<1x32xf32> to vector<8x32xf32>
    %60 = arith.mulf %49, %59 : vector<8x32xf32>
    %61 = arith.addf %48, %60 : vector<8x32xf32>
    %c1_37 = arith.constant 1 : index
    %c0_38 = arith.constant 0 : index
    %c0_39 = arith.constant 0 : index
    %c0_40 = arith.constant 0 : index
    %62 = vector.load %arg3[%c1_37, %c0_38, %c0_39, %c0_40] : memref<4x1x11x44xf32, #tpu.memory_space<vmem>>, vector<1x1x8x44xf32>
    %63 = vector.shape_cast %62 : vector<1x1x8x44xf32> to vector<8x44xf32>
    %64 = vector.extract_strided_slice %63 {offsets = [0, 0], sizes = [8, 32], strides = [1, 1]} : vector<8x44xf32> to vector<8x32xf32>
    %c0_41 = arith.constant 0 : index
    %c0_42 = arith.constant 0 : index
    %c1_43 = arith.constant 1 : index
    %c0_44 = arith.constant 0 : index
    %65 = vector.load %arg4[%c0_41, %c0_42, %c1_43, %c0_44] : memref<2x7x7x32xf32, #tpu.memory_space<vmem>>, vector<1x1x1x32xf32>
    %66 = vector.shape_cast %65 : vector<1x1x1x32xf32> to vector<32xf32>
    %67 = vector.shape_cast %66 : vector<32xf32> to vector<1x32xf32>
    %68 = vector.broadcast %67 : vector<1x32xf32> to vector<8x32xf32>
    %69 = arith.mulf %64, %68 : vector<8x32xf32>
    %70 = arith.addf %55, %69 : vector<8x32xf32>
    %c1_45 = arith.constant 1 : index
    %c0_46 = arith.constant 0 : index
    %c1_47 = arith.constant 1 : index
    %c0_48 = arith.constant 0 : index
    %71 = vector.load %arg4[%c1_45, %c0_46, %c1_47, %c0_48] : memref<2x7x7x32xf32, #tpu.memory_space<vmem>>, vector<1x1x1x32xf32>
    %72 = vector.shape_cast %71 : vector<1x1x1x32xf32> to vector<32xf32>
    %73 = vector.shape_cast %72 : vector<32xf32> to vector<1x32xf32>
    %74 = vector.broadcast %73 : vector<1x32xf32> to vector<8x32xf32>
    %75 = arith.mulf %64, %74 : vector<8x32xf32>
    %76 = arith.addf %61, %75 : vector<8x32xf32>
    %77 = vector.extract_strided_slice %63 {offsets = [0, 4], sizes = [8, 32], strides = [1, 1]} : vector<8x44xf32> to vector<8x32xf32>
    %c0_49 = arith.constant 0 : index
    %c0_50 = arith.constant 0 : index
    %c3 = arith.constant 3 : index
    %c0_51 = arith.constant 0 : index
    %78 = vector.load %arg4[%c0_49, %c0_50, %c3, %c0_51] : memref<2x7x7x32xf32, #tpu.memory_space<vmem>>, vector<1x1x1x32xf32>
    %79 = vector.shape_cast %78 : vector<1x1x1x32xf32> to vector<32xf32>
    %80 = vector.shape_cast %79 : vector<32xf32> to vector<1x32xf32>
    %81 = vector.broadcast %80 : vector<1x32xf32> to vector<8x32xf32>
    %82 = arith.mulf %77, %81 : vector<8x32xf32>
    %83 = arith.addf %70, %82 : vector<8x32xf32>
    %c1_52 = arith.constant 1 : index
    %c0_53 = arith.constant 0 : index
    %c3_54 = arith.constant 3 : index
    %c0_55 = arith.constant 0 : index
    %84 = vector.load %arg4[%c1_52, %c0_53, %c3_54, %c0_55] : memref<2x7x7x32xf32, #tpu.memory_space<vmem>>, vector<1x1x1x32xf32>
    %85 = vector.shape_cast %84 : vector<1x1x1x32xf32> to vector<32xf32>
    %86 = vector.shape_cast %85 : vector<32xf32> to vector<1x32xf32>
    %87 = vector.broadcast %86 : vector<1x32xf32> to vector<8x32xf32>
    %88 = arith.mulf %77, %87 : vector<8x32xf32>
    %89 = arith.addf %76, %88 : vector<8x32xf32>
    %90 = vector.extract_strided_slice %63 {offsets = [0, 8], sizes = [8, 32], strides = [1, 1]} : vector<8x44xf32> to vector<8x32xf32>
    %c0_56 = arith.constant 0 : index
    %c0_57 = arith.constant 0 : index
    %c5 = arith.constant 5 : index
    %c0_58 = arith.constant 0 : index
    %91 = vector.load %arg4[%c0_56, %c0_57, %c5, %c0_58] : memref<2x7x7x32xf32, #tpu.memory_space<vmem>>, vector<1x1x1x32xf32>
    %92 = vector.shape_cast %91 : vector<1x1x1x32xf32> to vector<32xf32>
    %93 = vector.shape_cast %92 : vector<32xf32> to vector<1x32xf32>
    %94 = vector.broadcast %93 : vector<1x32xf32> to vector<8x32xf32>
    %95 = arith.mulf %90, %94 : vector<8x32xf32>
    %96 = arith.addf %83, %95 : vector<8x32xf32>
    %c1_59 = arith.constant 1 : index
    %c0_60 = arith.constant 0 : index
    %c5_61 = arith.constant 5 : index
    %c0_62 = arith.constant 0 : index
    %97 = vector.load %arg4[%c1_59, %c0_60, %c5_61, %c0_62] : memref<2x7x7x32xf32, #tpu.memory_space<vmem>>, vector<1x1x1x32xf32>
    %98 = vector.shape_cast %97 : vector<1x1x1x32xf32> to vector<32xf32>
    %99 = vector.shape_cast %98 : vector<32xf32> to vector<1x32xf32>
    %100 = vector.broadcast %99 : vector<1x32xf32> to vector<8x32xf32>
    %101 = arith.mulf %90, %100 : vector<8x32xf32>
    %102 = arith.addf %89, %101 : vector<8x32xf32>
    %c2_63 = arith.constant 2 : index
    %c0_64 = arith.constant 0 : index
    %c0_65 = arith.constant 0 : index
    %c0_66 = arith.constant 0 : index
    %103 = vector.load %arg3[%c2_63, %c0_64, %c0_65, %c0_66] : memref<4x1x11x44xf32, #tpu.memory_space<vmem>>, vector<1x1x8x44xf32>
    %104 = vector.shape_cast %103 : vector<1x1x8x44xf32> to vector<8x44xf32>
    %105 = vector.extract_strided_slice %104 {offsets = [0, 0], sizes = [8, 32], strides = [1, 1]} : vector<8x44xf32> to vector<8x32xf32>
    %c0_67 = arith.constant 0 : index
    %c1_68 = arith.constant 1 : index
    %c0_69 = arith.constant 0 : index
    %c0_70 = arith.constant 0 : index
    %106 = vector.load %arg4[%c0_67, %c1_68, %c0_69, %c0_70] : memref<2x7x7x32xf32, #tpu.memory_space<vmem>>, vector<1x1x1x32xf32>
    %107 = vector.shape_cast %106 : vector<1x1x1x32xf32> to vector<32xf32>
    %108 = vector.shape_cast %107 : vector<32xf32> to vector<1x32xf32>
    %109 = vector.broadcast %108 : vector<1x32xf32> to vector<8x32xf32>
    %110 = arith.mulf %105, %109 : vector<8x32xf32>
    %c1_71 = arith.constant 1 : index
    %c1_72 = arith.constant 1 : index
    %c0_73 = arith.constant 0 : index
    %c0_74 = arith.constant 0 : index
    %111 = vector.load %arg4[%c1_71, %c1_72, %c0_73, %c0_74] : memref<2x7x7x32xf32, #tpu.memory_space<vmem>>, vector<1x1x1x32xf32>
    %112 = vector.shape_cast %111 : vector<1x1x1x32xf32> to vector<32xf32>
    %113 = vector.shape_cast %112 : vector<32xf32> to vector<1x32xf32>
    %114 = vector.broadcast %113 : vector<1x32xf32> to vector<8x32xf32>
    %115 = arith.mulf %105, %114 : vector<8x32xf32>
    %116 = vector.extract_strided_slice %104 {offsets = [0, 4], sizes = [8, 32], strides = [1, 1]} : vector<8x44xf32> to vector<8x32xf32>
    %c0_75 = arith.constant 0 : index
    %c1_76 = arith.constant 1 : index
    %c2_77 = arith.constant 2 : index
    %c0_78 = arith.constant 0 : index
    %117 = vector.load %arg4[%c0_75, %c1_76, %c2_77, %c0_78] : memref<2x7x7x32xf32, #tpu.memory_space<vmem>>, vector<1x1x1x32xf32>
    %118 = vector.shape_cast %117 : vector<1x1x1x32xf32> to vector<32xf32>
    %119 = vector.shape_cast %118 : vector<32xf32> to vector<1x32xf32>
    %120 = vector.broadcast %119 : vector<1x32xf32> to vector<8x32xf32>
    %121 = arith.mulf %116, %120 : vector<8x32xf32>
    %122 = arith.addf %110, %121 : vector<8x32xf32>
    %c1_79 = arith.constant 1 : index
    %c1_80 = arith.constant 1 : index
    %c2_81 = arith.constant 2 : index
    %c0_82 = arith.constant 0 : index
    %123 = vector.load %arg4[%c1_79, %c1_80, %c2_81, %c0_82] : memref<2x7x7x32xf32, #tpu.memory_space<vmem>>, vector<1x1x1x32xf32>
    %124 = vector.shape_cast %123 : vector<1x1x1x32xf32> to vector<32xf32>
    %125 = vector.shape_cast %124 : vector<32xf32> to vector<1x32xf32>
    %126 = vector.broadcast %125 : vector<1x32xf32> to vector<8x32xf32>
    %127 = arith.mulf %116, %126 : vector<8x32xf32>
    %128 = arith.addf %115, %127 : vector<8x32xf32>
    %129 = vector.extract_strided_slice %104 {offsets = [0, 8], sizes = [8, 32], strides = [1, 1]} : vector<8x44xf32> to vector<8x32xf32>
    %c0_83 = arith.constant 0 : index
    %c1_84 = arith.constant 1 : index
    %c4_85 = arith.constant 4 : index
    %c0_86 = arith.constant 0 : index
    %130 = vector.load %arg4[%c0_83, %c1_84, %c4_85, %c0_86] : memref<2x7x7x32xf32, #tpu.memory_space<vmem>>, vector<1x1x1x32xf32>
    %131 = vector.shape_cast %130 : vector<1x1x1x32xf32> to vector<32xf32>
    %132 = vector.shape_cast %131 : vector<32xf32> to vector<1x32xf32>
    %133 = vector.broadcast %132 : vector<1x32xf32> to vector<8x32xf32>
    %134 = arith.mulf %129, %133 : vector<8x32xf32>
    %135 = arith.addf %122, %134 : vector<8x32xf32>
    %c1_87 = arith.constant 1 : index
    %c1_88 = arith.constant 1 : index
    %c4_89 = arith.constant 4 : index
    %c0_90 = arith.constant 0 : index
    %136 = vector.load %arg4[%c1_87, %c1_88, %c4_89, %c0_90] : memref<2x7x7x32xf32, #tpu.memory_space<vmem>>, vector<1x1x1x32xf32>
    %137 = vector.shape_cast %136 : vector<1x1x1x32xf32> to vector<32xf32>
    %138 = vector.shape_cast %137 : vector<32xf32> to vector<1x32xf32>
    %139 = vector.broadcast %138 : vector<1x32xf32> to vector<8x32xf32>
    %140 = arith.mulf %129, %139 : vector<8x32xf32>
    %141 = arith.addf %128, %140 : vector<8x32xf32>
    %142 = vector.extract_strided_slice %104 {offsets = [0, 12], sizes = [8, 32], strides = [1, 1]} : vector<8x44xf32> to vector<8x32xf32>
    %c0_91 = arith.constant 0 : index
    %c1_92 = arith.constant 1 : index
    %c6_93 = arith.constant 6 : index
    %c0_94 = arith.constant 0 : index
    %143 = vector.load %arg4[%c0_91, %c1_92, %c6_93, %c0_94] : memref<2x7x7x32xf32, #tpu.memory_space<vmem>>, vector<1x1x1x32xf32>
    %144 = vector.shape_cast %143 : vector<1x1x1x32xf32> to vector<32xf32>
    %145 = vector.shape_cast %144 : vector<32xf32> to vector<1x32xf32>
    %146 = vector.broadcast %145 : vector<1x32xf32> to vector<8x32xf32>
    %147 = arith.mulf %142, %146 : vector<8x32xf32>
    %148 = arith.addf %135, %147 : vector<8x32xf32>
    %c1_95 = arith.constant 1 : index
    %c1_96 = arith.constant 1 : index
    %c6_97 = arith.constant 6 : index
    %c0_98 = arith.constant 0 : index
    %149 = vector.load %arg4[%c1_95, %c1_96, %c6_97, %c0_98] : memref<2x7x7x32xf32, #tpu.memory_space<vmem>>, vector<1x1x1x32xf32>
    %150 = vector.shape_cast %149 : vector<1x1x1x32xf32> to vector<32xf32>
    %151 = vector.shape_cast %150 : vector<32xf32> to vector<1x32xf32>
    %152 = vector.broadcast %151 : vector<1x32xf32> to vector<8x32xf32>
    %153 = arith.mulf %142, %152 : vector<8x32xf32>
    %154 = arith.addf %141, %153 : vector<8x32xf32>
    %c3_99 = arith.constant 3 : index
    %c0_100 = arith.constant 0 : index
    %c0_101 = arith.constant 0 : index
    %c0_102 = arith.constant 0 : index
    %155 = vector.load %arg3[%c3_99, %c0_100, %c0_101, %c0_102] : memref<4x1x11x44xf32, #tpu.memory_space<vmem>>, vector<1x1x8x44xf32>
    %156 = vector.shape_cast %155 : vector<1x1x8x44xf32> to vector<8x44xf32>
    %157 = vector.extract_strided_slice %156 {offsets = [0, 0], sizes = [8, 32], strides = [1, 1]} : vector<8x44xf32> to vector<8x32xf32>
    %c0_103 = arith.constant 0 : index
    %c1_104 = arith.constant 1 : index
    %c1_105 = arith.constant 1 : index
    %c0_106 = arith.constant 0 : index
    %158 = vector.load %arg4[%c0_103, %c1_104, %c1_105, %c0_106] : memref<2x7x7x32xf32, #tpu.memory_space<vmem>>, vector<1x1x1x32xf32>
    %159 = vector.shape_cast %158 : vector<1x1x1x32xf32> to vector<32xf32>
    %160 = vector.shape_cast %159 : vector<32xf32> to vector<1x32xf32>
    %161 = vector.broadcast %160 : vector<1x32xf32> to vector<8x32xf32>
    %162 = arith.mulf %157, %161 : vector<8x32xf32>
    %163 = arith.addf %148, %162 : vector<8x32xf32>
    %c1_107 = arith.constant 1 : index
    %c1_108 = arith.constant 1 : index
    %c1_109 = arith.constant 1 : index
    %c0_110 = arith.constant 0 : index
    %164 = vector.load %arg4[%c1_107, %c1_108, %c1_109, %c0_110] : memref<2x7x7x32xf32, #tpu.memory_space<vmem>>, vector<1x1x1x32xf32>
    %165 = vector.shape_cast %164 : vector<1x1x1x32xf32> to vector<32xf32>
    %166 = vector.shape_cast %165 : vector<32xf32> to vector<1x32xf32>
    %167 = vector.broadcast %166 : vector<1x32xf32> to vector<8x32xf32>
    %168 = arith.mulf %157, %167 : vector<8x32xf32>
    %169 = arith.addf %154, %168 : vector<8x32xf32>
    %170 = vector.extract_strided_slice %156 {offsets = [0, 4], sizes = [8, 32], strides = [1, 1]} : vector<8x44xf32> to vector<8x32xf32>
    %c0_111 = arith.constant 0 : index
    %c1_112 = arith.constant 1 : index
    %c3_113 = arith.constant 3 : index
    %c0_114 = arith.constant 0 : index
    %171 = vector.load %arg4[%c0_111, %c1_112, %c3_113, %c0_114] : memref<2x7x7x32xf32, #tpu.memory_space<vmem>>, vector<1x1x1x32xf32>
    %172 = vector.shape_cast %171 : vector<1x1x1x32xf32> to vector<32xf32>
    %173 = vector.shape_cast %172 : vector<32xf32> to vector<1x32xf32>
    %174 = vector.broadcast %173 : vector<1x32xf32> to vector<8x32xf32>
    %175 = arith.mulf %170, %174 : vector<8x32xf32>
    %176 = arith.addf %163, %175 : vector<8x32xf32>
    %c1_115 = arith.constant 1 : index
    %c1_116 = arith.constant 1 : index
    %c3_117 = arith.constant 3 : index
    %c0_118 = arith.constant 0 : index
    %177 = vector.load %arg4[%c1_115, %c1_116, %c3_117, %c0_118] : memref<2x7x7x32xf32, #tpu.memory_space<vmem>>, vector<1x1x1x32xf32>
    %178 = vector.shape_cast %177 : vector<1x1x1x32xf32> to vector<32xf32>
    %179 = vector.shape_cast %178 : vector<32xf32> to vector<1x32xf32>
    %180 = vector.broadcast %179 : vector<1x32xf32> to vector<8x32xf32>
    %181 = arith.mulf %170, %180 : vector<8x32xf32>
    %182 = arith.addf %169, %181 : vector<8x32xf32>
    %183 = vector.extract_strided_slice %156 {offsets = [0, 8], sizes = [8, 32], strides = [1, 1]} : vector<8x44xf32> to vector<8x32xf32>
    %c0_119 = arith.constant 0 : index
    %c1_120 = arith.constant 1 : index
    %c5_121 = arith.constant 5 : index
    %c0_122 = arith.constant 0 : index
    %184 = vector.load %arg4[%c0_119, %c1_120, %c5_121, %c0_122] : memref<2x7x7x32xf32, #tpu.memory_space<vmem>>, vector<1x1x1x32xf32>
    %185 = vector.shape_cast %184 : vector<1x1x1x32xf32> to vector<32xf32>
    %186 = vector.shape_cast %185 : vector<32xf32> to vector<1x32xf32>
    %187 = vector.broadcast %186 : vector<1x32xf32> to vector<8x32xf32>
    %188 = arith.mulf %183, %187 : vector<8x32xf32>
    %189 = arith.addf %176, %188 : vector<8x32xf32>
    %c1_123 = arith.constant 1 : index
    %c1_124 = arith.constant 1 : index
    %c5_125 = arith.constant 5 : index
    %c0_126 = arith.constant 0 : index
    %190 = vector.load %arg4[%c1_123, %c1_124, %c5_125, %c0_126] : memref<2x7x7x32xf32, #tpu.memory_space<vmem>>, vector<1x1x1x32xf32>
    %191 = vector.shape_cast %190 : vector<1x1x1x32xf32> to vector<32xf32>
    %192 = vector.shape_cast %191 : vector<32xf32> to vector<1x32xf32>
    %193 = vector.broadcast %192 : vector<1x32xf32> to vector<8x32xf32>
    %194 = arith.mulf %183, %193 : vector<8x32xf32>
    %195 = arith.addf %182, %194 : vector<8x32xf32>
    %c0_127 = arith.constant 0 : index
    %c0_128 = arith.constant 0 : index
    %c1_129 = arith.constant 1 : index
    %c0_130 = arith.constant 0 : index
    %196 = vector.load %arg3[%c0_127, %c0_128, %c1_129, %c0_130] : memref<4x1x11x44xf32, #tpu.memory_space<vmem>>, vector<1x1x8x44xf32>
    %197 = vector.shape_cast %196 : vector<1x1x8x44xf32> to vector<8x44xf32>
    %198 = vector.extract_strided_slice %197 {offsets = [0, 0], sizes = [8, 32], strides = [1, 1]} : vector<8x44xf32> to vector<8x32xf32>
    %c0_131 = arith.constant 0 : index
    %c2_132 = arith.constant 2 : index
    %c0_133 = arith.constant 0 : index
    %c0_134 = arith.constant 0 : index
    %199 = vector.load %arg4[%c0_131, %c2_132, %c0_133, %c0_134] : memref<2x7x7x32xf32, #tpu.memory_space<vmem>>, vector<1x1x1x32xf32>
    %200 = vector.shape_cast %199 : vector<1x1x1x32xf32> to vector<32xf32>
    %201 = vector.shape_cast %200 : vector<32xf32> to vector<1x32xf32>
    %202 = vector.broadcast %201 : vector<1x32xf32> to vector<8x32xf32>
    %203 = arith.mulf %198, %202 : vector<8x32xf32>
    %204 = arith.addf %96, %203 : vector<8x32xf32>
    %c1_135 = arith.constant 1 : index
    %c2_136 = arith.constant 2 : index
    %c0_137 = arith.constant 0 : index
    %c0_138 = arith.constant 0 : index
    %205 = vector.load %arg4[%c1_135, %c2_136, %c0_137, %c0_138] : memref<2x7x7x32xf32, #tpu.memory_space<vmem>>, vector<1x1x1x32xf32>
    %206 = vector.shape_cast %205 : vector<1x1x1x32xf32> to vector<32xf32>
    %207 = vector.shape_cast %206 : vector<32xf32> to vector<1x32xf32>
    %208 = vector.broadcast %207 : vector<1x32xf32> to vector<8x32xf32>
    %209 = arith.mulf %198, %208 : vector<8x32xf32>
    %210 = arith.addf %102, %209 : vector<8x32xf32>
    %211 = vector.extract_strided_slice %197 {offsets = [0, 4], sizes = [8, 32], strides = [1, 1]} : vector<8x44xf32> to vector<8x32xf32>
    %c0_139 = arith.constant 0 : index
    %c2_140 = arith.constant 2 : index
    %c2_141 = arith.constant 2 : index
    %c0_142 = arith.constant 0 : index
    %212 = vector.load %arg4[%c0_139, %c2_140, %c2_141, %c0_142] : memref<2x7x7x32xf32, #tpu.memory_space<vmem>>, vector<1x1x1x32xf32>
    %213 = vector.shape_cast %212 : vector<1x1x1x32xf32> to vector<32xf32>
    %214 = vector.shape_cast %213 : vector<32xf32> to vector<1x32xf32>
    %215 = vector.broadcast %214 : vector<1x32xf32> to vector<8x32xf32>
    %216 = arith.mulf %211, %215 : vector<8x32xf32>
    %217 = arith.addf %204, %216 : vector<8x32xf32>
    %c1_143 = arith.constant 1 : index
    %c2_144 = arith.constant 2 : index
    %c2_145 = arith.constant 2 : index
    %c0_146 = arith.constant 0 : index
    %218 = vector.load %arg4[%c1_143, %c2_144, %c2_145, %c0_146] : memref<2x7x7x32xf32, #tpu.memory_space<vmem>>, vector<1x1x1x32xf32>
    %219 = vector.shape_cast %218 : vector<1x1x1x32xf32> to vector<32xf32>
    %220 = vector.shape_cast %219 : vector<32xf32> to vector<1x32xf32>
    %221 = vector.broadcast %220 : vector<1x32xf32> to vector<8x32xf32>
    %222 = arith.mulf %211, %221 : vector<8x32xf32>
    %223 = arith.addf %210, %222 : vector<8x32xf32>
    %224 = vector.extract_strided_slice %197 {offsets = [0, 8], sizes = [8, 32], strides = [1, 1]} : vector<8x44xf32> to vector<8x32xf32>
    %c0_147 = arith.constant 0 : index
    %c2_148 = arith.constant 2 : index
    %c4_149 = arith.constant 4 : index
    %c0_150 = arith.constant 0 : index
    %225 = vector.load %arg4[%c0_147, %c2_148, %c4_149, %c0_150] : memref<2x7x7x32xf32, #tpu.memory_space<vmem>>, vector<1x1x1x32xf32>
    %226 = vector.shape_cast %225 : vector<1x1x1x32xf32> to vector<32xf32>
    %227 = vector.shape_cast %226 : vector<32xf32> to vector<1x32xf32>
    %228 = vector.broadcast %227 : vector<1x32xf32> to vector<8x32xf32>
    %229 = arith.mulf %224, %228 : vector<8x32xf32>
    %230 = arith.addf %217, %229 : vector<8x32xf32>
    %c1_151 = arith.constant 1 : index
    %c2_152 = arith.constant 2 : index
    %c4_153 = arith.constant 4 : index
    %c0_154 = arith.constant 0 : index
    %231 = vector.load %arg4[%c1_151, %c2_152, %c4_153, %c0_154] : memref<2x7x7x32xf32, #tpu.memory_space<vmem>>, vector<1x1x1x32xf32>
    %232 = vector.shape_cast %231 : vector<1x1x1x32xf32> to vector<32xf32>
    %233 = vector.shape_cast %232 : vector<32xf32> to vector<1x32xf32>
    %234 = vector.broadcast %233 : vector<1x32xf32> to vector<8x32xf32>
    %235 = arith.mulf %224, %234 : vector<8x32xf32>
    %236 = arith.addf %223, %235 : vector<8x32xf32>
    %237 = vector.extract_strided_slice %197 {offsets = [0, 12], sizes = [8, 32], strides = [1, 1]} : vector<8x44xf32> to vector<8x32xf32>
    %c0_155 = arith.constant 0 : index
    %c2_156 = arith.constant 2 : index
    %c6_157 = arith.constant 6 : index
    %c0_158 = arith.constant 0 : index
    %238 = vector.load %arg4[%c0_155, %c2_156, %c6_157, %c0_158] : memref<2x7x7x32xf32, #tpu.memory_space<vmem>>, vector<1x1x1x32xf32>
    %239 = vector.shape_cast %238 : vector<1x1x1x32xf32> to vector<32xf32>
    %240 = vector.shape_cast %239 : vector<32xf32> to vector<1x32xf32>
    %241 = vector.broadcast %240 : vector<1x32xf32> to vector<8x32xf32>
    %242 = arith.mulf %237, %241 : vector<8x32xf32>
    %243 = arith.addf %230, %242 : vector<8x32xf32>
    %c1_159 = arith.constant 1 : index
    %c2_160 = arith.constant 2 : index
    %c6_161 = arith.constant 6 : index
    %c0_162 = arith.constant 0 : index
    %244 = vector.load %arg4[%c1_159, %c2_160, %c6_161, %c0_162] : memref<2x7x7x32xf32, #tpu.memory_space<vmem>>, vector<1x1x1x32xf32>
    %245 = vector.shape_cast %244 : vector<1x1x1x32xf32> to vector<32xf32>
    %246 = vector.shape_cast %245 : vector<32xf32> to vector<1x32xf32>
    %247 = vector.broadcast %246 : vector<1x32xf32> to vector<8x32xf32>
    %248 = arith.mulf %237, %247 : vector<8x32xf32>
    %249 = arith.addf %236, %248 : vector<8x32xf32>
    %c1_163 = arith.constant 1 : index
    %c0_164 = arith.constant 0 : index
    %c1_165 = arith.constant 1 : index
    %c0_166 = arith.constant 0 : index
    %250 = vector.load %arg3[%c1_163, %c0_164, %c1_165, %c0_166] : memref<4x1x11x44xf32, #tpu.memory_space<vmem>>, vector<1x1x8x44xf32>
    %251 = vector.shape_cast %250 : vector<1x1x8x44xf32> to vector<8x44xf32>
    %252 = vector.extract_strided_slice %251 {offsets = [0, 0], sizes = [8, 32], strides = [1, 1]} : vector<8x44xf32> to vector<8x32xf32>
    %c0_167 = arith.constant 0 : index
    %c2_168 = arith.constant 2 : index
    %c1_169 = arith.constant 1 : index
    %c0_170 = arith.constant 0 : index
    %253 = vector.load %arg4[%c0_167, %c2_168, %c1_169, %c0_170] : memref<2x7x7x32xf32, #tpu.memory_space<vmem>>, vector<1x1x1x32xf32>
    %254 = vector.shape_cast %253 : vector<1x1x1x32xf32> to vector<32xf32>
    %255 = vector.shape_cast %254 : vector<32xf32> to vector<1x32xf32>
    %256 = vector.broadcast %255 : vector<1x32xf32> to vector<8x32xf32>
    %257 = arith.mulf %252, %256 : vector<8x32xf32>
    %258 = arith.addf %243, %257 : vector<8x32xf32>
    %c1_171 = arith.constant 1 : index
    %c2_172 = arith.constant 2 : index
    %c1_173 = arith.constant 1 : index
    %c0_174 = arith.constant 0 : index
    %259 = vector.load %arg4[%c1_171, %c2_172, %c1_173, %c0_174] : memref<2x7x7x32xf32, #tpu.memory_space<vmem>>, vector<1x1x1x32xf32>
    %260 = vector.shape_cast %259 : vector<1x1x1x32xf32> to vector<32xf32>
    %261 = vector.shape_cast %260 : vector<32xf32> to vector<1x32xf32>
    %262 = vector.broadcast %261 : vector<1x32xf32> to vector<8x32xf32>
    %263 = arith.mulf %252, %262 : vector<8x32xf32>
    %264 = arith.addf %249, %263 : vector<8x32xf32>
    %265 = vector.extract_strided_slice %251 {offsets = [0, 4], sizes = [8, 32], strides = [1, 1]} : vector<8x44xf32> to vector<8x32xf32>
    %c0_175 = arith.constant 0 : index
    %c2_176 = arith.constant 2 : index
    %c3_177 = arith.constant 3 : index
    %c0_178 = arith.constant 0 : index
    %266 = vector.load %arg4[%c0_175, %c2_176, %c3_177, %c0_178] : memref<2x7x7x32xf32, #tpu.memory_space<vmem>>, vector<1x1x1x32xf32>
    %267 = vector.shape_cast %266 : vector<1x1x1x32xf32> to vector<32xf32>
    %268 = vector.shape_cast %267 : vector<32xf32> to vector<1x32xf32>
    %269 = vector.broadcast %268 : vector<1x32xf32> to vector<8x32xf32>
    %270 = arith.mulf %265, %269 : vector<8x32xf32>
    %271 = arith.addf %258, %270 : vector<8x32xf32>
    %c1_179 = arith.constant 1 : index
    %c2_180 = arith.constant 2 : index
    %c3_181 = arith.constant 3 : index
    %c0_182 = arith.constant 0 : index
    %272 = vector.load %arg4[%c1_179, %c2_180, %c3_181, %c0_182] : memref<2x7x7x32xf32, #tpu.memory_space<vmem>>, vector<1x1x1x32xf32>
    %273 = vector.shape_cast %272 : vector<1x1x1x32xf32> to vector<32xf32>
    %274 = vector.shape_cast %273 : vector<32xf32> to vector<1x32xf32>
    %275 = vector.broadcast %274 : vector<1x32xf32> to vector<8x32xf32>
    %276 = arith.mulf %265, %275 : vector<8x32xf32>
    %277 = arith.addf %264, %276 : vector<8x32xf32>
    %278 = vector.extract_strided_slice %251 {offsets = [0, 8], sizes = [8, 32], strides = [1, 1]} : vector<8x44xf32> to vector<8x32xf32>
    %c0_183 = arith.constant 0 : index
    %c2_184 = arith.constant 2 : index
    %c5_185 = arith.constant 5 : index
    %c0_186 = arith.constant 0 : index
    %279 = vector.load %arg4[%c0_183, %c2_184, %c5_185, %c0_186] : memref<2x7x7x32xf32, #tpu.memory_space<vmem>>, vector<1x1x1x32xf32>
    %280 = vector.shape_cast %279 : vector<1x1x1x32xf32> to vector<32xf32>
    %281 = vector.shape_cast %280 : vector<32xf32> to vector<1x32xf32>
    %282 = vector.broadcast %281 : vector<1x32xf32> to vector<8x32xf32>
    %283 = arith.mulf %278, %282 : vector<8x32xf32>
    %284 = arith.addf %271, %283 : vector<8x32xf32>
    %c1_187 = arith.constant 1 : index
    %c2_188 = arith.constant 2 : index
    %c5_189 = arith.constant 5 : index
    %c0_190 = arith.constant 0 : index
    %285 = vector.load %arg4[%c1_187, %c2_188, %c5_189, %c0_190] : memref<2x7x7x32xf32, #tpu.memory_space<vmem>>, vector<1x1x1x32xf32>
    %286 = vector.shape_cast %285 : vector<1x1x1x32xf32> to vector<32xf32>
    %287 = vector.shape_cast %286 : vector<32xf32> to vector<1x32xf32>
    %288 = vector.broadcast %287 : vector<1x32xf32> to vector<8x32xf32>
    %289 = arith.mulf %278, %288 : vector<8x32xf32>
    %290 = arith.addf %277, %289 : vector<8x32xf32>
    %c2_191 = arith.constant 2 : index
    %c0_192 = arith.constant 0 : index
    %c1_193 = arith.constant 1 : index
    %c0_194 = arith.constant 0 : index
    %291 = vector.load %arg3[%c2_191, %c0_192, %c1_193, %c0_194] : memref<4x1x11x44xf32, #tpu.memory_space<vmem>>, vector<1x1x8x44xf32>
    %292 = vector.shape_cast %291 : vector<1x1x8x44xf32> to vector<8x44xf32>
    %293 = vector.extract_strided_slice %292 {offsets = [0, 0], sizes = [8, 32], strides = [1, 1]} : vector<8x44xf32> to vector<8x32xf32>
    %c0_195 = arith.constant 0 : index
    %c3_196 = arith.constant 3 : index
    %c0_197 = arith.constant 0 : index
    %c0_198 = arith.constant 0 : index
    %294 = vector.load %arg4[%c0_195, %c3_196, %c0_197, %c0_198] : memref<2x7x7x32xf32, #tpu.memory_space<vmem>>, vector<1x1x1x32xf32>
    %295 = vector.shape_cast %294 : vector<1x1x1x32xf32> to vector<32xf32>
    %296 = vector.shape_cast %295 : vector<32xf32> to vector<1x32xf32>
    %297 = vector.broadcast %296 : vector<1x32xf32> to vector<8x32xf32>
    %298 = arith.mulf %293, %297 : vector<8x32xf32>
    %299 = arith.addf %189, %298 : vector<8x32xf32>
    %c1_199 = arith.constant 1 : index
    %c3_200 = arith.constant 3 : index
    %c0_201 = arith.constant 0 : index
    %c0_202 = arith.constant 0 : index
    %300 = vector.load %arg4[%c1_199, %c3_200, %c0_201, %c0_202] : memref<2x7x7x32xf32, #tpu.memory_space<vmem>>, vector<1x1x1x32xf32>
    %301 = vector.shape_cast %300 : vector<1x1x1x32xf32> to vector<32xf32>
    %302 = vector.shape_cast %301 : vector<32xf32> to vector<1x32xf32>
    %303 = vector.broadcast %302 : vector<1x32xf32> to vector<8x32xf32>
    %304 = arith.mulf %293, %303 : vector<8x32xf32>
    %305 = arith.addf %195, %304 : vector<8x32xf32>
    %306 = vector.extract_strided_slice %292 {offsets = [0, 4], sizes = [8, 32], strides = [1, 1]} : vector<8x44xf32> to vector<8x32xf32>
    %c0_203 = arith.constant 0 : index
    %c3_204 = arith.constant 3 : index
    %c2_205 = arith.constant 2 : index
    %c0_206 = arith.constant 0 : index
    %307 = vector.load %arg4[%c0_203, %c3_204, %c2_205, %c0_206] : memref<2x7x7x32xf32, #tpu.memory_space<vmem>>, vector<1x1x1x32xf32>
    %308 = vector.shape_cast %307 : vector<1x1x1x32xf32> to vector<32xf32>
    %309 = vector.shape_cast %308 : vector<32xf32> to vector<1x32xf32>
    %310 = vector.broadcast %309 : vector<1x32xf32> to vector<8x32xf32>
    %311 = arith.mulf %306, %310 : vector<8x32xf32>
    %312 = arith.addf %299, %311 : vector<8x32xf32>
    %c1_207 = arith.constant 1 : index
    %c3_208 = arith.constant 3 : index
    %c2_209 = arith.constant 2 : index
    %c0_210 = arith.constant 0 : index
    %313 = vector.load %arg4[%c1_207, %c3_208, %c2_209, %c0_210] : memref<2x7x7x32xf32, #tpu.memory_space<vmem>>, vector<1x1x1x32xf32>
    %314 = vector.shape_cast %313 : vector<1x1x1x32xf32> to vector<32xf32>
    %315 = vector.shape_cast %314 : vector<32xf32> to vector<1x32xf32>
    %316 = vector.broadcast %315 : vector<1x32xf32> to vector<8x32xf32>
    %317 = arith.mulf %306, %316 : vector<8x32xf32>
    %318 = arith.addf %305, %317 : vector<8x32xf32>
    %319 = vector.extract_strided_slice %292 {offsets = [0, 8], sizes = [8, 32], strides = [1, 1]} : vector<8x44xf32> to vector<8x32xf32>
    %c0_211 = arith.constant 0 : index
    %c3_212 = arith.constant 3 : index
    %c4_213 = arith.constant 4 : index
    %c0_214 = arith.constant 0 : index
    %320 = vector.load %arg4[%c0_211, %c3_212, %c4_213, %c0_214] : memref<2x7x7x32xf32, #tpu.memory_space<vmem>>, vector<1x1x1x32xf32>
    %321 = vector.shape_cast %320 : vector<1x1x1x32xf32> to vector<32xf32>
    %322 = vector.shape_cast %321 : vector<32xf32> to vector<1x32xf32>
    %323 = vector.broadcast %322 : vector<1x32xf32> to vector<8x32xf32>
    %324 = arith.mulf %319, %323 : vector<8x32xf32>
    %325 = arith.addf %312, %324 : vector<8x32xf32>
    %c1_215 = arith.constant 1 : index
    %c3_216 = arith.constant 3 : index
    %c4_217 = arith.constant 4 : index
    %c0_218 = arith.constant 0 : index
    %326 = vector.load %arg4[%c1_215, %c3_216, %c4_217, %c0_218] : memref<2x7x7x32xf32, #tpu.memory_space<vmem>>, vector<1x1x1x32xf32>
    %327 = vector.shape_cast %326 : vector<1x1x1x32xf32> to vector<32xf32>
    %328 = vector.shape_cast %327 : vector<32xf32> to vector<1x32xf32>
    %329 = vector.broadcast %328 : vector<1x32xf32> to vector<8x32xf32>
    %330 = arith.mulf %319, %329 : vector<8x32xf32>
    %331 = arith.addf %318, %330 : vector<8x32xf32>
    %332 = vector.extract_strided_slice %292 {offsets = [0, 12], sizes = [8, 32], strides = [1, 1]} : vector<8x44xf32> to vector<8x32xf32>
    %c0_219 = arith.constant 0 : index
    %c3_220 = arith.constant 3 : index
    %c6_221 = arith.constant 6 : index
    %c0_222 = arith.constant 0 : index
    %333 = vector.load %arg4[%c0_219, %c3_220, %c6_221, %c0_222] : memref<2x7x7x32xf32, #tpu.memory_space<vmem>>, vector<1x1x1x32xf32>
    %334 = vector.shape_cast %333 : vector<1x1x1x32xf32> to vector<32xf32>
    %335 = vector.shape_cast %334 : vector<32xf32> to vector<1x32xf32>
    %336 = vector.broadcast %335 : vector<1x32xf32> to vector<8x32xf32>
    %337 = arith.mulf %332, %336 : vector<8x32xf32>
    %338 = arith.addf %325, %337 : vector<8x32xf32>
    %c1_223 = arith.constant 1 : index
    %c3_224 = arith.constant 3 : index
    %c6_225 = arith.constant 6 : index
    %c0_226 = arith.constant 0 : index
    %339 = vector.load %arg4[%c1_223, %c3_224, %c6_225, %c0_226] : memref<2x7x7x32xf32, #tpu.memory_space<vmem>>, vector<1x1x1x32xf32>
    %340 = vector.shape_cast %339 : vector<1x1x1x32xf32> to vector<32xf32>
    %341 = vector.shape_cast %340 : vector<32xf32> to vector<1x32xf32>
    %342 = vector.broadcast %341 : vector<1x32xf32> to vector<8x32xf32>
    %343 = arith.mulf %332, %342 : vector<8x32xf32>
    %344 = arith.addf %331, %343 : vector<8x32xf32>
    %c3_227 = arith.constant 3 : index
    %c0_228 = arith.constant 0 : index
    %c1_229 = arith.constant 1 : index
    %c0_230 = arith.constant 0 : index
    %345 = vector.load %arg3[%c3_227, %c0_228, %c1_229, %c0_230] : memref<4x1x11x44xf32, #tpu.memory_space<vmem>>, vector<1x1x8x44xf32>
    %346 = vector.shape_cast %345 : vector<1x1x8x44xf32> to vector<8x44xf32>
    %347 = vector.extract_strided_slice %346 {offsets = [0, 0], sizes = [8, 32], strides = [1, 1]} : vector<8x44xf32> to vector<8x32xf32>
    %c0_231 = arith.constant 0 : index
    %c3_232 = arith.constant 3 : index
    %c1_233 = arith.constant 1 : index
    %c0_234 = arith.constant 0 : index
    %348 = vector.load %arg4[%c0_231, %c3_232, %c1_233, %c0_234] : memref<2x7x7x32xf32, #tpu.memory_space<vmem>>, vector<1x1x1x32xf32>
    %349 = vector.shape_cast %348 : vector<1x1x1x32xf32> to vector<32xf32>
    %350 = vector.shape_cast %349 : vector<32xf32> to vector<1x32xf32>
    %351 = vector.broadcast %350 : vector<1x32xf32> to vector<8x32xf32>
    %352 = arith.mulf %347, %351 : vector<8x32xf32>
    %353 = arith.addf %338, %352 : vector<8x32xf32>
    %c1_235 = arith.constant 1 : index
    %c3_236 = arith.constant 3 : index
    %c1_237 = arith.constant 1 : index
    %c0_238 = arith.constant 0 : index
    %354 = vector.load %arg4[%c1_235, %c3_236, %c1_237, %c0_238] : memref<2x7x7x32xf32, #tpu.memory_space<vmem>>, vector<1x1x1x32xf32>
    %355 = vector.shape_cast %354 : vector<1x1x1x32xf32> to vector<32xf32>
    %356 = vector.shape_cast %355 : vector<32xf32> to vector<1x32xf32>
    %357 = vector.broadcast %356 : vector<1x32xf32> to vector<8x32xf32>
    %358 = arith.mulf %347, %357 : vector<8x32xf32>
    %359 = arith.addf %344, %358 : vector<8x32xf32>
    %360 = vector.extract_strided_slice %346 {offsets = [0, 4], sizes = [8, 32], strides = [1, 1]} : vector<8x44xf32> to vector<8x32xf32>
    %c0_239 = arith.constant 0 : index
    %c3_240 = arith.constant 3 : index
    %c3_241 = arith.constant 3 : index
    %c0_242 = arith.constant 0 : index
    %361 = vector.load %arg4[%c0_239, %c3_240, %c3_241, %c0_242] : memref<2x7x7x32xf32, #tpu.memory_space<vmem>>, vector<1x1x1x32xf32>
    %362 = vector.shape_cast %361 : vector<1x1x1x32xf32> to vector<32xf32>
    %363 = vector.shape_cast %362 : vector<32xf32> to vector<1x32xf32>
    %364 = vector.broadcast %363 : vector<1x32xf32> to vector<8x32xf32>
    %365 = arith.mulf %360, %364 : vector<8x32xf32>
    %366 = arith.addf %353, %365 : vector<8x32xf32>
    %c1_243 = arith.constant 1 : index
    %c3_244 = arith.constant 3 : index
    %c3_245 = arith.constant 3 : index
    %c0_246 = arith.constant 0 : index
    %367 = vector.load %arg4[%c1_243, %c3_244, %c3_245, %c0_246] : memref<2x7x7x32xf32, #tpu.memory_space<vmem>>, vector<1x1x1x32xf32>
    %368 = vector.shape_cast %367 : vector<1x1x1x32xf32> to vector<32xf32>
    %369 = vector.shape_cast %368 : vector<32xf32> to vector<1x32xf32>
    %370 = vector.broadcast %369 : vector<1x32xf32> to vector<8x32xf32>
    %371 = arith.mulf %360, %370 : vector<8x32xf32>
    %372 = arith.addf %359, %371 : vector<8x32xf32>
    %373 = vector.extract_strided_slice %346 {offsets = [0, 8], sizes = [8, 32], strides = [1, 1]} : vector<8x44xf32> to vector<8x32xf32>
    %c0_247 = arith.constant 0 : index
    %c3_248 = arith.constant 3 : index
    %c5_249 = arith.constant 5 : index
    %c0_250 = arith.constant 0 : index
    %374 = vector.load %arg4[%c0_247, %c3_248, %c5_249, %c0_250] : memref<2x7x7x32xf32, #tpu.memory_space<vmem>>, vector<1x1x1x32xf32>
    %375 = vector.shape_cast %374 : vector<1x1x1x32xf32> to vector<32xf32>
    %376 = vector.shape_cast %375 : vector<32xf32> to vector<1x32xf32>
    %377 = vector.broadcast %376 : vector<1x32xf32> to vector<8x32xf32>
    %378 = arith.mulf %373, %377 : vector<8x32xf32>
    %379 = arith.addf %366, %378 : vector<8x32xf32>
    %c1_251 = arith.constant 1 : index
    %c3_252 = arith.constant 3 : index
    %c5_253 = arith.constant 5 : index
    %c0_254 = arith.constant 0 : index
    %380 = vector.load %arg4[%c1_251, %c3_252, %c5_253, %c0_254] : memref<2x7x7x32xf32, #tpu.memory_space<vmem>>, vector<1x1x1x32xf32>
    %381 = vector.shape_cast %380 : vector<1x1x1x32xf32> to vector<32xf32>
    %382 = vector.shape_cast %381 : vector<32xf32> to vector<1x32xf32>
    %383 = vector.broadcast %382 : vector<1x32xf32> to vector<8x32xf32>
    %384 = arith.mulf %373, %383 : vector<8x32xf32>
    %385 = arith.addf %372, %384 : vector<8x32xf32>
    %c0_255 = arith.constant 0 : index
    %c0_256 = arith.constant 0 : index
    %c2_257 = arith.constant 2 : index
    %c0_258 = arith.constant 0 : index
    %386 = vector.load %arg3[%c0_255, %c0_256, %c2_257, %c0_258] : memref<4x1x11x44xf32, #tpu.memory_space<vmem>>, vector<1x1x8x44xf32>
    %387 = vector.shape_cast %386 : vector<1x1x8x44xf32> to vector<8x44xf32>
    %388 = vector.extract_strided_slice %387 {offsets = [0, 0], sizes = [8, 32], strides = [1, 1]} : vector<8x44xf32> to vector<8x32xf32>
    %c0_259 = arith.constant 0 : index
    %c4_260 = arith.constant 4 : index
    %c0_261 = arith.constant 0 : index
    %c0_262 = arith.constant 0 : index
    %389 = vector.load %arg4[%c0_259, %c4_260, %c0_261, %c0_262] : memref<2x7x7x32xf32, #tpu.memory_space<vmem>>, vector<1x1x1x32xf32>
    %390 = vector.shape_cast %389 : vector<1x1x1x32xf32> to vector<32xf32>
    %391 = vector.shape_cast %390 : vector<32xf32> to vector<1x32xf32>
    %392 = vector.broadcast %391 : vector<1x32xf32> to vector<8x32xf32>
    %393 = arith.mulf %388, %392 : vector<8x32xf32>
    %394 = arith.addf %284, %393 : vector<8x32xf32>
    %c1_263 = arith.constant 1 : index
    %c4_264 = arith.constant 4 : index
    %c0_265 = arith.constant 0 : index
    %c0_266 = arith.constant 0 : index
    %395 = vector.load %arg4[%c1_263, %c4_264, %c0_265, %c0_266] : memref<2x7x7x32xf32, #tpu.memory_space<vmem>>, vector<1x1x1x32xf32>
    %396 = vector.shape_cast %395 : vector<1x1x1x32xf32> to vector<32xf32>
    %397 = vector.shape_cast %396 : vector<32xf32> to vector<1x32xf32>
    %398 = vector.broadcast %397 : vector<1x32xf32> to vector<8x32xf32>
    %399 = arith.mulf %388, %398 : vector<8x32xf32>
    %400 = arith.addf %290, %399 : vector<8x32xf32>
    %401 = vector.extract_strided_slice %387 {offsets = [0, 4], sizes = [8, 32], strides = [1, 1]} : vector<8x44xf32> to vector<8x32xf32>
    %c0_267 = arith.constant 0 : index
    %c4_268 = arith.constant 4 : index
    %c2_269 = arith.constant 2 : index
    %c0_270 = arith.constant 0 : index
    %402 = vector.load %arg4[%c0_267, %c4_268, %c2_269, %c0_270] : memref<2x7x7x32xf32, #tpu.memory_space<vmem>>, vector<1x1x1x32xf32>
    %403 = vector.shape_cast %402 : vector<1x1x1x32xf32> to vector<32xf32>
    %404 = vector.shape_cast %403 : vector<32xf32> to vector<1x32xf32>
    %405 = vector.broadcast %404 : vector<1x32xf32> to vector<8x32xf32>
    %406 = arith.mulf %401, %405 : vector<8x32xf32>
    %407 = arith.addf %394, %406 : vector<8x32xf32>
    %c1_271 = arith.constant 1 : index
    %c4_272 = arith.constant 4 : index
    %c2_273 = arith.constant 2 : index
    %c0_274 = arith.constant 0 : index
    %408 = vector.load %arg4[%c1_271, %c4_272, %c2_273, %c0_274] : memref<2x7x7x32xf32, #tpu.memory_space<vmem>>, vector<1x1x1x32xf32>
    %409 = vector.shape_cast %408 : vector<1x1x1x32xf32> to vector<32xf32>
    %410 = vector.shape_cast %409 : vector<32xf32> to vector<1x32xf32>
    %411 = vector.broadcast %410 : vector<1x32xf32> to vector<8x32xf32>
    %412 = arith.mulf %401, %411 : vector<8x32xf32>
    %413 = arith.addf %400, %412 : vector<8x32xf32>
    %414 = vector.extract_strided_slice %387 {offsets = [0, 8], sizes = [8, 32], strides = [1, 1]} : vector<8x44xf32> to vector<8x32xf32>
    %c0_275 = arith.constant 0 : index
    %c4_276 = arith.constant 4 : index
    %c4_277 = arith.constant 4 : index
    %c0_278 = arith.constant 0 : index
    %415 = vector.load %arg4[%c0_275, %c4_276, %c4_277, %c0_278] : memref<2x7x7x32xf32, #tpu.memory_space<vmem>>, vector<1x1x1x32xf32>
    %416 = vector.shape_cast %415 : vector<1x1x1x32xf32> to vector<32xf32>
    %417 = vector.shape_cast %416 : vector<32xf32> to vector<1x32xf32>
    %418 = vector.broadcast %417 : vector<1x32xf32> to vector<8x32xf32>
    %419 = arith.mulf %414, %418 : vector<8x32xf32>
    %420 = arith.addf %407, %419 : vector<8x32xf32>
    %c1_279 = arith.constant 1 : index
    %c4_280 = arith.constant 4 : index
    %c4_281 = arith.constant 4 : index
    %c0_282 = arith.constant 0 : index
    %421 = vector.load %arg4[%c1_279, %c4_280, %c4_281, %c0_282] : memref<2x7x7x32xf32, #tpu.memory_space<vmem>>, vector<1x1x1x32xf32>
    %422 = vector.shape_cast %421 : vector<1x1x1x32xf32> to vector<32xf32>
    %423 = vector.shape_cast %422 : vector<32xf32> to vector<1x32xf32>
    %424 = vector.broadcast %423 : vector<1x32xf32> to vector<8x32xf32>
    %425 = arith.mulf %414, %424 : vector<8x32xf32>
    %426 = arith.addf %413, %425 : vector<8x32xf32>
    %427 = vector.extract_strided_slice %387 {offsets = [0, 12], sizes = [8, 32], strides = [1, 1]} : vector<8x44xf32> to vector<8x32xf32>
    %c0_283 = arith.constant 0 : index
    %c4_284 = arith.constant 4 : index
    %c6_285 = arith.constant 6 : index
    %c0_286 = arith.constant 0 : index
    %428 = vector.load %arg4[%c0_283, %c4_284, %c6_285, %c0_286] : memref<2x7x7x32xf32, #tpu.memory_space<vmem>>, vector<1x1x1x32xf32>
    %429 = vector.shape_cast %428 : vector<1x1x1x32xf32> to vector<32xf32>
    %430 = vector.shape_cast %429 : vector<32xf32> to vector<1x32xf32>
    %431 = vector.broadcast %430 : vector<1x32xf32> to vector<8x32xf32>
    %432 = arith.mulf %427, %431 : vector<8x32xf32>
    %433 = arith.addf %420, %432 : vector<8x32xf32>
    %c1_287 = arith.constant 1 : index
    %c4_288 = arith.constant 4 : index
    %c6_289 = arith.constant 6 : index
    %c0_290 = arith.constant 0 : index
    %434 = vector.load %arg4[%c1_287, %c4_288, %c6_289, %c0_290] : memref<2x7x7x32xf32, #tpu.memory_space<vmem>>, vector<1x1x1x32xf32>
    %435 = vector.shape_cast %434 : vector<1x1x1x32xf32> to vector<32xf32>
    %436 = vector.shape_cast %435 : vector<32xf32> to vector<1x32xf32>
    %437 = vector.broadcast %436 : vector<1x32xf32> to vector<8x32xf32>
    %438 = arith.mulf %427, %437 : vector<8x32xf32>
    %439 = arith.addf %426, %438 : vector<8x32xf32>
    %c1_291 = arith.constant 1 : index
    %c0_292 = arith.constant 0 : index
    %c2_293 = arith.constant 2 : index
    %c0_294 = arith.constant 0 : index
    %440 = vector.load %arg3[%c1_291, %c0_292, %c2_293, %c0_294] : memref<4x1x11x44xf32, #tpu.memory_space<vmem>>, vector<1x1x8x44xf32>
    %441 = vector.shape_cast %440 : vector<1x1x8x44xf32> to vector<8x44xf32>
    %442 = vector.extract_strided_slice %441 {offsets = [0, 0], sizes = [8, 32], strides = [1, 1]} : vector<8x44xf32> to vector<8x32xf32>
    %c0_295 = arith.constant 0 : index
    %c4_296 = arith.constant 4 : index
    %c1_297 = arith.constant 1 : index
    %c0_298 = arith.constant 0 : index
    %443 = vector.load %arg4[%c0_295, %c4_296, %c1_297, %c0_298] : memref<2x7x7x32xf32, #tpu.memory_space<vmem>>, vector<1x1x1x32xf32>
    %444 = vector.shape_cast %443 : vector<1x1x1x32xf32> to vector<32xf32>
    %445 = vector.shape_cast %444 : vector<32xf32> to vector<1x32xf32>
    %446 = vector.broadcast %445 : vector<1x32xf32> to vector<8x32xf32>
    %447 = arith.mulf %442, %446 : vector<8x32xf32>
    %448 = arith.addf %433, %447 : vector<8x32xf32>
    %c1_299 = arith.constant 1 : index
    %c4_300 = arith.constant 4 : index
    %c1_301 = arith.constant 1 : index
    %c0_302 = arith.constant 0 : index
    %449 = vector.load %arg4[%c1_299, %c4_300, %c1_301, %c0_302] : memref<2x7x7x32xf32, #tpu.memory_space<vmem>>, vector<1x1x1x32xf32>
    %450 = vector.shape_cast %449 : vector<1x1x1x32xf32> to vector<32xf32>
    %451 = vector.shape_cast %450 : vector<32xf32> to vector<1x32xf32>
    %452 = vector.broadcast %451 : vector<1x32xf32> to vector<8x32xf32>
    %453 = arith.mulf %442, %452 : vector<8x32xf32>
    %454 = arith.addf %439, %453 : vector<8x32xf32>
    %455 = vector.extract_strided_slice %441 {offsets = [0, 4], sizes = [8, 32], strides = [1, 1]} : vector<8x44xf32> to vector<8x32xf32>
    %c0_303 = arith.constant 0 : index
    %c4_304 = arith.constant 4 : index
    %c3_305 = arith.constant 3 : index
    %c0_306 = arith.constant 0 : index
    %456 = vector.load %arg4[%c0_303, %c4_304, %c3_305, %c0_306] : memref<2x7x7x32xf32, #tpu.memory_space<vmem>>, vector<1x1x1x32xf32>
    %457 = vector.shape_cast %456 : vector<1x1x1x32xf32> to vector<32xf32>
    %458 = vector.shape_cast %457 : vector<32xf32> to vector<1x32xf32>
    %459 = vector.broadcast %458 : vector<1x32xf32> to vector<8x32xf32>
    %460 = arith.mulf %455, %459 : vector<8x32xf32>
    %461 = arith.addf %448, %460 : vector<8x32xf32>
    %c1_307 = arith.constant 1 : index
    %c4_308 = arith.constant 4 : index
    %c3_309 = arith.constant 3 : index
    %c0_310 = arith.constant 0 : index
    %462 = vector.load %arg4[%c1_307, %c4_308, %c3_309, %c0_310] : memref<2x7x7x32xf32, #tpu.memory_space<vmem>>, vector<1x1x1x32xf32>
    %463 = vector.shape_cast %462 : vector<1x1x1x32xf32> to vector<32xf32>
    %464 = vector.shape_cast %463 : vector<32xf32> to vector<1x32xf32>
    %465 = vector.broadcast %464 : vector<1x32xf32> to vector<8x32xf32>
    %466 = arith.mulf %455, %465 : vector<8x32xf32>
    %467 = arith.addf %454, %466 : vector<8x32xf32>
    %468 = vector.extract_strided_slice %441 {offsets = [0, 8], sizes = [8, 32], strides = [1, 1]} : vector<8x44xf32> to vector<8x32xf32>
    %c0_311 = arith.constant 0 : index
    %c4_312 = arith.constant 4 : index
    %c5_313 = arith.constant 5 : index
    %c0_314 = arith.constant 0 : index
    %469 = vector.load %arg4[%c0_311, %c4_312, %c5_313, %c0_314] : memref<2x7x7x32xf32, #tpu.memory_space<vmem>>, vector<1x1x1x32xf32>
    %470 = vector.shape_cast %469 : vector<1x1x1x32xf32> to vector<32xf32>
    %471 = vector.shape_cast %470 : vector<32xf32> to vector<1x32xf32>
    %472 = vector.broadcast %471 : vector<1x32xf32> to vector<8x32xf32>
    %473 = arith.mulf %468, %472 : vector<8x32xf32>
    %474 = arith.addf %461, %473 : vector<8x32xf32>
    %c1_315 = arith.constant 1 : index
    %c4_316 = arith.constant 4 : index
    %c5_317 = arith.constant 5 : index
    %c0_318 = arith.constant 0 : index
    %475 = vector.load %arg4[%c1_315, %c4_316, %c5_317, %c0_318] : memref<2x7x7x32xf32, #tpu.memory_space<vmem>>, vector<1x1x1x32xf32>
    %476 = vector.shape_cast %475 : vector<1x1x1x32xf32> to vector<32xf32>
    %477 = vector.shape_cast %476 : vector<32xf32> to vector<1x32xf32>
    %478 = vector.broadcast %477 : vector<1x32xf32> to vector<8x32xf32>
    %479 = arith.mulf %468, %478 : vector<8x32xf32>
    %480 = arith.addf %467, %479 : vector<8x32xf32>
    %c2_319 = arith.constant 2 : index
    %c0_320 = arith.constant 0 : index
    %c2_321 = arith.constant 2 : index
    %c0_322 = arith.constant 0 : index
    %481 = vector.load %arg3[%c2_319, %c0_320, %c2_321, %c0_322] : memref<4x1x11x44xf32, #tpu.memory_space<vmem>>, vector<1x1x8x44xf32>
    %482 = vector.shape_cast %481 : vector<1x1x8x44xf32> to vector<8x44xf32>
    %483 = vector.extract_strided_slice %482 {offsets = [0, 0], sizes = [8, 32], strides = [1, 1]} : vector<8x44xf32> to vector<8x32xf32>
    %c0_323 = arith.constant 0 : index
    %c5_324 = arith.constant 5 : index
    %c0_325 = arith.constant 0 : index
    %c0_326 = arith.constant 0 : index
    %484 = vector.load %arg4[%c0_323, %c5_324, %c0_325, %c0_326] : memref<2x7x7x32xf32, #tpu.memory_space<vmem>>, vector<1x1x1x32xf32>
    %485 = vector.shape_cast %484 : vector<1x1x1x32xf32> to vector<32xf32>
    %486 = vector.shape_cast %485 : vector<32xf32> to vector<1x32xf32>
    %487 = vector.broadcast %486 : vector<1x32xf32> to vector<8x32xf32>
    %488 = arith.mulf %483, %487 : vector<8x32xf32>
    %489 = arith.addf %379, %488 : vector<8x32xf32>
    %c1_327 = arith.constant 1 : index
    %c5_328 = arith.constant 5 : index
    %c0_329 = arith.constant 0 : index
    %c0_330 = arith.constant 0 : index
    %490 = vector.load %arg4[%c1_327, %c5_328, %c0_329, %c0_330] : memref<2x7x7x32xf32, #tpu.memory_space<vmem>>, vector<1x1x1x32xf32>
    %491 = vector.shape_cast %490 : vector<1x1x1x32xf32> to vector<32xf32>
    %492 = vector.shape_cast %491 : vector<32xf32> to vector<1x32xf32>
    %493 = vector.broadcast %492 : vector<1x32xf32> to vector<8x32xf32>
    %494 = arith.mulf %483, %493 : vector<8x32xf32>
    %495 = arith.addf %385, %494 : vector<8x32xf32>
    %496 = vector.extract_strided_slice %482 {offsets = [0, 4], sizes = [8, 32], strides = [1, 1]} : vector<8x44xf32> to vector<8x32xf32>
    %c0_331 = arith.constant 0 : index
    %c5_332 = arith.constant 5 : index
    %c2_333 = arith.constant 2 : index
    %c0_334 = arith.constant 0 : index
    %497 = vector.load %arg4[%c0_331, %c5_332, %c2_333, %c0_334] : memref<2x7x7x32xf32, #tpu.memory_space<vmem>>, vector<1x1x1x32xf32>
    %498 = vector.shape_cast %497 : vector<1x1x1x32xf32> to vector<32xf32>
    %499 = vector.shape_cast %498 : vector<32xf32> to vector<1x32xf32>
    %500 = vector.broadcast %499 : vector<1x32xf32> to vector<8x32xf32>
    %501 = arith.mulf %496, %500 : vector<8x32xf32>
    %502 = arith.addf %489, %501 : vector<8x32xf32>
    %c1_335 = arith.constant 1 : index
    %c5_336 = arith.constant 5 : index
    %c2_337 = arith.constant 2 : index
    %c0_338 = arith.constant 0 : index
    %503 = vector.load %arg4[%c1_335, %c5_336, %c2_337, %c0_338] : memref<2x7x7x32xf32, #tpu.memory_space<vmem>>, vector<1x1x1x32xf32>
    %504 = vector.shape_cast %503 : vector<1x1x1x32xf32> to vector<32xf32>
    %505 = vector.shape_cast %504 : vector<32xf32> to vector<1x32xf32>
    %506 = vector.broadcast %505 : vector<1x32xf32> to vector<8x32xf32>
    %507 = arith.mulf %496, %506 : vector<8x32xf32>
    %508 = arith.addf %495, %507 : vector<8x32xf32>
    %509 = vector.extract_strided_slice %482 {offsets = [0, 8], sizes = [8, 32], strides = [1, 1]} : vector<8x44xf32> to vector<8x32xf32>
    %c0_339 = arith.constant 0 : index
    %c5_340 = arith.constant 5 : index
    %c4_341 = arith.constant 4 : index
    %c0_342 = arith.constant 0 : index
    %510 = vector.load %arg4[%c0_339, %c5_340, %c4_341, %c0_342] : memref<2x7x7x32xf32, #tpu.memory_space<vmem>>, vector<1x1x1x32xf32>
    %511 = vector.shape_cast %510 : vector<1x1x1x32xf32> to vector<32xf32>
    %512 = vector.shape_cast %511 : vector<32xf32> to vector<1x32xf32>
    %513 = vector.broadcast %512 : vector<1x32xf32> to vector<8x32xf32>
    %514 = arith.mulf %509, %513 : vector<8x32xf32>
    %515 = arith.addf %502, %514 : vector<8x32xf32>
    %c1_343 = arith.constant 1 : index
    %c5_344 = arith.constant 5 : index
    %c4_345 = arith.constant 4 : index
    %c0_346 = arith.constant 0 : index
    %516 = vector.load %arg4[%c1_343, %c5_344, %c4_345, %c0_346] : memref<2x7x7x32xf32, #tpu.memory_space<vmem>>, vector<1x1x1x32xf32>
    %517 = vector.shape_cast %516 : vector<1x1x1x32xf32> to vector<32xf32>
    %518 = vector.shape_cast %517 : vector<32xf32> to vector<1x32xf32>
    %519 = vector.broadcast %518 : vector<1x32xf32> to vector<8x32xf32>
    %520 = arith.mulf %509, %519 : vector<8x32xf32>
    %521 = arith.addf %508, %520 : vector<8x32xf32>
    %522 = vector.extract_strided_slice %482 {offsets = [0, 12], sizes = [8, 32], strides = [1, 1]} : vector<8x44xf32> to vector<8x32xf32>
    %c0_347 = arith.constant 0 : index
    %c5_348 = arith.constant 5 : index
    %c6_349 = arith.constant 6 : index
    %c0_350 = arith.constant 0 : index
    %523 = vector.load %arg4[%c0_347, %c5_348, %c6_349, %c0_350] : memref<2x7x7x32xf32, #tpu.memory_space<vmem>>, vector<1x1x1x32xf32>
    %524 = vector.shape_cast %523 : vector<1x1x1x32xf32> to vector<32xf32>
    %525 = vector.shape_cast %524 : vector<32xf32> to vector<1x32xf32>
    %526 = vector.broadcast %525 : vector<1x32xf32> to vector<8x32xf32>
    %527 = arith.mulf %522, %526 : vector<8x32xf32>
    %528 = arith.addf %515, %527 : vector<8x32xf32>
    %c1_351 = arith.constant 1 : index
    %c5_352 = arith.constant 5 : index
    %c6_353 = arith.constant 6 : index
    %c0_354 = arith.constant 0 : index
    %529 = vector.load %arg4[%c1_351, %c5_352, %c6_353, %c0_354] : memref<2x7x7x32xf32, #tpu.memory_space<vmem>>, vector<1x1x1x32xf32>
    %530 = vector.shape_cast %529 : vector<1x1x1x32xf32> to vector<32xf32>
    %531 = vector.shape_cast %530 : vector<32xf32> to vector<1x32xf32>
    %532 = vector.broadcast %531 : vector<1x32xf32> to vector<8x32xf32>
    %533 = arith.mulf %522, %532 : vector<8x32xf32>
    %534 = arith.addf %521, %533 : vector<8x32xf32>
    %c3_355 = arith.constant 3 : index
    %c0_356 = arith.constant 0 : index
    %c2_357 = arith.constant 2 : index
    %c0_358 = arith.constant 0 : index
    %535 = vector.load %arg3[%c3_355, %c0_356, %c2_357, %c0_358] : memref<4x1x11x44xf32, #tpu.memory_space<vmem>>, vector<1x1x8x44xf32>
    %536 = vector.shape_cast %535 : vector<1x1x8x44xf32> to vector<8x44xf32>
    %537 = vector.extract_strided_slice %536 {offsets = [0, 0], sizes = [8, 32], strides = [1, 1]} : vector<8x44xf32> to vector<8x32xf32>
    %c0_359 = arith.constant 0 : index
    %c5_360 = arith.constant 5 : index
    %c1_361 = arith.constant 1 : index
    %c0_362 = arith.constant 0 : index
    %538 = vector.load %arg4[%c0_359, %c5_360, %c1_361, %c0_362] : memref<2x7x7x32xf32, #tpu.memory_space<vmem>>, vector<1x1x1x32xf32>
    %539 = vector.shape_cast %538 : vector<1x1x1x32xf32> to vector<32xf32>
    %540 = vector.shape_cast %539 : vector<32xf32> to vector<1x32xf32>
    %541 = vector.broadcast %540 : vector<1x32xf32> to vector<8x32xf32>
    %542 = arith.mulf %537, %541 : vector<8x32xf32>
    %543 = arith.addf %528, %542 : vector<8x32xf32>
    %c1_363 = arith.constant 1 : index
    %c5_364 = arith.constant 5 : index
    %c1_365 = arith.constant 1 : index
    %c0_366 = arith.constant 0 : index
    %544 = vector.load %arg4[%c1_363, %c5_364, %c1_365, %c0_366] : memref<2x7x7x32xf32, #tpu.memory_space<vmem>>, vector<1x1x1x32xf32>
    %545 = vector.shape_cast %544 : vector<1x1x1x32xf32> to vector<32xf32>
    %546 = vector.shape_cast %545 : vector<32xf32> to vector<1x32xf32>
    %547 = vector.broadcast %546 : vector<1x32xf32> to vector<8x32xf32>
    %548 = arith.mulf %537, %547 : vector<8x32xf32>
    %549 = arith.addf %534, %548 : vector<8x32xf32>
    %550 = vector.extract_strided_slice %536 {offsets = [0, 4], sizes = [8, 32], strides = [1, 1]} : vector<8x44xf32> to vector<8x32xf32>
    %c0_367 = arith.constant 0 : index
    %c5_368 = arith.constant 5 : index
    %c3_369 = arith.constant 3 : index
    %c0_370 = arith.constant 0 : index
    %551 = vector.load %arg4[%c0_367, %c5_368, %c3_369, %c0_370] : memref<2x7x7x32xf32, #tpu.memory_space<vmem>>, vector<1x1x1x32xf32>
    %552 = vector.shape_cast %551 : vector<1x1x1x32xf32> to vector<32xf32>
    %553 = vector.shape_cast %552 : vector<32xf32> to vector<1x32xf32>
    %554 = vector.broadcast %553 : vector<1x32xf32> to vector<8x32xf32>
    %555 = arith.mulf %550, %554 : vector<8x32xf32>
    %556 = arith.addf %543, %555 : vector<8x32xf32>
    %c1_371 = arith.constant 1 : index
    %c5_372 = arith.constant 5 : index
    %c3_373 = arith.constant 3 : index
    %c0_374 = arith.constant 0 : index
    %557 = vector.load %arg4[%c1_371, %c5_372, %c3_373, %c0_374] : memref<2x7x7x32xf32, #tpu.memory_space<vmem>>, vector<1x1x1x32xf32>
    %558 = vector.shape_cast %557 : vector<1x1x1x32xf32> to vector<32xf32>
    %559 = vector.shape_cast %558 : vector<32xf32> to vector<1x32xf32>
    %560 = vector.broadcast %559 : vector<1x32xf32> to vector<8x32xf32>
    %561 = arith.mulf %550, %560 : vector<8x32xf32>
    %562 = arith.addf %549, %561 : vector<8x32xf32>
    %563 = vector.extract_strided_slice %536 {offsets = [0, 8], sizes = [8, 32], strides = [1, 1]} : vector<8x44xf32> to vector<8x32xf32>
    %c0_375 = arith.constant 0 : index
    %c5_376 = arith.constant 5 : index
    %c5_377 = arith.constant 5 : index
    %c0_378 = arith.constant 0 : index
    %564 = vector.load %arg4[%c0_375, %c5_376, %c5_377, %c0_378] : memref<2x7x7x32xf32, #tpu.memory_space<vmem>>, vector<1x1x1x32xf32>
    %565 = vector.shape_cast %564 : vector<1x1x1x32xf32> to vector<32xf32>
    %566 = vector.shape_cast %565 : vector<32xf32> to vector<1x32xf32>
    %567 = vector.broadcast %566 : vector<1x32xf32> to vector<8x32xf32>
    %568 = arith.mulf %563, %567 : vector<8x32xf32>
    %569 = arith.addf %556, %568 : vector<8x32xf32>
    %c1_379 = arith.constant 1 : index
    %c5_380 = arith.constant 5 : index
    %c5_381 = arith.constant 5 : index
    %c0_382 = arith.constant 0 : index
    %570 = vector.load %arg4[%c1_379, %c5_380, %c5_381, %c0_382] : memref<2x7x7x32xf32, #tpu.memory_space<vmem>>, vector<1x1x1x32xf32>
    %571 = vector.shape_cast %570 : vector<1x1x1x32xf32> to vector<32xf32>
    %572 = vector.shape_cast %571 : vector<32xf32> to vector<1x32xf32>
    %573 = vector.broadcast %572 : vector<1x32xf32> to vector<8x32xf32>
    %574 = arith.mulf %563, %573 : vector<8x32xf32>
    %575 = arith.addf %562, %574 : vector<8x32xf32>
    %c0_383 = arith.constant 0 : index
    %c0_384 = arith.constant 0 : index
    %c3_385 = arith.constant 3 : index
    %c0_386 = arith.constant 0 : index
    %576 = vector.load %arg3[%c0_383, %c0_384, %c3_385, %c0_386] : memref<4x1x11x44xf32, #tpu.memory_space<vmem>>, vector<1x1x8x44xf32>
    %577 = vector.shape_cast %576 : vector<1x1x8x44xf32> to vector<8x44xf32>
    %578 = vector.extract_strided_slice %577 {offsets = [0, 0], sizes = [8, 32], strides = [1, 1]} : vector<8x44xf32> to vector<8x32xf32>
    %c0_387 = arith.constant 0 : index
    %c6_388 = arith.constant 6 : index
    %c0_389 = arith.constant 0 : index
    %c0_390 = arith.constant 0 : index
    %579 = vector.load %arg4[%c0_387, %c6_388, %c0_389, %c0_390] : memref<2x7x7x32xf32, #tpu.memory_space<vmem>>, vector<1x1x1x32xf32>
    %580 = vector.shape_cast %579 : vector<1x1x1x32xf32> to vector<32xf32>
    %581 = vector.shape_cast %580 : vector<32xf32> to vector<1x32xf32>
    %582 = vector.broadcast %581 : vector<1x32xf32> to vector<8x32xf32>
    %583 = arith.mulf %578, %582 : vector<8x32xf32>
    %584 = arith.addf %474, %583 : vector<8x32xf32>
    %c1_391 = arith.constant 1 : index
    %c6_392 = arith.constant 6 : index
    %c0_393 = arith.constant 0 : index
    %c0_394 = arith.constant 0 : index
    %585 = vector.load %arg4[%c1_391, %c6_392, %c0_393, %c0_394] : memref<2x7x7x32xf32, #tpu.memory_space<vmem>>, vector<1x1x1x32xf32>
    %586 = vector.shape_cast %585 : vector<1x1x1x32xf32> to vector<32xf32>
    %587 = vector.shape_cast %586 : vector<32xf32> to vector<1x32xf32>
    %588 = vector.broadcast %587 : vector<1x32xf32> to vector<8x32xf32>
    %589 = arith.mulf %578, %588 : vector<8x32xf32>
    %590 = arith.addf %480, %589 : vector<8x32xf32>
    %591 = vector.extract_strided_slice %577 {offsets = [0, 4], sizes = [8, 32], strides = [1, 1]} : vector<8x44xf32> to vector<8x32xf32>
    %c0_395 = arith.constant 0 : index
    %c6_396 = arith.constant 6 : index
    %c2_397 = arith.constant 2 : index
    %c0_398 = arith.constant 0 : index
    %592 = vector.load %arg4[%c0_395, %c6_396, %c2_397, %c0_398] : memref<2x7x7x32xf32, #tpu.memory_space<vmem>>, vector<1x1x1x32xf32>
    %593 = vector.shape_cast %592 : vector<1x1x1x32xf32> to vector<32xf32>
    %594 = vector.shape_cast %593 : vector<32xf32> to vector<1x32xf32>
    %595 = vector.broadcast %594 : vector<1x32xf32> to vector<8x32xf32>
    %596 = arith.mulf %591, %595 : vector<8x32xf32>
    %597 = arith.addf %584, %596 : vector<8x32xf32>
    %c1_399 = arith.constant 1 : index
    %c6_400 = arith.constant 6 : index
    %c2_401 = arith.constant 2 : index
    %c0_402 = arith.constant 0 : index
    %598 = vector.load %arg4[%c1_399, %c6_400, %c2_401, %c0_402] : memref<2x7x7x32xf32, #tpu.memory_space<vmem>>, vector<1x1x1x32xf32>
    %599 = vector.shape_cast %598 : vector<1x1x1x32xf32> to vector<32xf32>
    %600 = vector.shape_cast %599 : vector<32xf32> to vector<1x32xf32>
    %601 = vector.broadcast %600 : vector<1x32xf32> to vector<8x32xf32>
    %602 = arith.mulf %591, %601 : vector<8x32xf32>
    %603 = arith.addf %590, %602 : vector<8x32xf32>
    %604 = vector.extract_strided_slice %577 {offsets = [0, 8], sizes = [8, 32], strides = [1, 1]} : vector<8x44xf32> to vector<8x32xf32>
    %c0_403 = arith.constant 0 : index
    %c6_404 = arith.constant 6 : index
    %c4_405 = arith.constant 4 : index
    %c0_406 = arith.constant 0 : index
    %605 = vector.load %arg4[%c0_403, %c6_404, %c4_405, %c0_406] : memref<2x7x7x32xf32, #tpu.memory_space<vmem>>, vector<1x1x1x32xf32>
    %606 = vector.shape_cast %605 : vector<1x1x1x32xf32> to vector<32xf32>
    %607 = vector.shape_cast %606 : vector<32xf32> to vector<1x32xf32>
    %608 = vector.broadcast %607 : vector<1x32xf32> to vector<8x32xf32>
    %609 = arith.mulf %604, %608 : vector<8x32xf32>
    %610 = arith.addf %597, %609 : vector<8x32xf32>
    %c1_407 = arith.constant 1 : index
    %c6_408 = arith.constant 6 : index
    %c4_409 = arith.constant 4 : index
    %c0_410 = arith.constant 0 : index
    %611 = vector.load %arg4[%c1_407, %c6_408, %c4_409, %c0_410] : memref<2x7x7x32xf32, #tpu.memory_space<vmem>>, vector<1x1x1x32xf32>
    %612 = vector.shape_cast %611 : vector<1x1x1x32xf32> to vector<32xf32>
    %613 = vector.shape_cast %612 : vector<32xf32> to vector<1x32xf32>
    %614 = vector.broadcast %613 : vector<1x32xf32> to vector<8x32xf32>
    %615 = arith.mulf %604, %614 : vector<8x32xf32>
    %616 = arith.addf %603, %615 : vector<8x32xf32>
    %617 = vector.extract_strided_slice %577 {offsets = [0, 12], sizes = [8, 32], strides = [1, 1]} : vector<8x44xf32> to vector<8x32xf32>
    %c0_411 = arith.constant 0 : index
    %c6_412 = arith.constant 6 : index
    %c6_413 = arith.constant 6 : index
    %c0_414 = arith.constant 0 : index
    %618 = vector.load %arg4[%c0_411, %c6_412, %c6_413, %c0_414] : memref<2x7x7x32xf32, #tpu.memory_space<vmem>>, vector<1x1x1x32xf32>
    %619 = vector.shape_cast %618 : vector<1x1x1x32xf32> to vector<32xf32>
    %620 = vector.shape_cast %619 : vector<32xf32> to vector<1x32xf32>
    %621 = vector.broadcast %620 : vector<1x32xf32> to vector<8x32xf32>
    %622 = arith.mulf %617, %621 : vector<8x32xf32>
    %623 = arith.addf %610, %622 : vector<8x32xf32>
    %c1_415 = arith.constant 1 : index
    %c6_416 = arith.constant 6 : index
    %c6_417 = arith.constant 6 : index
    %c0_418 = arith.constant 0 : index
    %624 = vector.load %arg4[%c1_415, %c6_416, %c6_417, %c0_418] : memref<2x7x7x32xf32, #tpu.memory_space<vmem>>, vector<1x1x1x32xf32>
    %625 = vector.shape_cast %624 : vector<1x1x1x32xf32> to vector<32xf32>
    %626 = vector.shape_cast %625 : vector<32xf32> to vector<1x32xf32>
    %627 = vector.broadcast %626 : vector<1x32xf32> to vector<8x32xf32>
    %628 = arith.mulf %617, %627 : vector<8x32xf32>
    %629 = arith.addf %616, %628 : vector<8x32xf32>
    %c1_419 = arith.constant 1 : index
    %c0_420 = arith.constant 0 : index
    %c3_421 = arith.constant 3 : index
    %c0_422 = arith.constant 0 : index
    %630 = vector.load %arg3[%c1_419, %c0_420, %c3_421, %c0_422] : memref<4x1x11x44xf32, #tpu.memory_space<vmem>>, vector<1x1x8x44xf32>
    %631 = vector.shape_cast %630 : vector<1x1x8x44xf32> to vector<8x44xf32>
    %632 = vector.extract_strided_slice %631 {offsets = [0, 0], sizes = [8, 32], strides = [1, 1]} : vector<8x44xf32> to vector<8x32xf32>
    %c0_423 = arith.constant 0 : index
    %c6_424 = arith.constant 6 : index
    %c1_425 = arith.constant 1 : index
    %c0_426 = arith.constant 0 : index
    %633 = vector.load %arg4[%c0_423, %c6_424, %c1_425, %c0_426] : memref<2x7x7x32xf32, #tpu.memory_space<vmem>>, vector<1x1x1x32xf32>
    %634 = vector.shape_cast %633 : vector<1x1x1x32xf32> to vector<32xf32>
    %635 = vector.shape_cast %634 : vector<32xf32> to vector<1x32xf32>
    %636 = vector.broadcast %635 : vector<1x32xf32> to vector<8x32xf32>
    %637 = arith.mulf %632, %636 : vector<8x32xf32>
    %638 = arith.addf %623, %637 : vector<8x32xf32>
    %c1_427 = arith.constant 1 : index
    %c6_428 = arith.constant 6 : index
    %c1_429 = arith.constant 1 : index
    %c0_430 = arith.constant 0 : index
    %639 = vector.load %arg4[%c1_427, %c6_428, %c1_429, %c0_430] : memref<2x7x7x32xf32, #tpu.memory_space<vmem>>, vector<1x1x1x32xf32>
    %640 = vector.shape_cast %639 : vector<1x1x1x32xf32> to vector<32xf32>
    %641 = vector.shape_cast %640 : vector<32xf32> to vector<1x32xf32>
    %642 = vector.broadcast %641 : vector<1x32xf32> to vector<8x32xf32>
    %643 = arith.mulf %632, %642 : vector<8x32xf32>
    %644 = arith.addf %629, %643 : vector<8x32xf32>
    %645 = vector.extract_strided_slice %631 {offsets = [0, 4], sizes = [8, 32], strides = [1, 1]} : vector<8x44xf32> to vector<8x32xf32>
    %c0_431 = arith.constant 0 : index
    %c6_432 = arith.constant 6 : index
    %c3_433 = arith.constant 3 : index
    %c0_434 = arith.constant 0 : index
    %646 = vector.load %arg4[%c0_431, %c6_432, %c3_433, %c0_434] : memref<2x7x7x32xf32, #tpu.memory_space<vmem>>, vector<1x1x1x32xf32>
    %647 = vector.shape_cast %646 : vector<1x1x1x32xf32> to vector<32xf32>
    %648 = vector.shape_cast %647 : vector<32xf32> to vector<1x32xf32>
    %649 = vector.broadcast %648 : vector<1x32xf32> to vector<8x32xf32>
    %650 = arith.mulf %645, %649 : vector<8x32xf32>
    %651 = arith.addf %638, %650 : vector<8x32xf32>
    %c1_435 = arith.constant 1 : index
    %c6_436 = arith.constant 6 : index
    %c3_437 = arith.constant 3 : index
    %c0_438 = arith.constant 0 : index
    %652 = vector.load %arg4[%c1_435, %c6_436, %c3_437, %c0_438] : memref<2x7x7x32xf32, #tpu.memory_space<vmem>>, vector<1x1x1x32xf32>
    %653 = vector.shape_cast %652 : vector<1x1x1x32xf32> to vector<32xf32>
    %654 = vector.shape_cast %653 : vector<32xf32> to vector<1x32xf32>
    %655 = vector.broadcast %654 : vector<1x32xf32> to vector<8x32xf32>
    %656 = arith.mulf %645, %655 : vector<8x32xf32>
    %657 = arith.addf %644, %656 : vector<8x32xf32>
    %658 = vector.extract_strided_slice %631 {offsets = [0, 8], sizes = [8, 32], strides = [1, 1]} : vector<8x44xf32> to vector<8x32xf32>
    %c0_439 = arith.constant 0 : index
    %c6_440 = arith.constant 6 : index
    %c5_441 = arith.constant 5 : index
    %c0_442 = arith.constant 0 : index
    %659 = vector.load %arg4[%c0_439, %c6_440, %c5_441, %c0_442] : memref<2x7x7x32xf32, #tpu.memory_space<vmem>>, vector<1x1x1x32xf32>
    %660 = vector.shape_cast %659 : vector<1x1x1x32xf32> to vector<32xf32>
    %661 = vector.shape_cast %660 : vector<32xf32> to vector<1x32xf32>
    %662 = vector.broadcast %661 : vector<1x32xf32> to vector<8x32xf32>
    %663 = arith.mulf %658, %662 : vector<8x32xf32>
    %664 = arith.addf %651, %663 : vector<8x32xf32>
    %c1_443 = arith.constant 1 : index
    %c6_444 = arith.constant 6 : index
    %c5_445 = arith.constant 5 : index
    %c0_446 = arith.constant 0 : index
    %665 = vector.load %arg4[%c1_443, %c6_444, %c5_445, %c0_446] : memref<2x7x7x32xf32, #tpu.memory_space<vmem>>, vector<1x1x1x32xf32>
    %666 = vector.shape_cast %665 : vector<1x1x1x32xf32> to vector<32xf32>
    %667 = vector.shape_cast %666 : vector<32xf32> to vector<1x32xf32>
    %668 = vector.broadcast %667 : vector<1x32xf32> to vector<8x32xf32>
    %669 = arith.mulf %658, %668 : vector<8x32xf32>
    %670 = arith.addf %657, %669 : vector<8x32xf32>
    %671 = arith.addf %664, %569 : vector<8x32xf32>
    %c0_447 = arith.constant 0 : index
    %c0_448 = arith.constant 0 : index
    %c0_449 = arith.constant 0 : index
    %c0_450 = arith.constant 0 : index
    %672 = vector.load %arg6[%c0_447, %c0_448, %c0_449, %c0_450] : memref<1x2x8x32xf32, #tpu.memory_space<vmem>>, vector<1x1x8x32xf32>
    %673 = vector.shape_cast %672 : vector<1x1x8x32xf32> to vector<8x32xf32>
    %674 = vector.shape_cast %671 : vector<8x32xf32> to vector<1x1x8x32xf32>
    tpu.vector_store %arg6[%c0_447, %c0_448, %c0_449, %c0_450], %674 {strides = array<i32>} : memref<1x2x8x32xf32, #tpu.memory_space<vmem>>, vector<1x1x8x32xf32>,
    %675 = arith.addf %670, %575 : vector<8x32xf32>
    %c0_451 = arith.constant 0 : index
    %c1_452 = arith.constant 1 : index
    %c0_453 = arith.constant 0 : index
    %c0_454 = arith.constant 0 : index
    %676 = vector.load %arg6[%c0_451, %c1_452, %c0_453, %c0_454] : memref<1x2x8x32xf32, #tpu.memory_space<vmem>>, vector<1x1x8x32xf32>
    %677 = vector.shape_cast %676 : vector<1x1x8x32xf32> to vector<8x32xf32>
    %678 = vector.shape_cast %675 : vector<8x32xf32> to vector<1x1x8x32xf32>
    tpu.vector_store %arg6[%c0_451, %c1_452, %c0_453, %c0_454], %678 {strides = array<i32>} : memref<1x2x8x32xf32, #tpu.memory_space<vmem>>, vector<1x1x8x32xf32>,
    return
  }
  func.func @transform_0(%arg0: i32, %arg1: i32, %arg2: i32) -> (i32, i32, i32, i32) {
    %c0_i32 = arith.constant 0 : i32
    %c0_i32_0 = arith.constant 0 : i32
    %c0_i32_1 = arith.constant 0 : i32
    %c0_i32_2 = arith.constant 0 : i32
    return %c0_i32, %arg0, %c0_i32_0, %c0_i32_1 : i32, i32, i32, i32
  }
  func.func @transform_1(%arg0: i32, %arg1: i32, %arg2: i32) -> (i32, i32, i32, i32) {
    %c0_i32 = arith.constant 0 : i32
    %c0_i32_0 = arith.constant 0 : i32
    %c0_i32_1 = arith.constant 0 : i32
    %c0_i32_2 = arith.constant 0 : i32
    return %c0_i32, %c0_i32_0, %c0_i32_1, %arg2 : i32, i32, i32, i32
  }
  func.func @transform_2(%arg0: i32, %arg1: i32, %arg2: i32) -> (i32, i32, i32) {
    %c0_i32 = arith.constant 0 : i32
    %c0_i32_0 = arith.constant 0 : i32
    %c0_i32_1 = arith.constant 0 : i32
    return %c0_i32, %c0_i32_0, %arg2 : i32, i32, i32
  }
  func.func @transform_3(%arg0: i32, %arg1: i32, %arg2: i32) -> (i32, i32, i32, i32) {
    %c0_i32 = arith.constant 0 : i32
    %c0_i32_0 = arith.constant 0 : i32
    return %arg0, %c0_i32, %arg1, %arg2 : i32, i32, i32, i32
  }
}

</mosaic_0001>

<bundles_post_ra>
// kernel: tile.14
= control target key start
LH: loop header
LB: loop body
LE: loop exit
PB: predicated region body
PF: predicated region fallthrough
CT: control target
= control target key end

     0   :  { %vm4_vm0 = vcmask 1047556   ;;  %s2255_s16 = smov 28   ;;  %s389_s27 = smov 3  ;;  %vm6_vm1 = vcmask 31744   ;;  %vm193_vm2 = vcmask 261344   ;;  %vm404_vm3 = vcmask 228544   ;;  %s3601_s0 = inlined_call_operand.vmem [shape: f32[2,7,7,8,4], index: 0, kind: input, shape index: {}]   ;;  %s3602_s1 = inlined_call_operand.vmem [shape: f32[2,7,7,32], index: 1, kind: output, shape index: {}]  }
   0x1   :  { %v2025_v0 = vld [vmem:[%s3601_s0 + $0x7] ss:$8 sm:$0xf]   ;;  %v2050_v36 = vld [vmem:[%s3601_s0 + $0x6] ss:$8 sm:$0xf]  }
   0x2   :  { %v2026_v1 = vld [vmem:[%s3601_s0 + $0x7] ss:$8 sm:$0xf0]   ;;  %v2051_v37 = vld [vmem:[%s3601_s0 + $0x6] ss:$8 sm:$0xf0]  }
   0x3   :  { %v2029_v2 = vld [vmem:[%s3601_s0 + $0x87] ss:$8 sm:$0xf]   ;;  %v190_v3 = vsel %vm4_vm0, %v2026_v1, %v2025_v0  ;;  %v401_v39 = vsel %vm4_vm0, %v2051_v37, %v2050_v36  ;;  %v2052_v40 = vld [vmem:[%s3601_s0 + $0x46] ss:$8 sm:$0xf]  }
   0x4   :  { %v2030_v4 = vld [vmem:[%s3601_s0 + $0x87] ss:$8 sm:$0xf0]   ;;  %191 = vrot.lane.b32.xlu0 %v190_v3, %s2255_s16  ;;  %v2053_v41 = vld [vmem:[%s3601_s0 + $0x46] ss:$8 sm:$0xf0]  }
   0x5   :  { %v2027_v5 = vld [vmem:[%s3601_s0 + $0x47] ss:$8 sm:$0xf]   ;;  %v223_v6 = vsel %vm4_vm0, %v2030_v4, %v2029_v2  ;;  %v2054_v42 = vld [vmem:[%s3601_s0 + $0x86] ss:$8 sm:$0xf]   ;;  %v417_v44 = vsel %vm4_vm0, %v2053_v41, %v2052_v40 }
   0x6   :  { %v2028_v7 = vld [vmem:[%s3601_s0 + $0x47] ss:$8 sm:$0xf0]   ;;  %224 = vrot.lane.b32.xlu1 %v223_v6, %s2255_s16  ;;  %v2055_v43 = vld [vmem:[%s3601_s0 + $0x86] ss:$8 sm:$0xf0]  }
   0x7   :  { %v2031_v8 = vld [vmem:[%s3601_s0 + $0xc7] ss:$8 sm:$0xf]   ;;  %v206_v9 = vsel %vm4_vm0, %v2028_v7, %v2027_v5  ;;  %v434_v45 = vsel %vm4_vm0, %v2055_v43, %v2054_v42  ;;  %v2056_v46 = vld [vmem:[%s3601_s0 + $0xc6] ss:$8 sm:$0xf]  }
   0x8   :  { %v2032_v10 = vld [vmem:[%s3601_s0 + $0xc7] ss:$8 sm:$0xf0]   ;;  %207 = vrot.lane.b32.xlu0 %v206_v9, %s2255_s16  ;;  %v2057_v47 = vld [vmem:[%s3601_s0 + $0xc6] ss:$8 sm:$0xf0]  }
   0x9   :  { %v240_v11 = vsel %vm4_vm0, %v2032_v10, %v2031_v8  ;;  %v2033_v12 = vld [vmem:[%s3601_s0 + $0x107] ss:$8 sm:$0xf]   ;;  %v2058_v48 = vld [vmem:[%s3601_s0 + $0x106] ss:$8 sm:$0xf]   ;;  %v451_v50 = vsel %vm4_vm0, %v2057_v47, %v2056_v46 }
   0xa   :  { %v2034_v13 = vld [vmem:[%s3601_s0 + $0x107] ss:$8 sm:$0xf0]   ;;  %241 = vrot.lane.b32.xlu1 %v240_v11, %s2255_s16  ;;  %v2059_v49 = vld [vmem:[%s3601_s0 + $0x106] ss:$8 sm:$0xf0]  }
   0xb   :  { %v2035_v14 = vld [vmem:[%s3601_s0 + $0x147] ss:$8 sm:$0xf]   ;;  %v257_v16 = vsel %vm4_vm0, %v2034_v13, %v2033_v12  ;;  %v468_v51 = vsel %vm4_vm0, %v2059_v49, %v2058_v48  ;;  %v2060_v52 = vld [vmem:[%s3601_s0 + $0x146] ss:$8 sm:$0xf]  }
   0xc   :  { %v2036_v15 = vld [vmem:[%s3601_s0 + $0x147] ss:$8 sm:$0xf0]   ;;  %258 = vrot.lane.b32.xlu0 %v257_v16, %s2255_s16  ;;  %v2061_v53 = vld [vmem:[%s3601_s0 + $0x146] ss:$8 sm:$0xf0]  }
   0xd   :  { %v274_v17 = vsel %vm4_vm0, %v2036_v15, %v2035_v14  ;;  %v2037_v18 = vld [vmem:[%s3601_s0 + $0x187] ss:$8 sm:$0xf]   ;;  %v2062_v54 = vld [vmem:[%s3601_s0 + $0x186] ss:$8 sm:$0xf]   ;;  %v485_v56 = vsel %vm4_vm0, %v2061_v53, %v2060_v52 }
   0xe   :  { %v2038_v19 = vld [vmem:[%s3601_s0 + $0x187] ss:$8 sm:$0xf0]   ;;  %275 = vrot.lane.b32.xlu1 %v274_v17, %s2255_s16  ;;  %v2063_v55 = vld [vmem:[%s3601_s0 + $0x186] ss:$8 sm:$0xf0]  }
   0xf   :  { %v2039_v20 = vld [vmem:[%s3601_s0 + $0x1c7] ss:$8 sm:$0xf]   ;;  %v291_v22 = vsel %vm4_vm0, %v2038_v19, %v2037_v18  ;;  %v502_v57 = vsel %vm4_vm0, %v2063_v55, %v2062_v54  ;;  %v2064_v58 = vld [vmem:[%s3601_s0 + $0x1c6] ss:$8 sm:$0xf]  }
  0x10   :  { %v2040_v21 = vld [vmem:[%s3601_s0 + $0x1c7] ss:$8 sm:$0xf0]   ;;  %292 = vrot.lane.b32.xlu0 %v291_v22, %s2255_s16  ;;  %v2065_v59 = vld [vmem:[%s3601_s0 + $0x1c6] ss:$8 sm:$0xf0]  }
  0x11   :  { %v308_v23 = vsel %vm4_vm0, %v2040_v21, %v2039_v20  ;;  %v2041_v24 = vld [vmem:[%s3601_s0 + $0x207] ss:$8 sm:$0xf]   ;;  %v2066_v60 = vld [vmem:[%s3601_s0 + $0x206] ss:$8 sm:$0xf]   ;;  %v519_v62 = vsel %vm4_vm0, %v2065_v59, %v2064_v58 }
  0x12   :  { %v2042_v25 = vld [vmem:[%s3601_s0 + $0x207] ss:$8 sm:$0xf0]   ;;  %309 = vrot.lane.b32.xlu1 %v308_v23, %s2255_s16  ;;  %v2067_v61 = vld [vmem:[%s3601_s0 + $0x206] ss:$8 sm:$0xf0]  }
  0x13   :  { %v2043_v26 = vld [vmem:[%s3601_s0 + $0x247] ss:$8 sm:$0xf]   ;;  %v325_v28 = vsel %vm4_vm0, %v2042_v25, %v2041_v24  ;;  %v536_v63 = vsel %vm4_vm0, %v2067_v61, %v2066_v60  ;;  %v2068_v0 = vld [vmem:[%s3601_s0 + $0x246] ss:$8 sm:$0xf]  }
  0x14   :  { %v2044_v27 = vld [vmem:[%s3601_s0 + $0x247] ss:$8 sm:$0xf0]   ;;  %326 = vrot.lane.b32.xlu0 %v325_v28, %s2255_s16  ;;  %v2069_v1 = vld [vmem:[%s3601_s0 + $0x246] ss:$8 sm:$0xf0]  }
  0x15   :  { %v342_v29 = vsel %vm4_vm0, %v2044_v27, %v2043_v26  ;;  %v2045_v30 = vld [vmem:[%s3601_s0 + $0x287] ss:$8 sm:$0xf]   ;;  %v2070_v2 = vld [vmem:[%s3601_s0 + $0x286] ss:$8 sm:$0xf]   ;;  %v553_v4 = vsel %vm4_vm0, %v2069_v1, %v2068_v0 }
  0x16   :  { %v2046_v31 = vld [vmem:[%s3601_s0 + $0x287] ss:$8 sm:$0xf0]   ;;  %343 = vrot.lane.b32.xlu1 %v342_v29, %s2255_s16  ;;  %v2071_v3 = vld [vmem:[%s3601_s0 + $0x286] ss:$8 sm:$0xf0]  }
  0x17   :  { %v2047_v32 = vld [vmem:[%s3601_s0 + $0x2c7] ss:$8 sm:$0xf]   ;;  %v359_v34 = vsel %vm4_vm0, %v2046_v31, %v2045_v30  ;;  %v570_v5 = vsel %vm4_vm0, %v2071_v3, %v2070_v2  ;;  %v2072_v6 = vld [vmem:[%s3601_s0 + $0x2c6] ss:$8 sm:$0xf]  }
  0x18   :  { %v2048_v33 = vld [vmem:[%s3601_s0 + $0x2c7] ss:$8 sm:$0xf0]   ;;  %360 = vrot.lane.b32.xlu0 %v359_v34, %s2255_s16  ;;  %v2073_v7 = vld [vmem:[%s3601_s0 + $0x2c6] ss:$8 sm:$0xf0]  }
  0x19   :  { %v376_v35 = vsel %vm4_vm0, %v2048_v33, %v2047_v32  ;;  %v2049_v38 = vld [vmem:[%s3601_s0 + $0x307] ss:$8 sm:%s389_s27]   ;;  %s600_s22 = smov 3  ;;  %v587_v8 = vsel %vm4_vm0, %v2073_v7, %v2072_v6  ;;  %v2075_v9 = vld [vmem:[%s3601_s0 + $0x5] ss:$8 sm:$0xf]  }
  0x1a   :  { %377 = vrot.lane.b32.xlu1 %v376_v35, %s2255_s16  ;;  %v2074_v10 = vld [vmem:[%s3601_s0 + $0x306] ss:$8 sm:%s600_s22]   ;;  %v2076_v11 = vld [vmem:[%s3601_s0 + $0x5] ss:$8 sm:$0xf0]   ;;  %s2257_s11 = smov 20  }
  0x1b   :  { %v2077_v12 = vld [vmem:[%s3601_s0 + $0x45] ss:$8 sm:$0xf]   ;;  %v612_v14 = vsel %vm4_vm0, %v2076_v11, %v2075_v9  ;;  %s2499_s12 = smov 3  ;;  %s2258_s25 = smov 16   ;;  %vm615_vm4 = vcmask 195744  }
  0x1c   :  { %391 = vrot.lane.b32.xlu0 %v2049_v38, %s2255_s16  ;;  %s2256_s16 = smov 24   ;;  %v2078_v13 = vld [vmem:[%s3601_s0 + $0x45] ss:$8 sm:$0xf0]   ;;  %s180_s28 = smov 3  ;;  %vm826_vm5 = vcmask 162944  }
  0x1d   :  { %v628_v15 = vsel %vm4_vm0, %v2078_v13, %v2077_v12  ;;  %v2079_v16 = vld [vmem:[%s3601_s0 + $0x85] ss:$8 sm:$0xf]   ;;  %v2_v22 = vld [vmem:[%s3601_s0] ss:$8 sm:$0xf]  }
  0x1e   :  { %402 = vrot.lane.b32.xlu1 %v401_v39, %s2256_s16  ;;  %v2080_v17 = vld [vmem:[%s3601_s0 + $0x85] ss:$8 sm:$0xf0]   ;;  %v3_v25 = vld [vmem:[%s3601_s0] ss:$8 sm:$0xf0]  }
  0x1f   :  { %v2081_v18 = vld [vmem:[%s3601_s0 + $0xc5] ss:$8 sm:$0xf]   ;;  %v645_v20 = vsel %vm4_vm0, %v2080_v17, %v2079_v16  ;;  %v5_v28 = vsel %vm4_vm0, %v3_v25, %v2_v22  ;;  %v2004_v30 = vld [vmem:[%s3601_s0 + $0x80] ss:$8 sm:$0xf]  }
  0x20   :  { %418 = vrot.lane.b32.xlu0 %v417_v44, %s2256_s16  ;;  %v2082_v19 = vld [vmem:[%s3601_s0 + $0xc5] ss:$8 sm:$0xf0]   ;;  %7 = vst.msk [vmem:[#allocation0] sm:$0x3] %vm6_vm1, %v5_v28   ;;  %s1022_s6 = smov 3 }
  0x21   :  { %v2083_v21 = vld [vmem:[%s3601_s0 + $0x105] ss:$8 sm:$0xf]   ;;  %v662_v23 = vsel %vm4_vm0, %v2082_v19, %v2081_v18  ;;  %9 = vst.msk [vmem:[#allocation0 + $0x6] sm:$0xc] %vm6_vm1, %v5_v28   ;;  %s2259_s27 = smov 12  }
  0x22   :  { %435 = vrot.lane.b32.xlu1 %v434_v45, %s2256_s16  ;;  %v2084_v24 = vld [vmem:[%s3601_s0 + $0x105] ss:$8 sm:$0xf0]   ;;  %11 = vst.msk [vmem:[#allocation0 + $0xc] sm:$0x30] %vm6_vm1, %v5_v28   ;;  %s2261_s17 = smov 4  }
  0x23   :  { %v2085_v26 = vld [vmem:[%s3601_s0 + $0x145] ss:$8 sm:$0xf]   ;;  %13 = vst.msk [vmem:[#allocation0 + $0x12] sm:$0xc0] %vm6_vm1, %v5_v28   ;;  %v679_v31 = vsel %vm4_vm0, %v2084_v24, %v2083_v21  ;;  %s1655_s21 = smov 3 }
  0x24   :  { %452 = vrot.lane.b32.xlu0 %v451_v50, %s2256_s16  ;;  %v2086_v27 = vld [vmem:[%s3601_s0 + $0x145] ss:$8 sm:$0xf0]   ;;  %v2005_v32 = vld [vmem:[%s3601_s0 + $0x80] ss:$8 sm:$0xf0]  }
  0x25   :  { %v2087_v29 = vld [vmem:[%s3601_s0 + $0x185] ss:$8 sm:$0xf]   ;;  %v2002_v33 = vld [vmem:[%s3601_s0 + $0x40] ss:$8 sm:$0xf]   ;;  %v696_v34 = vsel %vm4_vm0, %v2086_v27, %v2085_v26  ;;  %v34_v36 = vsel %vm4_vm0, %v2005_v32, %v2004_v30 }
  0x26   :  { %469 = vrot.lane.b32.xlu1 %v468_v51, %s2256_s16  ;;  %v2088_v35 = vld [vmem:[%s3601_s0 + $0x185] ss:$8 sm:$0xf0]   ;;  %v2003_v37 = vld [vmem:[%s3601_s0 + $0x40] ss:$8 sm:$0xf0]  }
  0x27   :  { %v2089_v38 = vld [vmem:[%s3601_s0 + $0x1c5] ss:$8 sm:$0xf]   ;;  %37 = vst.msk [vmem:[#allocation0 + $0x40] sm:$0x3] %vm6_vm1, %v34_v36   ;;  %v19_v40 = vsel %vm4_vm0, %v2003_v37, %v2002_v33  ;;  %v713_v43 = vsel %vm4_vm0, %v2088_v35, %v2087_v29  ;;  %vm1037_vm6 = vcmask 130144  }
  0x28   :  { %486 = vrot.lane.b32.xlu0 %v485_v56, %s2256_s16  ;;  %v2090_v39 = vld [vmem:[%s3601_s0 + $0x1c5] ss:$8 sm:$0xf0]   ;;  %39 = vst.msk [vmem:[#allocation0 + $0x46] sm:$0xc] %vm6_vm1, %v34_v36   ;;  %vm1248_vm7 = vcmask 97344  }
  0x29   :  { %41 = vst.msk [vmem:[#allocation0 + $0x4c] sm:$0x30] %vm6_vm1, %v34_v36   ;;  %43 = vst.msk [vmem:[#allocation0 + $0x52] sm:$0xc0] %vm6_vm1, %v34_v36   ;;  %v730_v46 = vsel %vm4_vm0, %v2090_v39, %v2089_v38  ;;  %v2024_v30 = vld [vmem:[%s3601_s0 + $0x300] ss:$8 sm:%s180_s28]  }
  0x2a   :  { %503 = vrot.lane.b32.xlu1 %v502_v57, %s2256_s16  ;;  %v2091_v41 = vld [vmem:[%s3601_s0 + $0x205] ss:$8 sm:$0xf]   ;;  %22 = vst.msk [vmem:[#allocation0 + $0x20] sm:$0x3] %vm6_vm1, %v19_v40   ;;  %vm1459_vm8 = vcmask 64544  }
  0x2b   :  { %24 = vst.msk [vmem:[#allocation0 + $0x26] sm:$0xc] %vm6_vm1, %v19_v40   ;;  %26 = vst.msk [vmem:[#allocation0 + $0x2c] sm:$0x30] %vm6_vm1, %v19_v40  }
  0x2c   :  { %520 = vrot.lane.b32.xlu0 %v519_v62, %s2256_s16  ;;  %28 = vst.msk [vmem:[#allocation0 + $0x32] sm:$0xc0] %vm6_vm1, %v19_v40   ;;  %v2006_v42 = vld [vmem:[%s3601_s0 + $0xc0] ss:$8 sm:$0xf]  }
  0x2d   :  { %v2007_v44 = vld [vmem:[%s3601_s0 + $0xc0] ss:$8 sm:$0xf0]   ;;  %v2092_v47 = vld [vmem:[%s3601_s0 + $0x205] ss:$8 sm:$0xf0]  }
  0x2e   :  { %537 = vrot.lane.b32.xlu1 %v536_v63, %s2256_s16  ;;  %v2008_v45 = vld [vmem:[%s3601_s0 + $0x100] ss:$8 sm:$0xf]   ;;  %v49_v48 = vsel %vm4_vm0, %v2007_v44, %v2006_v42  ;;  %v2093_v50 = vld [vmem:[%s3601_s0 + $0x245] ss:$8 sm:$0xf]   ;;  %v747_v55 = vsel %vm4_vm0, %v2092_v47, %v2091_v41 }
  0x2f   :  { %v2009_v49 = vld [vmem:[%s3601_s0 + $0x100] ss:$8 sm:$0xf0]   ;;  %v2094_v51 = vld [vmem:[%s3601_s0 + $0x245] ss:$8 sm:$0xf0]  }
  0x30   :  { %554 = vrot.lane.b32.xlu0 %v553_v4, %s2256_s16  ;;  %52 = vst.msk [vmem:[#allocation0 + $0x60] sm:$0x3] %vm6_vm1, %v49_v48   ;;  %54 = vst.msk [vmem:[#allocation0 + $0x66] sm:$0xc] %vm6_vm1, %v49_v48   ;;  %v64_v52 = vsel %vm4_vm0, %v2009_v49, %v2008_v45  ;;  %v764_v58 = vsel %vm4_vm0, %v2094_v51, %v2093_v50 }
  0x31   :  { %56 = vst.msk [vmem:[#allocation0 + $0x6c] sm:$0x30] %vm6_vm1, %v49_v48   ;;  %58 = vst.msk [vmem:[#allocation0 + $0x72] sm:$0xc0] %vm6_vm1, %v49_v48  }
  0x32   :  { %571 = vrot.lane.b32.xlu1 %v570_v5, %s2256_s16  ;;  %v2095_v53 = vld [vmem:[%s3601_s0 + $0x285] ss:$8 sm:$0xf]   ;;  %67 = vst.msk [vmem:[#allocation0 + $0x80] sm:$0x3] %vm6_vm1, %v64_v52  }
  0x33   :  { %69 = vst.msk [vmem:[#allocation0 + $0x86] sm:$0xc] %vm6_vm1, %v64_v52   ;;  %71 = vst.msk [vmem:[#allocation0 + $0x8c] sm:$0x30] %vm6_vm1, %v64_v52  }
  0x34   :  { %588 = vrot.lane.b32.xlu0 %v587_v8, %s2256_s16  ;;  %73 = vst.msk [vmem:[#allocation0 + $0x92] sm:$0xc0] %vm6_vm1, %v64_v52   ;;  %v2010_v54 = vld [vmem:[%s3601_s0 + $0x140] ss:$8 sm:$0xf]  }
  0x35   :  { %v2011_v56 = vld [vmem:[%s3601_s0 + $0x140] ss:$8 sm:$0xf0]   ;;  %v2096_v59 = vld [vmem:[%s3601_s0 + $0x285] ss:$8 sm:$0xf0]  }
  0x36   :  { %602 = vrot.lane.b32.xlu1 %v2074_v10, %s2256_s16  ;;  %v2012_v57 = vld [vmem:[%s3601_s0 + $0x180] ss:$8 sm:$0xf]   ;;  %v79_v60 = vsel %vm4_vm0, %v2011_v56, %v2010_v54  ;;  %v2097_v62 = vld [vmem:[%s3601_s0 + $0x2c5] ss:$8 sm:$0xf]   ;;  %v781_v3 = vsel %vm4_vm0, %v2096_v59, %v2095_v53 }
  0x37   :  { %v2013_v61 = vld [vmem:[%s3601_s0 + $0x180] ss:$8 sm:$0xf0]   ;;  %v2098_v63 = vld [vmem:[%s3601_s0 + $0x2c5] ss:$8 sm:$0xf0]  }
  0x38   :  { %613 = vrot.lane.b32.xlu0 %v612_v14, %s2257_s11  ;;  %82 = vst.msk [vmem:[#allocation0 + $0xa0] sm:$0x3] %vm6_vm1, %v79_v60   ;;  %84 = vst.msk [vmem:[#allocation0 + $0xa6] sm:$0xc] %vm6_vm1, %v79_v60   ;;  %v94_v0 = vsel %vm4_vm0, %v2013_v61, %v2012_v57  ;;  %v798_v7 = vsel %vm4_vm0, %v2098_v63, %v2097_v62  ;;  %v2099_v10 = vld [vmem:[%s3601_s0 + $0x305] ss:$8 sm:%s2499_s12]  }
  0x39   :  { %86 = vst.msk [vmem:[#allocation0 + $0xac] sm:$0x30] %vm6_vm1, %v79_v60   ;;  %88 = vst.msk [vmem:[#allocation0 + $0xb2] sm:$0xc0] %vm6_vm1, %v79_v60   ;;  %v2124_v56 = vld [vmem:[%s3601_s0 + $0x304] ss:$8 sm:%s1022_s6]  }
  0x3a   :  { %629 = vrot.lane.b32.xlu1 %v628_v15, %s2257_s11  ;;  %97 = vst.msk [vmem:[#allocation0 + $0xc0] sm:$0x3] %vm6_vm1, %v94_v0   ;;  %99 = vst.msk [vmem:[#allocation0 + $0xc6] sm:$0xc] %vm6_vm1, %v94_v0   ;;  %s1233_s12 = smov 3 }
  0x3b   :  { %101 = vst.msk [vmem:[#allocation0 + $0xcc] sm:$0x30] %vm6_vm1, %v94_v0   ;;  %103 = vst.msk [vmem:[#allocation0 + $0xd2] sm:$0xc0] %vm6_vm1, %v94_v0  }
  0x3c   :  { %646 = vrot.lane.b32.xlu0 %v645_v20, %s2257_s11  ;;  %v2014_v1 = vld [vmem:[%s3601_s0 + $0x1c0] ss:$8 sm:$0xf]   ;;  %v2100_v8 = vld [vmem:[%s3601_s0 + $0x4] ss:$8 sm:$0xf]  }
  0x3d   :  { %v2015_v2 = vld [vmem:[%s3601_s0 + $0x1c0] ss:$8 sm:$0xf0]   ;;  %v2101_v11 = vld [vmem:[%s3601_s0 + $0x4] ss:$8 sm:$0xf0]  }
  0x3e   :  { %663 = vrot.lane.b32.xlu1 %v662_v23, %s2257_s11  ;;  %v109_v4 = vsel %vm4_vm0, %v2015_v2, %v2014_v1  ;;  %v2016_v5 = vld [vmem:[%s3601_s0 + $0x200] ss:$8 sm:$0xf]   ;;  %v823_v17 = vsel %vm4_vm0, %v2101_v11, %v2100_v8  ;;  %v2102_v18 = vld [vmem:[%s3601_s0 + $0x44] ss:$8 sm:$0xf]  }
  0x3f   :  { %v2017_v6 = vld [vmem:[%s3601_s0 + $0x200] ss:$8 sm:$0xf0]   ;;  %112 = vst.msk [vmem:[#allocation0 + $0xe0] sm:$0x3] %vm6_vm1, %v109_v4  }
  0x40   :  { %680 = vrot.lane.b32.xlu0 %v679_v31, %s2257_s11  ;;  %114 = vst.msk [vmem:[#allocation0 + $0xe6] sm:$0xc] %vm6_vm1, %v109_v4   ;;  %116 = vst.msk [vmem:[#allocation0 + $0xec] sm:$0x30] %vm6_vm1, %v109_v4   ;;  %v124_v9 = vsel %vm4_vm0, %v2017_v6, %v2016_v5 }
  0x41   :  { %118 = vst.msk [vmem:[#allocation0 + $0xf2] sm:$0xc0] %vm6_vm1, %v109_v4   ;;  %127 = vst.msk [vmem:[#allocation0 + $0x100] sm:$0x3] %vm6_vm1, %v124_v9  }
  0x42   :  { %697 = vrot.lane.b32.xlu1 %v696_v34, %s2257_s11  ;;  %129 = vst.msk [vmem:[#allocation0 + $0x106] sm:$0xc] %vm6_vm1, %v124_v9   ;;  %131 = vst.msk [vmem:[#allocation0 + $0x10c] sm:$0x30] %vm6_vm1, %v124_v9  }
  0x43   :  { %133 = vst.msk [vmem:[#allocation0 + $0x112] sm:$0xc0] %vm6_vm1, %v124_v9   ;;  %v2018_v12 = vld [vmem:[%s3601_s0 + $0x240] ss:$8 sm:$0xf]  }
  0x44   :  { %714 = vrot.lane.b32.xlu0 %v713_v43, %s2257_s11  ;;  %v2019_v13 = vld [vmem:[%s3601_s0 + $0x240] ss:$8 sm:$0xf0]   ;;  %v2103_v19 = vld [vmem:[%s3601_s0 + $0x44] ss:$8 sm:$0xf0]  }
  0x45   :  { %v139_v14 = vsel %vm4_vm0, %v2019_v13, %v2018_v12  ;;  %v2020_v15 = vld [vmem:[%s3601_s0 + $0x280] ss:$8 sm:$0xf]   ;;  %v2104_v21 = vld [vmem:[%s3601_s0 + $0x84] ss:$8 sm:$0xf]   ;;  %v839_v25 = vsel %vm4_vm0, %v2103_v19, %v2102_v18 }
  0x46   :  { %731 = vrot.lane.b32.xlu1 %v730_v46, %s2257_s11  ;;  %v2021_v16 = vld [vmem:[%s3601_s0 + $0x280] ss:$8 sm:$0xf0]   ;;  %142 = vst.msk [vmem:[#allocation0 + $0x120] sm:$0x3] %vm6_vm1, %v139_v14  }
  0x47   :  { %144 = vst.msk [vmem:[#allocation0 + $0x126] sm:$0xc] %vm6_vm1, %v139_v14   ;;  %146 = vst.msk [vmem:[#allocation0 + $0x12c] sm:$0x30] %vm6_vm1, %v139_v14   ;;  %v154_v20 = vsel %vm4_vm0, %v2021_v16, %v2020_v15 }
  0x48   :  { %748 = vrot.lane.b32.xlu0 %v747_v55, %s2257_s11  ;;  %148 = vst.msk [vmem:[#allocation0 + $0x132] sm:$0xc0] %vm6_vm1, %v139_v14   ;;  %v2105_v22 = vld [vmem:[%s3601_s0 + $0x84] ss:$8 sm:$0xf0]  }
  0x49   :  { %157 = vst.msk [vmem:[#allocation0 + $0x140] sm:$0x3] %vm6_vm1, %v154_v20   ;;  %159 = vst.msk [vmem:[#allocation0 + $0x146] sm:$0xc] %vm6_vm1, %v154_v20   ;;  %v856_v28 = vsel %vm4_vm0, %v2105_v22, %v2104_v21 }
  0x4a   :  { %765 = vrot.lane.b32.xlu1 %v764_v58, %s2257_s11  ;;  %161 = vst.msk [vmem:[#allocation0 + $0x14c] sm:$0x30] %vm6_vm1, %v154_v20   ;;  %163 = vst.msk [vmem:[#allocation0 + $0x152] sm:$0xc0] %vm6_vm1, %v154_v20  }
  0x4b   :  { %v2022_v23 = vld [vmem:[%s3601_s0 + $0x2c0] ss:$8 sm:$0xf]   ;;  %v2106_v26 = vld [vmem:[%s3601_s0 + $0xc4] ss:$8 sm:$0xf]  }
  0x4c   :  { %782 = vrot.lane.b32.xlu0 %v781_v3, %s2257_s11  ;;  %v2023_v24 = vld [vmem:[%s3601_s0 + $0x2c0] ss:$8 sm:$0xf0]   ;;  %v2107_v29 = vld [vmem:[%s3601_s0 + $0xc4] ss:$8 sm:$0xf0]  }
  0x4d   :  { %v169_v27 = vsel %vm4_vm0, %v2023_v24, %v2022_v23  ;;  %v2108_v31 = vld [vmem:[%s3601_s0 + $0x104] ss:$8 sm:$0xf]   ;;  %184 = vst.msk [vmem:[#allocation0 + $0x180] sm:$0x3] %vm6_vm1, %v2024_v30   ;;  %v873_v33 = vsel %vm4_vm0, %v2107_v29, %v2106_v26 }
  0x4e   :  { %799 = vrot.lane.b32.xlu1 %v798_v7, %s2257_s11  ;;  %172 = vst.msk [vmem:[#allocation0 + $0x160] sm:$0x3] %vm6_vm1, %v169_v27   ;;  %174 = vst.msk [vmem:[#allocation0 + $0x166] sm:$0xc] %vm6_vm1, %v169_v27  }
  0x4f   :  { %176 = vst.msk [vmem:[#allocation0 + $0x16c] sm:$0x30] %vm6_vm1, %v169_v27   ;;  %178 = vst.msk [vmem:[#allocation0 + $0x172] sm:$0xc0] %vm6_vm1, %v169_v27  }
  0x50   :  { %813 = vrot.lane.b32.xlu0 %v2099_v10, %s2257_s11  ;;  %v2109_v32 = vld [vmem:[%s3601_s0 + $0x104] ss:$8 sm:$0xf0]   ;;  %v2125_v57 = vld [vmem:[%s3601_s0 + $0x3] ss:$8 sm:$0xf]  }
  0x51   :  { %v890_v34 = vsel %vm4_vm0, %v2109_v32, %v2108_v31  ;;  %v2110_v35 = vld [vmem:[%s3601_s0 + $0x144] ss:$8 sm:$0xf]   ;;  %v2126_v58 = vld [vmem:[%s3601_s0 + $0x3] ss:$8 sm:$0xf0]  }
  0x52   :  { %824 = vrot.lane.b32.xlu1 %v823_v17, %s2258_s25  ;;  %v2111_v36 = vld [vmem:[%s3601_s0 + $0x144] ss:$8 sm:$0xf0]   ;;  %v2127_v59 = vld [vmem:[%s3601_s0 + $0x43] ss:$8 sm:$0xf]   ;;  %v1034_v61 = vsel %vm4_vm0, %v2126_v58, %v2125_v57 }
  0x53   :  { %v2112_v37 = vld [vmem:[%s3601_s0 + $0x184] ss:$8 sm:$0xf]   ;;  %v907_v39 = vsel %vm4_vm0, %v2111_v36, %v2110_v35  ;;  %v2128_v60 = vld [vmem:[%s3601_s0 + $0x43] ss:$8 sm:$0xf0]  }
  0x54   :  { %840 = vrot.lane.b32.xlu0 %v839_v25, %s2258_s25  ;;  %v2113_v38 = vld [vmem:[%s3601_s0 + $0x184] ss:$8 sm:$0xf0]   ;;  %v1050_v62 = vsel %vm4_vm0, %v2128_v60, %v2127_v59  ;;  %v2129_v63 = vld [vmem:[%s3601_s0 + $0x83] ss:$8 sm:$0xf]  }
  0x55   :  { %v924_v40 = vsel %vm4_vm0, %v2113_v38, %v2112_v37  ;;  %v2114_v41 = vld [vmem:[%s3601_s0 + $0x1c4] ss:$8 sm:$0xf]   ;;  %v2130_v0 = vld [vmem:[%s3601_s0 + $0x83] ss:$8 sm:$0xf0]  }
  0x56   :  { %857 = vrot.lane.b32.xlu1 %v856_v28, %s2258_s25  ;;  %v2115_v42 = vld [vmem:[%s3601_s0 + $0x1c4] ss:$8 sm:$0xf0]   ;;  %v2131_v1 = vld [vmem:[%s3601_s0 + $0xc3] ss:$8 sm:$0xf]   ;;  %v1067_v3 = vsel %vm4_vm0, %v2130_v0, %v2129_v63 }
  0x57   :  { %v2116_v43 = vld [vmem:[%s3601_s0 + $0x204] ss:$8 sm:$0xf]   ;;  %v941_v45 = vsel %vm4_vm0, %v2115_v42, %v2114_v41  ;;  %v2132_v2 = vld [vmem:[%s3601_s0 + $0xc3] ss:$8 sm:$0xf0]  }
  0x58   :  { %874 = vrot.lane.b32.xlu0 %v873_v33, %s2258_s25  ;;  %v2117_v44 = vld [vmem:[%s3601_s0 + $0x204] ss:$8 sm:$0xf0]   ;;  %v1084_v4 = vsel %vm4_vm0, %v2132_v2, %v2131_v1  ;;  %v2133_v5 = vld [vmem:[%s3601_s0 + $0x103] ss:$8 sm:$0xf]  }
  0x59   :  { %v958_v46 = vsel %vm4_vm0, %v2117_v44, %v2116_v43  ;;  %v2118_v47 = vld [vmem:[%s3601_s0 + $0x244] ss:$8 sm:$0xf]   ;;  %v2134_v6 = vld [vmem:[%s3601_s0 + $0x103] ss:$8 sm:$0xf0]  }
  0x5a   :  { %891 = vrot.lane.b32.xlu1 %v890_v34, %s2258_s25  ;;  %v2119_v48 = vld [vmem:[%s3601_s0 + $0x244] ss:$8 sm:$0xf0]   ;;  %v2135_v7 = vld [vmem:[%s3601_s0 + $0x143] ss:$8 sm:$0xf]   ;;  %v1101_v9 = vsel %vm4_vm0, %v2134_v6, %v2133_v5 }
  0x5b   :  { %v2120_v49 = vld [vmem:[%s3601_s0 + $0x284] ss:$8 sm:$0xf]   ;;  %v975_v51 = vsel %vm4_vm0, %v2119_v48, %v2118_v47  ;;  %v2136_v8 = vld [vmem:[%s3601_s0 + $0x143] ss:$8 sm:$0xf0]  }
  0x5c   :  { %908 = vrot.lane.b32.xlu0 %v907_v39, %s2258_s25  ;;  %v2121_v50 = vld [vmem:[%s3601_s0 + $0x284] ss:$8 sm:$0xf0]   ;;  %v1118_v10 = vsel %vm4_vm0, %v2136_v8, %v2135_v7  ;;  %v2137_v11 = vld [vmem:[%s3601_s0 + $0x183] ss:$8 sm:$0xf]  }
  0x5d   :  { %v2122_v52 = vld [vmem:[%s3601_s0 + $0x2c4] ss:$8 sm:$0xf]   ;;  %v992_v53 = vsel %vm4_vm0, %v2121_v50, %v2120_v49  ;;  %v2138_v12 = vld [vmem:[%s3601_s0 + $0x183] ss:$8 sm:$0xf0]  }
  0x5e   :  { %925 = vrot.lane.b32.xlu1 %v924_v40, %s2258_s25  ;;  %v2123_v54 = vld [vmem:[%s3601_s0 + $0x2c4] ss:$8 sm:$0xf0]   ;;  %v2139_v13 = vld [vmem:[%s3601_s0 + $0x1c3] ss:$8 sm:$0xf]   ;;  %v1135_v15 = vsel %vm4_vm0, %v2138_v12, %v2137_v11 }
  0x5f   :  { %v1009_v55 = vsel %vm4_vm0, %v2123_v54, %v2122_v52  ;;  %v2140_v14 = vld [vmem:[%s3601_s0 + $0x1c3] ss:$8 sm:$0xf0]   ;;  %v2150_v35 = vld [vmem:[%s3601_s0 + $0x2] ss:$8 sm:$0xf]  }
  0x60   :  { %942 = vrot.lane.b32.xlu0 %v941_v45, %s2258_s25  ;;  %v1152_v17 = vsel %vm4_vm0, %v2140_v14, %v2139_v13  ;;  %v2141_v18 = vld [vmem:[%s3601_s0 + $0x203] ss:$8 sm:$0xf]   ;;  %v2151_v36 = vld [vmem:[%s3601_s0 + $0x2] ss:$8 sm:$0xf0]  }
  0x61   :  { %v2142_v19 = vld [vmem:[%s3601_s0 + $0x203] ss:$8 sm:$0xf0]   ;;  %v1245_v39 = vsel %vm4_vm0, %v2151_v36, %v2150_v35  ;;  %v2152_v40 = vld [vmem:[%s3601_s0 + $0x42] ss:$8 sm:$0xf]  }
  0x62   :  { %959 = vrot.lane.b32.xlu1 %v958_v46, %s2258_s25  ;;  %v2143_v21 = vld [vmem:[%s3601_s0 + $0x243] ss:$8 sm:$0xf]   ;;  %v1169_v23 = vsel %vm4_vm0, %v2142_v19, %v2141_v18  ;;  %v2153_v41 = vld [vmem:[%s3601_s0 + $0x42] ss:$8 sm:$0xf0]  }
  0x63   :  { %v2144_v22 = vld [vmem:[%s3601_s0 + $0x243] ss:$8 sm:$0xf0]   ;;  %v2154_v43 = vld [vmem:[%s3601_s0 + $0x82] ss:$8 sm:$0xf]   ;;  %v1261_v45 = vsel %vm4_vm0, %v2153_v41, %v2152_v40 }
  0x64   :  { %976 = vrot.lane.b32.xlu0 %v975_v51, %s2258_s25  ;;  %v1186_v25 = vsel %vm4_vm0, %v2144_v22, %v2143_v21  ;;  %v2145_v26 = vld [vmem:[%s3601_s0 + $0x283] ss:$8 sm:$0xf]   ;;  %v2155_v44 = vld [vmem:[%s3601_s0 + $0x82] ss:$8 sm:$0xf0]  }
  0x65   :  { %v2146_v27 = vld [vmem:[%s3601_s0 + $0x283] ss:$8 sm:$0xf0]   ;;  %v1278_v47 = vsel %vm4_vm0, %v2155_v44, %v2154_v43  ;;  %v2156_v48 = vld [vmem:[%s3601_s0 + $0xc2] ss:$8 sm:$0xf]  }
  0x66   :  { %993 = vrot.lane.b32.xlu1 %v992_v53, %s2258_s25  ;;  %v2147_v29 = vld [vmem:[%s3601_s0 + $0x2c3] ss:$8 sm:$0xf]   ;;  %v1203_v31 = vsel %vm4_vm0, %v2146_v27, %v2145_v26  ;;  %v2157_v49 = vld [vmem:[%s3601_s0 + $0xc2] ss:$8 sm:$0xf0]  }
  0x67   :  { %v2148_v30 = vld [vmem:[%s3601_s0 + $0x2c3] ss:$8 sm:$0xf0]   ;;  %v2158_v51 = vld [vmem:[%s3601_s0 + $0x102] ss:$8 sm:$0xf]   ;;  %v1295_v53 = vsel %vm4_vm0, %v2157_v49, %v2156_v48 }
  0x68   :  { %1010 = vrot.lane.b32.xlu0 %v1009_v55, %s2258_s25  ;;  %v1220_v33 = vsel %vm4_vm0, %v2148_v30, %v2147_v29  ;;  %v2149_v37 = vld [vmem:[%s3601_s0 + $0x303] ss:$8 sm:%s1233_s12]   ;;  %v2159_v52 = vld [vmem:[%s3601_s0 + $0x102] ss:$8 sm:$0xf0]   ;;  %s1444_s11 = smov 3 }
  0x69   :  { %v1312_v55 = vsel %vm4_vm0, %v2159_v52, %v2158_v51  ;;  %v2161_v57 = vld [vmem:[%s3601_s0 + $0x142] ss:$8 sm:$0xf0]   ;;  %v2175_v22 = vld [vmem:[%s3601_s0 + $0x1] ss:$8 sm:$0xf]  }
  0x6a   :  { %1024 = vrot.lane.b32.xlu1 %v2124_v56, %s2258_s25  ;;  %v2160_v56 = vld [vmem:[%s3601_s0 + $0x142] ss:$8 sm:$0xf]   ;;  %v2178_v26 = vld [vmem:[%s3601_s0 + $0x41] ss:$8 sm:$0xf0]  }
  0x6b   :  { %v2162_v59 = vld [vmem:[%s3601_s0 + $0x182] ss:$8 sm:$0xf]   ;;  %v2179_v30 = vld [vmem:[%s3601_s0 + $0x81] ss:$8 sm:$0xf]  }
  0x6c   :  { %1035 = vrot.lane.b32.xlu0 %v1034_v61, %s2259_s27  ;;  %v2163_v60 = vld [vmem:[%s3601_s0 + $0x182] ss:$8 sm:$0xf0]   ;;  %v1329_v61 = vsel %vm4_vm0, %v2161_v57, %v2160_v56  ;;  %v2185_v41 = vld [vmem:[%s3601_s0 + $0x141] ss:$8 sm:$0xf]  }
  0x6d   :  { %v1346_v63 = vsel %vm4_vm0, %v2163_v60, %v2162_v59  ;;  %v2164_v0 = vld [vmem:[%s3601_s0 + $0x1c2] ss:$8 sm:$0xf]   ;;  %v2189_v49 = vld [vmem:[%s3601_s0 + $0x1c1] ss:$8 sm:$0xf]  }
  0x6e   :  { %1051 = vrot.lane.b32.xlu1 %v1050_v62, %s2259_s27  ;;  %v2165_v1 = vld [vmem:[%s3601_s0 + $0x1c2] ss:$8 sm:$0xf0]   ;;  %v2193_v57 = vld [vmem:[%s3601_s0 + $0x241] ss:$8 sm:$0xf]  }
  0x6f   :  { %v1363_v5 = vsel %vm4_vm0, %v2165_v1, %v2164_v0  ;;  %v2168_v8 = vld [vmem:[%s3601_s0 + $0x242] ss:$8 sm:$0xf]   ;;  %v2197_v1 = vld [vmem:[%s3601_s0 + $0x2c1] ss:$8 sm:$0xf]  }
  0x70   :  { %1068 = vrot.lane.b32.xlu0 %v1067_v3, %s2259_s27  ;;  %v2166_v3 = vld [vmem:[%s3601_s0 + $0x202] ss:$8 sm:$0xf]  }
  0x71   :  { %v2170_v11 = vld [vmem:[%s3601_s0 + $0x282] ss:$8 sm:$0xf]  }
  0x72   :  { %1085 = vrot.lane.b32.xlu1 %v1084_v4, %s2259_s27  ;;  %v2167_v4 = vld [vmem:[%s3601_s0 + $0x202] ss:$8 sm:$0xf0]  }
  0x73   :  { %v1380_v7 = vsel %vm4_vm0, %v2167_v4, %v2166_v3  ;;  %v2171_v12 = vld [vmem:[%s3601_s0 + $0x282] ss:$8 sm:$0xf0]  }
  0x74   :  { %1102 = vrot.lane.b32.xlu0 %v1101_v9, %s2259_s27  ;;  %v2169_v9 = vld [vmem:[%s3601_s0 + $0x242] ss:$8 sm:$0xf0]  }
  0x75   :  { %v1397_v13 = vsel %vm4_vm0, %v2169_v9, %v2168_v8 }
  0x76   :  { %1119 = vrot.lane.b32.xlu1 %v1118_v10, %s2259_s27  ;;  %v192_v16 = vpop.permute.xlu0 %191  }
  0x77   :  { %194 = vst.msk [vmem:[#allocation0] sm:$0x3] %vm193_vm2, %v192_v16   ;;  %196 = vst.msk [vmem:[#allocation0 + $0x6] sm:$0xc] %vm193_vm2, %v192_v16  }
  0x78   :  { %198 = vst.msk [vmem:[#allocation0 + $0xc] sm:$0x30] %vm193_vm2, %v192_v16   ;;  %200 = vst.msk [vmem:[#allocation0 + $0x12] sm:$0xc0] %vm193_vm2, %v192_v16   ;;  %v225_v20 = vpop.permute.xlu1 %224   ;;  %1136 = vrot.lane.b32.xlu0 %v1135_v15, %s2259_s27  ;;  %v1414_v15 = vsel %vm4_vm0, %v2171_v12, %v2170_v11 }
  0x79   :  { %228 = vst.msk [vmem:[#allocation0 + $0x40] sm:$0x3] %vm193_vm2, %v225_v20   ;;  %230 = vst.msk [vmem:[#allocation0 + $0x46] sm:$0xc] %vm193_vm2, %v225_v20  }
  0x7a   :  { %232 = vst.msk [vmem:[#allocation0 + $0x4c] sm:$0x30] %vm193_vm2, %v225_v20   ;;  %234 = vst.msk [vmem:[#allocation0 + $0x52] sm:$0xc0] %vm193_vm2, %v225_v20   ;;  %1153 = vrot.lane.b32.xlu1 %v1152_v17, %s2259_s27  ;;  %v208_v24 = vpop.permute.xlu0 %207   ;;  %v2174_v20 = vld [vmem:[%s3601_s0 + $0x302] ss:$8 sm:%s1444_s11]  }
  0x7b   :  { %211 = vst.msk [vmem:[#allocation0 + $0x20] sm:$0x3] %vm193_vm2, %v208_v24   ;;  %213 = vst.msk [vmem:[#allocation0 + $0x26] sm:$0xc] %vm193_vm2, %v208_v24  }
  0x7c   :  { %215 = vst.msk [vmem:[#allocation0 + $0x2c] sm:$0x30] %vm193_vm2, %v208_v24   ;;  %217 = vst.msk [vmem:[#allocation0 + $0x32] sm:$0xc0] %vm193_vm2, %v208_v24   ;;  %v242_v28 = vpop.permute.xlu1 %241   ;;  %1170 = vrot.lane.b32.xlu0 %v1169_v23, %s2259_s27 }
  0x7d   :  { %245 = vst.msk [vmem:[#allocation0 + $0x60] sm:$0x3] %vm193_vm2, %v242_v28   ;;  %247 = vst.msk [vmem:[#allocation0 + $0x66] sm:$0xc] %vm193_vm2, %v242_v28  }
  0x7e   :  { %249 = vst.msk [vmem:[#allocation0 + $0x6c] sm:$0x30] %vm193_vm2, %v242_v28   ;;  %251 = vst.msk [vmem:[#allocation0 + $0x72] sm:$0xc0] %vm193_vm2, %v242_v28   ;;  %1187 = vrot.lane.b32.xlu1 %v1186_v25, %s2259_s27  ;;  %v259_v32 = vpop.permute.xlu0 %258  }
  0x7f   :  { %262 = vst.msk [vmem:[#allocation0 + $0x80] sm:$0x3] %vm193_vm2, %v259_v32   ;;  %264 = vst.msk [vmem:[#allocation0 + $0x86] sm:$0xc] %vm193_vm2, %v259_v32  }
  0x80   :  { %266 = vst.msk [vmem:[#allocation0 + $0x8c] sm:$0x30] %vm193_vm2, %v259_v32   ;;  %268 = vst.msk [vmem:[#allocation0 + $0x92] sm:$0xc0] %vm193_vm2, %v259_v32   ;;  %v276_v34 = vpop.permute.xlu1 %275   ;;  %1204 = vrot.lane.b32.xlu0 %v1203_v31, %s2259_s27 }
  0x81   :  { %279 = vst.msk [vmem:[#allocation0 + $0xa0] sm:$0x3] %vm193_vm2, %v276_v34   ;;  %281 = vst.msk [vmem:[#allocation0 + $0xa6] sm:$0xc] %vm193_vm2, %v276_v34  }
  0x82   :  { %283 = vst.msk [vmem:[#allocation0 + $0xac] sm:$0x30] %vm193_vm2, %v276_v34   ;;  %285 = vst.msk [vmem:[#allocation0 + $0xb2] sm:$0xc0] %vm193_vm2, %v276_v34   ;;  %1221 = vrot.lane.b32.xlu1 %v1220_v33, %s2259_s27  ;;  %v293_v38 = vpop.permute.xlu0 %292  }
  0x83   :  { %296 = vst.msk [vmem:[#allocation0 + $0xc0] sm:$0x3] %vm193_vm2, %v293_v38   ;;  %298 = vst.msk [vmem:[#allocation0 + $0xc6] sm:$0xc] %vm193_vm2, %v293_v38  }
  0x84   :  { %300 = vst.msk [vmem:[#allocation0 + $0xcc] sm:$0x30] %vm193_vm2, %v293_v38   ;;  %302 = vst.msk [vmem:[#allocation0 + $0xd2] sm:$0xc0] %vm193_vm2, %v293_v38   ;;  %v310_v42 = vpop.permute.xlu1 %309   ;;  %1235 = vrot.lane.b32.xlu0 %v2149_v37, %s2259_s27  ;;  %s2260_s27 = smov 8  }
  0x85   :  { %313 = vst.msk [vmem:[#allocation0 + $0xe0] sm:$0x3] %vm193_vm2, %v310_v42   ;;  %315 = vst.msk [vmem:[#allocation0 + $0xe6] sm:$0xc] %vm193_vm2, %v310_v42  }
  0x86   :  { %317 = vst.msk [vmem:[#allocation0 + $0xec] sm:$0x30] %vm193_vm2, %v310_v42   ;;  %319 = vst.msk [vmem:[#allocation0 + $0xf2] sm:$0xc0] %vm193_vm2, %v310_v42   ;;  %1246 = vrot.lane.b32.xlu1 %v1245_v39, %s2260_s27  ;;  %v327_v46 = vpop.permute.xlu0 %326  }
  0x87   :  { %330 = vst.msk [vmem:[#allocation0 + $0x100] sm:$0x3] %vm193_vm2, %v327_v46   ;;  %332 = vst.msk [vmem:[#allocation0 + $0x106] sm:$0xc] %vm193_vm2, %v327_v46  }
  0x88   :  { %334 = vst.msk [vmem:[#allocation0 + $0x10c] sm:$0x30] %vm193_vm2, %v327_v46   ;;  %336 = vst.msk [vmem:[#allocation0 + $0x112] sm:$0xc0] %vm193_vm2, %v327_v46   ;;  %v344_v50 = vpop.permute.xlu1 %343   ;;  %1262 = vrot.lane.b32.xlu0 %v1261_v45, %s2260_s27 }
  0x89   :  { %347 = vst.msk [vmem:[#allocation0 + $0x120] sm:$0x3] %vm193_vm2, %v344_v50   ;;  %349 = vst.msk [vmem:[#allocation0 + $0x126] sm:$0xc] %vm193_vm2, %v344_v50  }
  0x8a   :  { %351 = vst.msk [vmem:[#allocation0 + $0x12c] sm:$0x30] %vm193_vm2, %v344_v50   ;;  %353 = vst.msk [vmem:[#allocation0 + $0x132] sm:$0xc0] %vm193_vm2, %v344_v50   ;;  %1279 = vrot.lane.b32.xlu1 %v1278_v47, %s2260_s27  ;;  %v361_v54 = vpop.permute.xlu0 %360  }
  0x8b   :  { %364 = vst.msk [vmem:[#allocation0 + $0x140] sm:$0x3] %vm193_vm2, %v361_v54   ;;  %366 = vst.msk [vmem:[#allocation0 + $0x146] sm:$0xc] %vm193_vm2, %v361_v54  }
  0x8c   :  { %368 = vst.msk [vmem:[#allocation0 + $0x14c] sm:$0x30] %vm193_vm2, %v361_v54   ;;  %370 = vst.msk [vmem:[#allocation0 + $0x152] sm:$0xc0] %vm193_vm2, %v361_v54   ;;  %v378_v58 = vpop.permute.xlu1 %377   ;;  %1296 = vrot.lane.b32.xlu0 %v1295_v53, %s2260_s27 }
  0x8d   :  { %381 = vst.msk [vmem:[#allocation0 + $0x160] sm:$0x3] %vm193_vm2, %v378_v58   ;;  %383 = vst.msk [vmem:[#allocation0 + $0x166] sm:$0xc] %vm193_vm2, %v378_v58  }
  0x8e   :  { %385 = vst.msk [vmem:[#allocation0 + $0x16c] sm:$0x30] %vm193_vm2, %v378_v58   ;;  %387 = vst.msk [vmem:[#allocation0 + $0x172] sm:$0xc0] %vm193_vm2, %v378_v58   ;;  %1313 = vrot.lane.b32.xlu1 %v1312_v55, %s2260_s27  ;;  %v392_v62 = vpop.permute.xlu0 %391  }
  0x8f   :  { %395 = vst.msk [vmem:[#allocation0 + $0x180] sm:$0x3] %vm193_vm2, %v392_v62   ;;  %v2172_v16 = vld [vmem:[%s3601_s0 + $0x2c2] ss:$8 sm:$0xf]  }
  0x90   :  { %v403_v2 = vpop.permute.xlu1 %402   ;;  %1330 = vrot.lane.b32.xlu0 %v1329_v61, %s2260_s27  ;;  %v2173_v17 = vld [vmem:[%s3601_s0 + $0x2c2] ss:$8 sm:$0xf0]   ;;  %v2176_v23 = vld [vmem:[%s3601_s0 + $0x1] ss:$8 sm:$0xf0]  }
  0x91   :  { %405 = vst.msk [vmem:[#allocation0] sm:$0x3] %vm404_vm3, %v403_v2   ;;  %407 = vst.msk [vmem:[#allocation0 + $0x6] sm:$0xc] %vm404_vm3, %v403_v2   ;;  %v1431_v19 = vsel %vm4_vm0, %v2173_v17, %v2172_v16  ;;  %v1456_v27 = vsel %vm4_vm0, %v2176_v23, %v2175_v22 }
  0x92   :  { %409 = vst.msk [vmem:[#allocation0 + $0xc] sm:$0x30] %vm404_vm3, %v403_v2   ;;  %411 = vst.msk [vmem:[#allocation0 + $0x12] sm:$0xc0] %vm404_vm3, %v403_v2   ;;  %1347 = vrot.lane.b32.xlu1 %v1346_v63, %s2260_s27  ;;  %v419_v6 = vpop.permute.xlu0 %418  }
  0x93   :  { %422 = vst.msk [vmem:[#allocation0 + $0x20] sm:$0x3] %vm404_vm3, %v419_v6   ;;  %424 = vst.msk [vmem:[#allocation0 + $0x26] sm:$0xc] %vm404_vm3, %v419_v6  }
  0x94   :  { %426 = vst.msk [vmem:[#allocation0 + $0x2c] sm:$0x30] %vm404_vm3, %v419_v6   ;;  %428 = vst.msk [vmem:[#allocation0 + $0x32] sm:$0xc0] %vm404_vm3, %v419_v6   ;;  %v436_v10 = vpop.permute.xlu1 %435   ;;  %1364 = vrot.lane.b32.xlu0 %v1363_v5, %s2260_s27 }
  0x95   :  { %439 = vst.msk [vmem:[#allocation0 + $0x40] sm:$0x3] %vm404_vm3, %v436_v10   ;;  %441 = vst.msk [vmem:[#allocation0 + $0x46] sm:$0xc] %vm404_vm3, %v436_v10  }
  0x96   :  { %443 = vst.msk [vmem:[#allocation0 + $0x4c] sm:$0x30] %vm404_vm3, %v436_v10   ;;  %445 = vst.msk [vmem:[#allocation0 + $0x52] sm:$0xc0] %vm404_vm3, %v436_v10   ;;  %1381 = vrot.lane.b32.xlu1 %v1380_v7, %s2260_s27  ;;  %v453_v14 = vpop.permute.xlu0 %452   ;;  %v2199_v7 = vld [vmem:[%s3601_s0 + $0x301] ss:$8 sm:%s1655_s21]  }
  0x97   :  { %456 = vst.msk [vmem:[#allocation0 + $0x60] sm:$0x3] %vm404_vm3, %v453_v14   ;;  %458 = vst.msk [vmem:[#allocation0 + $0x66] sm:$0xc] %vm404_vm3, %v453_v14  }
  0x98   :  { %460 = vst.msk [vmem:[#allocation0 + $0x6c] sm:$0x30] %vm404_vm3, %v453_v14   ;;  %462 = vst.msk [vmem:[#allocation0 + $0x72] sm:$0xc0] %vm404_vm3, %v453_v14   ;;  %v470_v18 = vpop.permute.xlu1 %469   ;;  %1398 = vrot.lane.b32.xlu0 %v1397_v13, %s2260_s27 }
  0x99   :  { %473 = vst.msk [vmem:[#allocation0 + $0x80] sm:$0x3] %vm404_vm3, %v470_v18   ;;  %475 = vst.msk [vmem:[#allocation0 + $0x86] sm:$0xc] %vm404_vm3, %v470_v18  }
  0x9a   :  { %477 = vst.msk [vmem:[#allocation0 + $0x8c] sm:$0x30] %vm404_vm3, %v470_v18   ;;  %479 = vst.msk [vmem:[#allocation0 + $0x92] sm:$0xc0] %vm404_vm3, %v470_v18   ;;  %1415 = vrot.lane.b32.xlu1 %v1414_v15, %s2260_s27  ;;  %v487_v21 = vpop.permute.xlu0 %486  }
  0x9b   :  { %490 = vst.msk [vmem:[#allocation0 + $0xa0] sm:$0x3] %vm404_vm3, %v487_v21   ;;  %492 = vst.msk [vmem:[#allocation0 + $0xa6] sm:$0xc] %vm404_vm3, %v487_v21  }
  0x9c   :  { %494 = vst.msk [vmem:[#allocation0 + $0xac] sm:$0x30] %vm404_vm3, %v487_v21   ;;  %496 = vst.msk [vmem:[#allocation0 + $0xb2] sm:$0xc0] %vm404_vm3, %v487_v21   ;;  %v504_v24 = vpop.permute.xlu1 %503   ;;  %1432 = vrot.lane.b32.xlu0 %v1431_v19, %s2260_s27 }
  0x9d   :  { %v2177_v25 = vld [vmem:[%s3601_s0 + $0x41] ss:$8 sm:$0xf]   ;;  %507 = vst.msk [vmem:[#allocation0 + $0xc0] sm:$0x3] %vm404_vm3, %v504_v24  }
  0x9e   :  { %509 = vst.msk [vmem:[#allocation0 + $0xc6] sm:$0xc] %vm404_vm3, %v504_v24   ;;  %511 = vst.msk [vmem:[#allocation0 + $0xcc] sm:$0x30] %vm404_vm3, %v504_v24   ;;  %1446 = vrot.lane.b32.xlu1 %v2174_v20, %s2260_s27  ;;  %v521_v28 = vpop.permute.xlu0 %520   ;;  %v1472_v29 = vsel %vm4_vm0, %v2178_v26, %v2177_v25 }
  0x9f   :  { %513 = vst.msk [vmem:[#allocation0 + $0xd2] sm:$0xc0] %vm404_vm3, %v504_v24   ;;  %v2180_v31 = vld [vmem:[%s3601_s0 + $0x81] ss:$8 sm:$0xf0]  }
  0xa0   :  { %524 = vst.msk [vmem:[#allocation0 + $0xe0] sm:$0x3] %vm404_vm3, %v521_v28   ;;  %526 = vst.msk [vmem:[#allocation0 + $0xe6] sm:$0xc] %vm404_vm3, %v521_v28   ;;  %v538_v32 = vpop.permute.xlu1 %537   ;;  %1457 = vrot.lane.b32.xlu0 %v1456_v27, %s2261_s17  ;;  %v1489_v35 = vsel %vm4_vm0, %v2180_v31, %v2179_v30 }
  0xa1   :  { %528 = vst.msk [vmem:[#allocation0 + $0xec] sm:$0x30] %vm404_vm3, %v521_v28   ;;  %530 = vst.msk [vmem:[#allocation0 + $0xf2] sm:$0xc0] %vm404_vm3, %v521_v28  }
  0xa2   :  { %v2181_v33 = vld [vmem:[%s3601_s0 + $0xc1] ss:$8 sm:$0xf]   ;;  %541 = vst.msk [vmem:[#allocation0 + $0x100] sm:$0x3] %vm404_vm3, %v538_v32   ;;  %1473 = vrot.lane.b32.xlu1 %v1472_v29, %s2261_s17  ;;  %v555_v36 = vpop.permute.xlu0 %554  }
  0xa3   :  { %v2182_v34 = vld [vmem:[%s3601_s0 + $0xc1] ss:$8 sm:$0xf0]   ;;  %543 = vst.msk [vmem:[#allocation0 + $0x106] sm:$0xc] %vm404_vm3, %v538_v32  }
  0xa4   :  { %545 = vst.msk [vmem:[#allocation0 + $0x10c] sm:$0x30] %vm404_vm3, %v538_v32   ;;  %547 = vst.msk [vmem:[#allocation0 + $0x112] sm:$0xc0] %vm404_vm3, %v538_v32   ;;  %v1506_v37 = vsel %vm4_vm0, %v2182_v34, %v2181_v33  ;;  %v572_v40 = vpop.permute.xlu1 %571   ;;  %1490 = vrot.lane.b32.xlu0 %v1489_v35, %s2261_s17 }
  0xa5   :  { %v2183_v38 = vld [vmem:[%s3601_s0 + $0x101] ss:$8 sm:$0xf]   ;;  %558 = vst.msk [vmem:[#allocation0 + $0x120] sm:$0x3] %vm404_vm3, %v555_v36  }
  0xa6   :  { %v2184_v39 = vld [vmem:[%s3601_s0 + $0x101] ss:$8 sm:$0xf0]   ;;  %560 = vst.msk [vmem:[#allocation0 + $0x126] sm:$0xc] %vm404_vm3, %v555_v36   ;;  %1507 = vrot.lane.b32.xlu1 %v1506_v37, %s2261_s17  ;;  %v589_v44 = vpop.permute.xlu0 %588  }
  0xa7   :  { %562 = vst.msk [vmem:[#allocation0 + $0x12c] sm:$0x30] %vm404_vm3, %v555_v36   ;;  %564 = vst.msk [vmem:[#allocation0 + $0x132] sm:$0xc0] %vm404_vm3, %v555_v36   ;;  %v1523_v43 = vsel %vm4_vm0, %v2184_v39, %v2183_v38 }
  0xa8   :  { %v2186_v42 = vld [vmem:[%s3601_s0 + $0x141] ss:$8 sm:$0xf0]   ;;  %575 = vst.msk [vmem:[#allocation0 + $0x140] sm:$0x3] %vm404_vm3, %v572_v40   ;;  %v603_v48 = vpop.permute.xlu1 %602   ;;  %1524 = vrot.lane.b32.xlu0 %v1523_v43, %s2261_s17 }
  0xa9   :  { %577 = vst.msk [vmem:[#allocation0 + $0x146] sm:$0xc] %vm404_vm3, %v572_v40   ;;  %579 = vst.msk [vmem:[#allocation0 + $0x14c] sm:$0x30] %vm404_vm3, %v572_v40   ;;  %v1540_v45 = vsel %vm4_vm0, %v2186_v42, %v2185_v41 }
  0xaa   :  { %581 = vst.msk [vmem:[#allocation0 + $0x152] sm:$0xc0] %vm404_vm3, %v572_v40   ;;  %v2187_v46 = vld [vmem:[%s3601_s0 + $0x181] ss:$8 sm:$0xf]   ;;  %1541 = vrot.lane.b32.xlu1 %v1540_v45, %s2261_s17  ;;  %v614_v52 = vpop.permute.xlu0 %613  }
  0xab   :  { %v2188_v47 = vld [vmem:[%s3601_s0 + $0x181] ss:$8 sm:$0xf0]   ;;  %592 = vst.msk [vmem:[#allocation0 + $0x160] sm:$0x3] %vm404_vm3, %v589_v44  }
  0xac   :  { %594 = vst.msk [vmem:[#allocation0 + $0x166] sm:$0xc] %vm404_vm3, %v589_v44   ;;  %596 = vst.msk [vmem:[#allocation0 + $0x16c] sm:$0x30] %vm404_vm3, %v589_v44   ;;  %v1557_v51 = vsel %vm4_vm0, %v2188_v47, %v2187_v46  ;;  %v630_v56 = vpop.permute.xlu1 %629  }
  0xad   :  { %598 = vst.msk [vmem:[#allocation0 + $0x172] sm:$0xc0] %vm404_vm3, %v589_v44   ;;  %v2190_v50 = vld [vmem:[%s3601_s0 + $0x1c1] ss:$8 sm:$0xf0]   ;;  %1558 = vrot.lane.b32.xlu0 %v1557_v51, %s2261_s17 }
  0xae   :  { %606 = vst.msk [vmem:[#allocation0 + $0x180] sm:$0x3] %vm404_vm3, %v603_v48   ;;  %v1574_v53 = vsel %vm4_vm0, %v2190_v50, %v2189_v49  ;;  %v2191_v54 = vld [vmem:[%s3601_s0 + $0x201] ss:$8 sm:$0xf]   ;;  %v647_v60 = vpop.permute.xlu0 %646  }
  0xaf   :  { %v2192_v55 = vld [vmem:[%s3601_s0 + $0x201] ss:$8 sm:$0xf0]   ;;  %616 = vst.msk [vmem:[#allocation0] sm:$0x3] %vm615_vm4, %v614_v52   ;;  %1575 = vrot.lane.b32.xlu1 %v1574_v53, %s2261_s17 }
  0xb0   :  { %618 = vst.msk [vmem:[#allocation0 + $0x6] sm:$0xc] %vm615_vm4, %v614_v52   ;;  %620 = vst.msk [vmem:[#allocation0 + $0xc] sm:$0x30] %vm615_vm4, %v614_v52   ;;  %v1591_v59 = vsel %vm4_vm0, %v2192_v55, %v2191_v54  ;;  %v664_v0 = vpop.permute.xlu1 %663  }
  0xb1   :  { %622 = vst.msk [vmem:[#allocation0 + $0x12] sm:$0xc0] %vm615_vm4, %v614_v52   ;;  %v2194_v58 = vld [vmem:[%s3601_s0 + $0x241] ss:$8 sm:$0xf0]   ;;  %1592 = vrot.lane.b32.xlu0 %v1591_v59, %s2261_s17 }
  0xb2   :  { %633 = vst.msk [vmem:[#allocation0 + $0x20] sm:$0x3] %vm615_vm4, %v630_v56   ;;  %635 = vst.msk [vmem:[#allocation0 + $0x26] sm:$0xc] %vm615_vm4, %v630_v56   ;;  %v1608_v61 = vsel %vm4_vm0, %v2194_v58, %v2193_v57  ;;  %v681_v4 = vpop.permute.xlu0 %680  }
  0xb3   :  { %637 = vst.msk [vmem:[#allocation0 + $0x2c] sm:$0x30] %vm615_vm4, %v630_v56   ;;  %639 = vst.msk [vmem:[#allocation0 + $0x32] sm:$0xc0] %vm615_vm4, %v630_v56   ;;  %1609 = vrot.lane.b32.xlu1 %v1608_v61, %s2261_s17 }
  0xb4   :  { %v2195_v62 = vld [vmem:[%s3601_s0 + $0x281] ss:$8 sm:$0xf]   ;;  %650 = vst.msk [vmem:[#allocation0 + $0x40] sm:$0x3] %vm615_vm4, %v647_v60   ;;  %v698_v6 = vpop.permute.xlu1 %697  }
  0xb5   :  { %v2196_v63 = vld [vmem:[%s3601_s0 + $0x281] ss:$8 sm:$0xf0]   ;;  %652 = vst.msk [vmem:[#allocation0 + $0x46] sm:$0xc] %vm615_vm4, %v647_v60  }
  0xb6   :  { %654 = vst.msk [vmem:[#allocation0 + $0x4c] sm:$0x30] %vm615_vm4, %v647_v60   ;;  %656 = vst.msk [vmem:[#allocation0 + $0x52] sm:$0xc0] %vm615_vm4, %v647_v60   ;;  %v1625_v3 = vsel %vm4_vm0, %v2196_v63, %v2195_v62  ;;  %v715_v8 = vpop.permute.xlu0 %714  }
  0xb7   :  { %v2198_v2 = vld [vmem:[%s3601_s0 + $0x2c1] ss:$8 sm:$0xf0]   ;;  %667 = vst.msk [vmem:[#allocation0 + $0x60] sm:$0x3] %vm615_vm4, %v664_v0   ;;  %1626 = vrot.lane.b32.xlu0 %v1625_v3, %s2261_s17 }
  0xb8   :  { %669 = vst.msk [vmem:[#allocation0 + $0x66] sm:$0xc] %vm615_vm4, %v664_v0   ;;  %671 = vst.msk [vmem:[#allocation0 + $0x6c] sm:$0x30] %vm615_vm4, %v664_v0   ;;  %v1642_v5 = vsel %vm4_vm0, %v2198_v2, %v2197_v1  ;;  %v732_v9 = vpop.permute.xlu1 %731  }
  0xb9   :  { %673 = vst.msk [vmem:[#allocation0 + $0x72] sm:$0xc0] %vm615_vm4, %v664_v0   ;;  %684 = vst.msk [vmem:[#allocation0 + $0x80] sm:$0x3] %vm615_vm4, %v681_v4   ;;  %1643 = vrot.lane.b32.xlu1 %v1642_v5, %s2261_s17 }
  0xba   :  { %686 = vst.msk [vmem:[#allocation0 + $0x86] sm:$0xc] %vm615_vm4, %v681_v4   ;;  %688 = vst.msk [vmem:[#allocation0 + $0x8c] sm:$0x30] %vm615_vm4, %v681_v4   ;;  %v749_v10 = vpop.permute.xlu0 %748  }
  0xbb   :  { %690 = vst.msk [vmem:[#allocation0 + $0x92] sm:$0xc0] %vm615_vm4, %v681_v4   ;;  %701 = vst.msk [vmem:[#allocation0 + $0xa0] sm:$0x3] %vm615_vm4, %v698_v6   ;;  %1657 = vrot.lane.b32.xlu0 %v2199_v7, %s2261_s17 }
  0xbc   :  { %703 = vst.msk [vmem:[#allocation0 + $0xa6] sm:$0xc] %vm615_vm4, %v698_v6   ;;  %705 = vst.msk [vmem:[#allocation0 + $0xac] sm:$0x30] %vm615_vm4, %v698_v6   ;;  %v766_v11 = vpop.permute.xlu1 %765  }
  0xbd   :  { %707 = vst.msk [vmem:[#allocation0 + $0xb2] sm:$0xc0] %vm615_vm4, %v698_v6   ;;  %718 = vst.msk [vmem:[#allocation0 + $0xc0] sm:$0x3] %vm615_vm4, %v715_v8  }
  0xbe   :  { %720 = vst.msk [vmem:[#allocation0 + $0xc6] sm:$0xc] %vm615_vm4, %v715_v8   ;;  %722 = vst.msk [vmem:[#allocation0 + $0xcc] sm:$0x30] %vm615_vm4, %v715_v8   ;;  %v783_v12 = vpop.permute.xlu0 %782  }
  0xbf   :  { %724 = vst.msk [vmem:[#allocation0 + $0xd2] sm:$0xc0] %vm615_vm4, %v715_v8   ;;  %735 = vst.msk [vmem:[#allocation0 + $0xe0] sm:$0x3] %vm615_vm4, %v732_v9  }
  0xc0   :  { %737 = vst.msk [vmem:[#allocation0 + $0xe6] sm:$0xc] %vm615_vm4, %v732_v9   ;;  %739 = vst.msk [vmem:[#allocation0 + $0xec] sm:$0x30] %vm615_vm4, %v732_v9   ;;  %v800_v13 = vpop.permute.xlu1 %799  }
  0xc1   :  { %741 = vst.msk [vmem:[#allocation0 + $0xf2] sm:$0xc0] %vm615_vm4, %v732_v9   ;;  %752 = vst.msk [vmem:[#allocation0 + $0x100] sm:$0x3] %vm615_vm4, %v749_v10  }
  0xc2   :  { %754 = vst.msk [vmem:[#allocation0 + $0x106] sm:$0xc] %vm615_vm4, %v749_v10   ;;  %756 = vst.msk [vmem:[#allocation0 + $0x10c] sm:$0x30] %vm615_vm4, %v749_v10   ;;  %v814_v14 = vpop.permute.xlu0 %813  }
  0xc3   :  { %758 = vst.msk [vmem:[#allocation0 + $0x112] sm:$0xc0] %vm615_vm4, %v749_v10   ;;  %769 = vst.msk [vmem:[#allocation0 + $0x120] sm:$0x3] %vm615_vm4, %v766_v11  }
  0xc4   :  { %771 = vst.msk [vmem:[#allocation0 + $0x126] sm:$0xc] %vm615_vm4, %v766_v11   ;;  %773 = vst.msk [vmem:[#allocation0 + $0x12c] sm:$0x30] %vm615_vm4, %v766_v11   ;;  %v825_v15 = vpop.permute.xlu1 %824  }
  0xc5   :  { %775 = vst.msk [vmem:[#allocation0 + $0x132] sm:$0xc0] %vm615_vm4, %v766_v11   ;;  %786 = vst.msk [vmem:[#allocation0 + $0x140] sm:$0x3] %vm615_vm4, %v783_v12  }
  0xc6   :  { %788 = vst.msk [vmem:[#allocation0 + $0x146] sm:$0xc] %vm615_vm4, %v783_v12   ;;  %790 = vst.msk [vmem:[#allocation0 + $0x14c] sm:$0x30] %vm615_vm4, %v783_v12   ;;  %v841_v16 = vpop.permute.xlu0 %840  }
  0xc7   :  { %792 = vst.msk [vmem:[#allocation0 + $0x152] sm:$0xc0] %vm615_vm4, %v783_v12   ;;  %803 = vst.msk [vmem:[#allocation0 + $0x160] sm:$0x3] %vm615_vm4, %v800_v13  }
  0xc8   :  { %805 = vst.msk [vmem:[#allocation0 + $0x166] sm:$0xc] %vm615_vm4, %v800_v13   ;;  %807 = vst.msk [vmem:[#allocation0 + $0x16c] sm:$0x30] %vm615_vm4, %v800_v13   ;;  %v858_v17 = vpop.permute.xlu1 %857  }
  0xc9   :  { %809 = vst.msk [vmem:[#allocation0 + $0x172] sm:$0xc0] %vm615_vm4, %v800_v13   ;;  %817 = vst.msk [vmem:[#allocation0 + $0x180] sm:$0x3] %vm615_vm4, %v814_v14  }
  0xca   :  { %827 = vst.msk [vmem:[#allocation0] sm:$0x3] %vm826_vm5, %v825_v15   ;;  %829 = vst.msk [vmem:[#allocation0 + $0x6] sm:$0xc] %vm826_vm5, %v825_v15   ;;  %v875_v18 = vpop.permute.xlu0 %874  }
  0xcb   :  { %831 = vst.msk [vmem:[#allocation0 + $0xc] sm:$0x30] %vm826_vm5, %v825_v15   ;;  %833 = vst.msk [vmem:[#allocation0 + $0x12] sm:$0xc0] %vm826_vm5, %v825_v15  }
  0xcc   :  { %844 = vst.msk [vmem:[#allocation0 + $0x20] sm:$0x3] %vm826_vm5, %v841_v16   ;;  %846 = vst.msk [vmem:[#allocation0 + $0x26] sm:$0xc] %vm826_vm5, %v841_v16   ;;  %v892_v19 = vpop.permute.xlu1 %891  }
  0xcd   :  { %848 = vst.msk [vmem:[#allocation0 + $0x2c] sm:$0x30] %vm826_vm5, %v841_v16   ;;  %850 = vst.msk [vmem:[#allocation0 + $0x32] sm:$0xc0] %vm826_vm5, %v841_v16  }
  0xce   :  { %861 = vst.msk [vmem:[#allocation0 + $0x40] sm:$0x3] %vm826_vm5, %v858_v17   ;;  %863 = vst.msk [vmem:[#allocation0 + $0x46] sm:$0xc] %vm826_vm5, %v858_v17   ;;  %v909_v20 = vpop.permute.xlu0 %908  }
  0xcf   :  { %865 = vst.msk [vmem:[#allocation0 + $0x4c] sm:$0x30] %vm826_vm5, %v858_v17   ;;  %867 = vst.msk [vmem:[#allocation0 + $0x52] sm:$0xc0] %vm826_vm5, %v858_v17  }
  0xd0   :  { %878 = vst.msk [vmem:[#allocation0 + $0x60] sm:$0x3] %vm826_vm5, %v875_v18   ;;  %880 = vst.msk [vmem:[#allocation0 + $0x66] sm:$0xc] %vm826_vm5, %v875_v18   ;;  %v926_v21 = vpop.permute.xlu1 %925  }
  0xd1   :  { %882 = vst.msk [vmem:[#allocation0 + $0x6c] sm:$0x30] %vm826_vm5, %v875_v18   ;;  %884 = vst.msk [vmem:[#allocation0 + $0x72] sm:$0xc0] %vm826_vm5, %v875_v18  }
  0xd2   :  { %895 = vst.msk [vmem:[#allocation0 + $0x80] sm:$0x3] %vm826_vm5, %v892_v19   ;;  %897 = vst.msk [vmem:[#allocation0 + $0x86] sm:$0xc] %vm826_vm5, %v892_v19   ;;  %v943_v22 = vpop.permute.xlu0 %942  }
  0xd3   :  { %899 = vst.msk [vmem:[#allocation0 + $0x8c] sm:$0x30] %vm826_vm5, %v892_v19   ;;  %901 = vst.msk [vmem:[#allocation0 + $0x92] sm:$0xc0] %vm826_vm5, %v892_v19  }
  0xd4   :  { %912 = vst.msk [vmem:[#allocation0 + $0xa0] sm:$0x3] %vm826_vm5, %v909_v20   ;;  %914 = vst.msk [vmem:[#allocation0 + $0xa6] sm:$0xc] %vm826_vm5, %v909_v20   ;;  %v960_v23 = vpop.permute.xlu1 %959  }
  0xd5   :  { %916 = vst.msk [vmem:[#allocation0 + $0xac] sm:$0x30] %vm826_vm5, %v909_v20   ;;  %918 = vst.msk [vmem:[#allocation0 + $0xb2] sm:$0xc0] %vm826_vm5, %v909_v20  }
  0xd6   :  { %929 = vst.msk [vmem:[#allocation0 + $0xc0] sm:$0x3] %vm826_vm5, %v926_v21   ;;  %931 = vst.msk [vmem:[#allocation0 + $0xc6] sm:$0xc] %vm826_vm5, %v926_v21   ;;  %v977_v24 = vpop.permute.xlu0 %976  }
  0xd7   :  { %933 = vst.msk [vmem:[#allocation0 + $0xcc] sm:$0x30] %vm826_vm5, %v926_v21   ;;  %935 = vst.msk [vmem:[#allocation0 + $0xd2] sm:$0xc0] %vm826_vm5, %v926_v21  }
  0xd8   :  { %946 = vst.msk [vmem:[#allocation0 + $0xe0] sm:$0x3] %vm826_vm5, %v943_v22   ;;  %948 = vst.msk [vmem:[#allocation0 + $0xe6] sm:$0xc] %vm826_vm5, %v943_v22   ;;  %v994_v25 = vpop.permute.xlu1 %993  }
  0xd9   :  { %950 = vst.msk [vmem:[#allocation0 + $0xec] sm:$0x30] %vm826_vm5, %v943_v22   ;;  %952 = vst.msk [vmem:[#allocation0 + $0xf2] sm:$0xc0] %vm826_vm5, %v943_v22  }
  0xda   :  { %963 = vst.msk [vmem:[#allocation0 + $0x100] sm:$0x3] %vm826_vm5, %v960_v23   ;;  %965 = vst.msk [vmem:[#allocation0 + $0x106] sm:$0xc] %vm826_vm5, %v960_v23   ;;  %v1011_v26 = vpop.permute.xlu0 %1010  }
  0xdb   :  { %967 = vst.msk [vmem:[#allocation0 + $0x10c] sm:$0x30] %vm826_vm5, %v960_v23   ;;  %969 = vst.msk [vmem:[#allocation0 + $0x112] sm:$0xc0] %vm826_vm5, %v960_v23  }
  0xdc   :  { %980 = vst.msk [vmem:[#allocation0 + $0x120] sm:$0x3] %vm826_vm5, %v977_v24   ;;  %982 = vst.msk [vmem:[#allocation0 + $0x126] sm:$0xc] %vm826_vm5, %v977_v24   ;;  %v1025_v27 = vpop.permute.xlu1 %1024  }
  0xdd   :  { %984 = vst.msk [vmem:[#allocation0 + $0x12c] sm:$0x30] %vm826_vm5, %v977_v24   ;;  %986 = vst.msk [vmem:[#allocation0 + $0x132] sm:$0xc0] %vm826_vm5, %v977_v24  }
  0xde   :  { %997 = vst.msk [vmem:[#allocation0 + $0x140] sm:$0x3] %vm826_vm5, %v994_v25   ;;  %999 = vst.msk [vmem:[#allocation0 + $0x146] sm:$0xc] %vm826_vm5, %v994_v25   ;;  %v1036_v28 = vpop.permute.xlu0 %1035  }
  0xdf   :  { %1001 = vst.msk [vmem:[#allocation0 + $0x14c] sm:$0x30] %vm826_vm5, %v994_v25   ;;  %1003 = vst.msk [vmem:[#allocation0 + $0x152] sm:$0xc0] %vm826_vm5, %v994_v25  }
  0xe0   :  { %1014 = vst.msk [vmem:[#allocation0 + $0x160] sm:$0x3] %vm826_vm5, %v1011_v26   ;;  %1016 = vst.msk [vmem:[#allocation0 + $0x166] sm:$0xc] %vm826_vm5, %v1011_v26   ;;  %v1052_v29 = vpop.permute.xlu1 %1051  }
  0xe1   :  { %1018 = vst.msk [vmem:[#allocation0 + $0x16c] sm:$0x30] %vm826_vm5, %v1011_v26   ;;  %1020 = vst.msk [vmem:[#allocation0 + $0x172] sm:$0xc0] %vm826_vm5, %v1011_v26  }
  0xe2   :  { %1028 = vst.msk [vmem:[#allocation0 + $0x180] sm:$0x3] %vm826_vm5, %v1025_v27   ;;  %v1069_v30 = vpop.permute.xlu0 %1068  }
  0xe3   :  { %1038 = vst.msk [vmem:[#allocation0] sm:$0x3] %vm1037_vm6, %v1036_v28   ;;  %1040 = vst.msk [vmem:[#allocation0 + $0x6] sm:$0xc] %vm1037_vm6, %v1036_v28  }
  0xe4   :  { %1042 = vst.msk [vmem:[#allocation0 + $0xc] sm:$0x30] %vm1037_vm6, %v1036_v28   ;;  %1044 = vst.msk [vmem:[#allocation0 + $0x12] sm:$0xc0] %vm1037_vm6, %v1036_v28   ;;  %v1086_v31 = vpop.permute.xlu1 %1085  }
  0xe5   :  { %1055 = vst.msk [vmem:[#allocation0 + $0x20] sm:$0x3] %vm1037_vm6, %v1052_v29   ;;  %1057 = vst.msk [vmem:[#allocation0 + $0x26] sm:$0xc] %vm1037_vm6, %v1052_v29  }
  0xe6   :  { %1059 = vst.msk [vmem:[#allocation0 + $0x2c] sm:$0x30] %vm1037_vm6, %v1052_v29   ;;  %1061 = vst.msk [vmem:[#allocation0 + $0x32] sm:$0xc0] %vm1037_vm6, %v1052_v29   ;;  %v1103_v32 = vpop.permute.xlu0 %1102  }
  0xe7   :  { %1072 = vst.msk [vmem:[#allocation0 + $0x40] sm:$0x3] %vm1037_vm6, %v1069_v30   ;;  %1074 = vst.msk [vmem:[#allocation0 + $0x46] sm:$0xc] %vm1037_vm6, %v1069_v30  }
  0xe8   :  { %1076 = vst.msk [vmem:[#allocation0 + $0x4c] sm:$0x30] %vm1037_vm6, %v1069_v30   ;;  %1078 = vst.msk [vmem:[#allocation0 + $0x52] sm:$0xc0] %vm1037_vm6, %v1069_v30   ;;  %v1120_v33 = vpop.permute.xlu1 %1119  }
  0xe9   :  { %1089 = vst.msk [vmem:[#allocation0 + $0x60] sm:$0x3] %vm1037_vm6, %v1086_v31   ;;  %1091 = vst.msk [vmem:[#allocation0 + $0x66] sm:$0xc] %vm1037_vm6, %v1086_v31  }
  0xea   :  { %1093 = vst.msk [vmem:[#allocation0 + $0x6c] sm:$0x30] %vm1037_vm6, %v1086_v31   ;;  %1095 = vst.msk [vmem:[#allocation0 + $0x72] sm:$0xc0] %vm1037_vm6, %v1086_v31   ;;  %v1137_v34 = vpop.permute.xlu0 %1136  }
  0xeb   :  { %1106 = vst.msk [vmem:[#allocation0 + $0x80] sm:$0x3] %vm1037_vm6, %v1103_v32   ;;  %1108 = vst.msk [vmem:[#allocation0 + $0x86] sm:$0xc] %vm1037_vm6, %v1103_v32  }
  0xec   :  { %1110 = vst.msk [vmem:[#allocation0 + $0x8c] sm:$0x30] %vm1037_vm6, %v1103_v32   ;;  %1112 = vst.msk [vmem:[#allocation0 + $0x92] sm:$0xc0] %vm1037_vm6, %v1103_v32   ;;  %v1154_v35 = vpop.permute.xlu1 %1153  }
  0xed   :  { %1123 = vst.msk [vmem:[#allocation0 + $0xa0] sm:$0x3] %vm1037_vm6, %v1120_v33   ;;  %1125 = vst.msk [vmem:[#allocation0 + $0xa6] sm:$0xc] %vm1037_vm6, %v1120_v33  }
  0xee   :  { %1127 = vst.msk [vmem:[#allocation0 + $0xac] sm:$0x30] %vm1037_vm6, %v1120_v33   ;;  %1129 = vst.msk [vmem:[#allocation0 + $0xb2] sm:$0xc0] %vm1037_vm6, %v1120_v33   ;;  %v1171_v36 = vpop.permute.xlu0 %1170  }
  0xef   :  { %1140 = vst.msk [vmem:[#allocation0 + $0xc0] sm:$0x3] %vm1037_vm6, %v1137_v34   ;;  %1142 = vst.msk [vmem:[#allocation0 + $0xc6] sm:$0xc] %vm1037_vm6, %v1137_v34  }
  0xf0   :  { %1144 = vst.msk [vmem:[#allocation0 + $0xcc] sm:$0x30] %vm1037_vm6, %v1137_v34   ;;  %1146 = vst.msk [vmem:[#allocation0 + $0xd2] sm:$0xc0] %vm1037_vm6, %v1137_v34   ;;  %v1188_v37 = vpop.permute.xlu1 %1187  }
  0xf1   :  { %1157 = vst.msk [vmem:[#allocation0 + $0xe0] sm:$0x3] %vm1037_vm6, %v1154_v35   ;;  %1159 = vst.msk [vmem:[#allocation0 + $0xe6] sm:$0xc] %vm1037_vm6, %v1154_v35  }
  0xf2   :  { %1161 = vst.msk [vmem:[#allocation0 + $0xec] sm:$0x30] %vm1037_vm6, %v1154_v35   ;;  %1163 = vst.msk [vmem:[#allocation0 + $0xf2] sm:$0xc0] %vm1037_vm6, %v1154_v35   ;;  %v1205_v38 = vpop.permute.xlu0 %1204  }
  0xf3   :  { %1174 = vst.msk [vmem:[#allocation0 + $0x100] sm:$0x3] %vm1037_vm6, %v1171_v36   ;;  %1176 = vst.msk [vmem:[#allocation0 + $0x106] sm:$0xc] %vm1037_vm6, %v1171_v36  }
  0xf4   :  { %1178 = vst.msk [vmem:[#allocation0 + $0x10c] sm:$0x30] %vm1037_vm6, %v1171_v36   ;;  %1180 = vst.msk [vmem:[#allocation0 + $0x112] sm:$0xc0] %vm1037_vm6, %v1171_v36   ;;  %v1222_v39 = vpop.permute.xlu1 %1221  }
  0xf5   :  { %1191 = vst.msk [vmem:[#allocation0 + $0x120] sm:$0x3] %vm1037_vm6, %v1188_v37   ;;  %1193 = vst.msk [vmem:[#allocation0 + $0x126] sm:$0xc] %vm1037_vm6, %v1188_v37  }
  0xf6   :  { %1195 = vst.msk [vmem:[#allocation0 + $0x12c] sm:$0x30] %vm1037_vm6, %v1188_v37   ;;  %1197 = vst.msk [vmem:[#allocation0 + $0x132] sm:$0xc0] %vm1037_vm6, %v1188_v37   ;;  %v1236_v40 = vpop.permute.xlu0 %1235  }
  0xf7   :  { %1208 = vst.msk [vmem:[#allocation0 + $0x140] sm:$0x3] %vm1037_vm6, %v1205_v38   ;;  %1210 = vst.msk [vmem:[#allocation0 + $0x146] sm:$0xc] %vm1037_vm6, %v1205_v38  }
  0xf8   :  { %1212 = vst.msk [vmem:[#allocation0 + $0x14c] sm:$0x30] %vm1037_vm6, %v1205_v38   ;;  %1214 = vst.msk [vmem:[#allocation0 + $0x152] sm:$0xc0] %vm1037_vm6, %v1205_v38   ;;  %v1247_v41 = vpop.permute.xlu1 %1246  }
  0xf9   :  { %1225 = vst.msk [vmem:[#allocation0 + $0x160] sm:$0x3] %vm1037_vm6, %v1222_v39   ;;  %1227 = vst.msk [vmem:[#allocation0 + $0x166] sm:$0xc] %vm1037_vm6, %v1222_v39  }
  0xfa   :  { %1229 = vst.msk [vmem:[#allocation0 + $0x16c] sm:$0x30] %vm1037_vm6, %v1222_v39   ;;  %1231 = vst.msk [vmem:[#allocation0 + $0x172] sm:$0xc0] %vm1037_vm6, %v1222_v39   ;;  %v1263_v42 = vpop.permute.xlu0 %1262  }
  0xfb   :  { %1239 = vst.msk [vmem:[#allocation0 + $0x180] sm:$0x3] %vm1037_vm6, %v1236_v40  }
  0xfc   :  { %1249 = vst.msk [vmem:[#allocation0] sm:$0x3] %vm1248_vm7, %v1247_v41   ;;  %1251 = vst.msk [vmem:[#allocation0 + $0x6] sm:$0xc] %vm1248_vm7, %v1247_v41   ;;  %v1280_v43 = vpop.permute.xlu1 %1279  }
  0xfd   :  { %1253 = vst.msk [vmem:[#allocation0 + $0xc] sm:$0x30] %vm1248_vm7, %v1247_v41   ;;  %1255 = vst.msk [vmem:[#allocation0 + $0x12] sm:$0xc0] %vm1248_vm7, %v1247_v41  }
  0xfe   :  { %1266 = vst.msk [vmem:[#allocation0 + $0x20] sm:$0x3] %vm1248_vm7, %v1263_v42   ;;  %1268 = vst.msk [vmem:[#allocation0 + $0x26] sm:$0xc] %vm1248_vm7, %v1263_v42   ;;  %v1297_v44 = vpop.permute.xlu0 %1296  }
  0xff   :  { %1270 = vst.msk [vmem:[#allocation0 + $0x2c] sm:$0x30] %vm1248_vm7, %v1263_v42   ;;  %1272 = vst.msk [vmem:[#allocation0 + $0x32] sm:$0xc0] %vm1248_vm7, %v1263_v42  }
 0x100   :  { %1283 = vst.msk [vmem:[#allocation0 + $0x40] sm:$0x3] %vm1248_vm7, %v1280_v43   ;;  %1285 = vst.msk [vmem:[#allocation0 + $0x46] sm:$0xc] %vm1248_vm7, %v1280_v43   ;;  %v1314_v45 = vpop.permute.xlu1 %1313  }
 0x101   :  { %1287 = vst.msk [vmem:[#allocation0 + $0x4c] sm:$0x30] %vm1248_vm7, %v1280_v43   ;;  %1289 = vst.msk [vmem:[#allocation0 + $0x52] sm:$0xc0] %vm1248_vm7, %v1280_v43  }
 0x102   :  { %1300 = vst.msk [vmem:[#allocation0 + $0x60] sm:$0x3] %vm1248_vm7, %v1297_v44   ;;  %1302 = vst.msk [vmem:[#allocation0 + $0x66] sm:$0xc] %vm1248_vm7, %v1297_v44   ;;  %v1331_v46 = vpop.permute.xlu0 %1330  }
 0x103   :  { %1304 = vst.msk [vmem:[#allocation0 + $0x6c] sm:$0x30] %vm1248_vm7, %v1297_v44   ;;  %1306 = vst.msk [vmem:[#allocation0 + $0x72] sm:$0xc0] %vm1248_vm7, %v1297_v44  }
 0x104   :  { %1317 = vst.msk [vmem:[#allocation0 + $0x80] sm:$0x3] %vm1248_vm7, %v1314_v45   ;;  %1319 = vst.msk [vmem:[#allocation0 + $0x86] sm:$0xc] %vm1248_vm7, %v1314_v45   ;;  %v1348_v47 = vpop.permute.xlu1 %1347  }
 0x105   :  { %1321 = vst.msk [vmem:[#allocation0 + $0x8c] sm:$0x30] %vm1248_vm7, %v1314_v45   ;;  %1323 = vst.msk [vmem:[#allocation0 + $0x92] sm:$0xc0] %vm1248_vm7, %v1314_v45  }
 0x106   :  { %1334 = vst.msk [vmem:[#allocation0 + $0xa0] sm:$0x3] %vm1248_vm7, %v1331_v46   ;;  %1336 = vst.msk [vmem:[#allocation0 + $0xa6] sm:$0xc] %vm1248_vm7, %v1331_v46   ;;  %v1365_v48 = vpop.permute.xlu0 %1364  }
 0x107   :  { %1338 = vst.msk [vmem:[#allocation0 + $0xac] sm:$0x30] %vm1248_vm7, %v1331_v46   ;;  %1340 = vst.msk [vmem:[#allocation0 + $0xb2] sm:$0xc0] %vm1248_vm7, %v1331_v46  }
 0x108   :  { %1351 = vst.msk [vmem:[#allocation0 + $0xc0] sm:$0x3] %vm1248_vm7, %v1348_v47   ;;  %1353 = vst.msk [vmem:[#allocation0 + $0xc6] sm:$0xc] %vm1248_vm7, %v1348_v47   ;;  %v1382_v49 = vpop.permute.xlu1 %1381  }
 0x109   :  { %1355 = vst.msk [vmem:[#allocation0 + $0xcc] sm:$0x30] %vm1248_vm7, %v1348_v47   ;;  %1357 = vst.msk [vmem:[#allocation0 + $0xd2] sm:$0xc0] %vm1248_vm7, %v1348_v47  }
 0x10a   :  { %1368 = vst.msk [vmem:[#allocation0 + $0xe0] sm:$0x3] %vm1248_vm7, %v1365_v48   ;;  %1370 = vst.msk [vmem:[#allocation0 + $0xe6] sm:$0xc] %vm1248_vm7, %v1365_v48   ;;  %v1399_v50 = vpop.permute.xlu0 %1398  }
 0x10b   :  { %1372 = vst.msk [vmem:[#allocation0 + $0xec] sm:$0x30] %vm1248_vm7, %v1365_v48   ;;  %1374 = vst.msk [vmem:[#allocation0 + $0xf2] sm:$0xc0] %vm1248_vm7, %v1365_v48  }
 0x10c   :  { %1385 = vst.msk [vmem:[#allocation0 + $0x100] sm:$0x3] %vm1248_vm7, %v1382_v49   ;;  %1387 = vst.msk [vmem:[#allocation0 + $0x106] sm:$0xc] %vm1248_vm7, %v1382_v49   ;;  %v1416_v51 = vpop.permute.xlu1 %1415  }
 0x10d   :  { %1389 = vst.msk [vmem:[#allocation0 + $0x10c] sm:$0x30] %vm1248_vm7, %v1382_v49   ;;  %1391 = vst.msk [vmem:[#allocation0 + $0x112] sm:$0xc0] %vm1248_vm7, %v1382_v49  }
 0x10e   :  { %1402 = vst.msk [vmem:[#allocation0 + $0x120] sm:$0x3] %vm1248_vm7, %v1399_v50   ;;  %1404 = vst.msk [vmem:[#allocation0 + $0x126] sm:$0xc] %vm1248_vm7, %v1399_v50   ;;  %v1433_v52 = vpop.permute.xlu0 %1432  }
 0x10f   :  { %1406 = vst.msk [vmem:[#allocation0 + $0x12c] sm:$0x30] %vm1248_vm7, %v1399_v50   ;;  %1408 = vst.msk [vmem:[#allocation0 + $0x132] sm:$0xc0] %vm1248_vm7, %v1399_v50  }
 0x110   :  { %1419 = vst.msk [vmem:[#allocation0 + $0x140] sm:$0x3] %vm1248_vm7, %v1416_v51   ;;  %1421 = vst.msk [vmem:[#allocation0 + $0x146] sm:$0xc] %vm1248_vm7, %v1416_v51   ;;  %v1447_v53 = vpop.permute.xlu1 %1446  }
 0x111   :  { %1423 = vst.msk [vmem:[#allocation0 + $0x14c] sm:$0x30] %vm1248_vm7, %v1416_v51   ;;  %1425 = vst.msk [vmem:[#allocation0 + $0x152] sm:$0xc0] %vm1248_vm7, %v1416_v51  }
 0x112   :  { %1436 = vst.msk [vmem:[#allocation0 + $0x160] sm:$0x3] %vm1248_vm7, %v1433_v52   ;;  %1438 = vst.msk [vmem:[#allocation0 + $0x166] sm:$0xc] %vm1248_vm7, %v1433_v52   ;;  %v1458_v54 = vpop.permute.xlu0 %1457  }
 0x113   :  { %1440 = vst.msk [vmem:[#allocation0 + $0x16c] sm:$0x30] %vm1248_vm7, %v1433_v52   ;;  %1442 = vst.msk [vmem:[#allocation0 + $0x172] sm:$0xc0] %vm1248_vm7, %v1433_v52  }
 0x114   :  { %1450 = vst.msk [vmem:[#allocation0 + $0x180] sm:$0x3] %vm1248_vm7, %v1447_v53   ;;  %v1474_v55 = vpop.permute.xlu1 %1473  }
 0x115   :  { %1460 = vst.msk [vmem:[#allocation0] sm:$0x3] %vm1459_vm8, %v1458_v54   ;;  %1462 = vst.msk [vmem:[#allocation0 + $0x6] sm:$0xc] %vm1459_vm8, %v1458_v54  }
 0x116   :  { %1464 = vst.msk [vmem:[#allocation0 + $0xc] sm:$0x30] %vm1459_vm8, %v1458_v54   ;;  %1466 = vst.msk [vmem:[#allocation0 + $0x12] sm:$0xc0] %vm1459_vm8, %v1458_v54   ;;  %v1491_v56 = vpop.permute.xlu0 %1490  }
 0x117   :  { %1477 = vst.msk [vmem:[#allocation0 + $0x20] sm:$0x3] %vm1459_vm8, %v1474_v55   ;;  %1479 = vst.msk [vmem:[#allocation0 + $0x26] sm:$0xc] %vm1459_vm8, %v1474_v55  }
 0x118   :  { %1481 = vst.msk [vmem:[#allocation0 + $0x2c] sm:$0x30] %vm1459_vm8, %v1474_v55   ;;  %1483 = vst.msk [vmem:[#allocation0 + $0x32] sm:$0xc0] %vm1459_vm8, %v1474_v55   ;;  %v1508_v57 = vpop.permute.xlu1 %1507  }
 0x119   :  { %1494 = vst.msk [vmem:[#allocation0 + $0x40] sm:$0x3] %vm1459_vm8, %v1491_v56   ;;  %1496 = vst.msk [vmem:[#allocation0 + $0x46] sm:$0xc] %vm1459_vm8, %v1491_v56  }
 0x11a   :  { %1498 = vst.msk [vmem:[#allocation0 + $0x4c] sm:$0x30] %vm1459_vm8, %v1491_v56   ;;  %1500 = vst.msk [vmem:[#allocation0 + $0x52] sm:$0xc0] %vm1459_vm8, %v1491_v56   ;;  %v1525_v61 = vpop.permute.xlu0 %1524  }
 0x11b   :  { %1511 = vst.msk [vmem:[#allocation0 + $0x60] sm:$0x3] %vm1459_vm8, %v1508_v57   ;;  %1513 = vst.msk [vmem:[#allocation0 + $0x66] sm:$0xc] %vm1459_vm8, %v1508_v57  }
 0x11c   :  { %1515 = vst.msk [vmem:[#allocation0 + $0x6c] sm:$0x30] %vm1459_vm8, %v1508_v57   ;;  %1517 = vst.msk [vmem:[#allocation0 + $0x72] sm:$0xc0] %vm1459_vm8, %v1508_v57   ;;  %v1665_v58 = vld [vmem:[#allocation0] sm:$0x3]  ;;  %v1542_v1 = vpop.permute.xlu1 %1541  }
 0x11d   :  { %v1669_v59 = vld [vmem:[#allocation0 + $0x8] sm:$0x3]  ;;  %v1674_v60 = vld [vmem:[#allocation0 + $0x10] sm:$0x3]  ;;  %1667 = vst [vmem:[%s3602_s1] sm:$0x3] %v1665_v58 }
 0x11e   :  { %2200 = vst [vmem:[%s3602_s1 + $0x2] sm:$0x3] %v1669_v59  ;;  %2201 = vst [vmem:[%s3602_s1 + $0x4] sm:$0x3] %v1674_v60  ;;  %v1680_v62 = vld [vmem:[#allocation0 + $0x18] sm:$0x3] }
 0x11f   :  { %v1686_v63 = vld [vmem:[#allocation0 + $0x20] sm:$0x3]  ;;  %v1692_v0 = vld [vmem:[#allocation0 + $0x28] sm:$0x3]  ;;  %1528 = vst.msk [vmem:[#allocation0 + $0x80] sm:$0x3] %vm1459_vm8, %v1525_v61   ;;  %v1559_v7 = vpop.permute.xlu0 %1558  }
 0x120   :  { %1530 = vst.msk [vmem:[#allocation0 + $0x86] sm:$0xc] %vm1459_vm8, %v1525_v61   ;;  %1532 = vst.msk [vmem:[#allocation0 + $0x8c] sm:$0x30] %vm1459_vm8, %v1525_v61   ;;  %v1698_v2 = vld [vmem:[#allocation0 + $0x30] sm:$0x3] }
 0x121   :  { %1534 = vst.msk [vmem:[#allocation0 + $0x92] sm:$0xc0] %vm1459_vm8, %v1525_v61   ;;  %2202 = vst [vmem:[%s3602_s1 + $0x6] sm:$0x3] %v1680_v62  ;;  %v1704_v3 = vld [vmem:[#allocation0 + $0x38] sm:$0x3]  ;;  %v1576_v11 = vpop.permute.xlu1 %1575  }
 0x122   :  { %2203 = vst [vmem:[%s3602_s1 + $0x8] sm:$0x3] %v1686_v63  ;;  %2204 = vst [vmem:[%s3602_s1 + $0xa] sm:$0x3] %v1692_v0  ;;  %v1710_v4 = vld [vmem:[#allocation0 + $0x40] sm:$0x3] }
 0x123   :  { %1545 = vst.msk [vmem:[#allocation0 + $0xa0] sm:$0x3] %vm1459_vm8, %v1542_v1   ;;  %1547 = vst.msk [vmem:[#allocation0 + $0xa6] sm:$0xc] %vm1459_vm8, %v1542_v1   ;;  %v1716_v5 = vld [vmem:[#allocation0 + $0x48] sm:$0x3]  ;;  %v1593_v17 = vpop.permute.xlu0 %1592  }
 0x124   :  { %1549 = vst.msk [vmem:[#allocation0 + $0xac] sm:$0x30] %vm1459_vm8, %v1542_v1   ;;  %1551 = vst.msk [vmem:[#allocation0 + $0xb2] sm:$0xc0] %vm1459_vm8, %v1542_v1   ;;  %v1722_v6 = vld [vmem:[#allocation0 + $0x50] sm:$0x3] }
 0x125   :  { %2205 = vst [vmem:[%s3602_s1 + $0xc] sm:$0x3] %v1698_v2  ;;  %2206 = vst [vmem:[%s3602_s1 + $0xe] sm:$0x3] %v1704_v3  ;;  %v1728_v8 = vld [vmem:[#allocation0 + $0x58] sm:$0x3]  ;;  %v1610_v21 = vpop.permute.xlu1 %1609  }
 0x126   :  { %2207 = vst [vmem:[%s3602_s1 + $0x10] sm:$0x3] %v1710_v4  ;;  %2208 = vst [vmem:[%s3602_s1 + $0x12] sm:$0x3] %v1716_v5  ;;  %v1734_v9 = vld [vmem:[#allocation0 + $0x60] sm:$0x3] }
 0x127   :  { %2209 = vst [vmem:[%s3602_s1 + $0x14] sm:$0x3] %v1722_v6  ;;  %v1740_v10 = vld [vmem:[#allocation0 + $0x68] sm:$0x3]  ;;  %1562 = vst.msk [vmem:[#allocation0 + $0xc0] sm:$0x3] %vm1459_vm8, %v1559_v7  }
 0x128   :  { %1564 = vst.msk [vmem:[#allocation0 + $0xc6] sm:$0xc] %vm1459_vm8, %v1559_v7   ;;  %1566 = vst.msk [vmem:[#allocation0 + $0xcc] sm:$0x30] %vm1459_vm8, %v1559_v7   ;;  %v1746_v12 = vld [vmem:[#allocation0 + $0x70] sm:$0x3] }
 0x129   :  { %1568 = vst.msk [vmem:[#allocation0 + $0xd2] sm:$0xc0] %vm1459_vm8, %v1559_v7   ;;  %2210 = vst [vmem:[%s3602_s1 + $0x16] sm:$0x3] %v1728_v8  ;;  %v1752_v13 = vld [vmem:[#allocation0 + $0x78] sm:$0x3]  ;;  %v1627_v27 = vpop.permute.xlu0 %1626  }
 0x12a   :  { %2211 = vst [vmem:[%s3602_s1 + $0x18] sm:$0x3] %v1734_v9  ;;  %2212 = vst [vmem:[%s3602_s1 + $0x1a] sm:$0x3] %v1740_v10  ;;  %v1758_v14 = vld [vmem:[#allocation0 + $0x80] sm:$0x3] }
 0x12b   :  { %1579 = vst.msk [vmem:[#allocation0 + $0xe0] sm:$0x3] %vm1459_vm8, %v1576_v11   ;;  %1581 = vst.msk [vmem:[#allocation0 + $0xe6] sm:$0xc] %vm1459_vm8, %v1576_v11   ;;  %v1764_v15 = vld [vmem:[#allocation0 + $0x88] sm:$0x3]  ;;  %v1644_v31 = vpop.permute.xlu1 %1643  }
 0x12c   :  { %1583 = vst.msk [vmem:[#allocation0 + $0xec] sm:$0x30] %vm1459_vm8, %v1576_v11   ;;  %1585 = vst.msk [vmem:[#allocation0 + $0xf2] sm:$0xc0] %vm1459_vm8, %v1576_v11   ;;  %v1770_v16 = vld [vmem:[#allocation0 + $0x90] sm:$0x3] }
 0x12d   :  { %2213 = vst [vmem:[%s3602_s1 + $0x1c] sm:$0x3] %v1746_v12  ;;  %2214 = vst [vmem:[%s3602_s1 + $0x1e] sm:$0x3] %v1752_v13  ;;  %v1776_v18 = vld [vmem:[#allocation0 + $0x98] sm:$0x3]  ;;  %v1658_v37 = vpop.permute.xlu0 %1657  }
 0x12e   :  { %2215 = vst [vmem:[%s3602_s1 + $0x20] sm:$0x3] %v1758_v14  ;;  %2216 = vst [vmem:[%s3602_s1 + $0x22] sm:$0x3] %v1764_v15  ;;  %v1782_v19 = vld [vmem:[#allocation0 + $0xa0] sm:$0x3] }
 0x12f   :  { %2217 = vst [vmem:[%s3602_s1 + $0x24] sm:$0x3] %v1770_v16  ;;  %v1788_v20 = vld [vmem:[#allocation0 + $0xa8] sm:$0x3]  ;;  %1596 = vst.msk [vmem:[#allocation0 + $0x100] sm:$0x3] %vm1459_vm8, %v1593_v17  }
 0x130   :  { %1598 = vst.msk [vmem:[#allocation0 + $0x106] sm:$0xc] %vm1459_vm8, %v1593_v17   ;;  %1600 = vst.msk [vmem:[#allocation0 + $0x10c] sm:$0x30] %vm1459_vm8, %v1593_v17   ;;  %v1794_v22 = vld [vmem:[#allocation0 + $0xb0] sm:$0x3] }
 0x131   :  { %1602 = vst.msk [vmem:[#allocation0 + $0x112] sm:$0xc0] %vm1459_vm8, %v1593_v17   ;;  %2218 = vst [vmem:[%s3602_s1 + $0x26] sm:$0x3] %v1776_v18  ;;  %v1800_v23 = vld [vmem:[#allocation0 + $0xb8] sm:$0x3] }
 0x132   :  { %2219 = vst [vmem:[%s3602_s1 + $0x28] sm:$0x3] %v1782_v19  ;;  %2220 = vst [vmem:[%s3602_s1 + $0x2a] sm:$0x3] %v1788_v20  ;;  %v1806_v24 = vld [vmem:[#allocation0 + $0xc0] sm:$0x3] }
 0x133   :  { %1613 = vst.msk [vmem:[#allocation0 + $0x120] sm:$0x3] %vm1459_vm8, %v1610_v21   ;;  %1615 = vst.msk [vmem:[#allocation0 + $0x126] sm:$0xc] %vm1459_vm8, %v1610_v21   ;;  %v1812_v25 = vld [vmem:[#allocation0 + $0xc8] sm:$0x3] }
 0x134   :  { %1617 = vst.msk [vmem:[#allocation0 + $0x12c] sm:$0x30] %vm1459_vm8, %v1610_v21   ;;  %1619 = vst.msk [vmem:[#allocation0 + $0x132] sm:$0xc0] %vm1459_vm8, %v1610_v21   ;;  %v1818_v26 = vld [vmem:[#allocation0 + $0xd0] sm:$0x3] }
 0x135   :  { %2221 = vst [vmem:[%s3602_s1 + $0x2c] sm:$0x3] %v1794_v22  ;;  %2222 = vst [vmem:[%s3602_s1 + $0x2e] sm:$0x3] %v1800_v23  ;;  %v1824_v28 = vld [vmem:[#allocation0 + $0xd8] sm:$0x3] }
 0x136   :  { %2223 = vst [vmem:[%s3602_s1 + $0x30] sm:$0x3] %v1806_v24  ;;  %2224 = vst [vmem:[%s3602_s1 + $0x32] sm:$0x3] %v1812_v25  ;;  %v1830_v29 = vld [vmem:[#allocation0 + $0xe0] sm:$0x3] }
 0x137   :  { %2225 = vst [vmem:[%s3602_s1 + $0x34] sm:$0x3] %v1818_v26  ;;  %v1836_v30 = vld [vmem:[#allocation0 + $0xe8] sm:$0x3]  ;;  %1630 = vst.msk [vmem:[#allocation0 + $0x140] sm:$0x3] %vm1459_vm8, %v1627_v27  }
 0x138   :  { %1632 = vst.msk [vmem:[#allocation0 + $0x146] sm:$0xc] %vm1459_vm8, %v1627_v27   ;;  %1634 = vst.msk [vmem:[#allocation0 + $0x14c] sm:$0x30] %vm1459_vm8, %v1627_v27   ;;  %v1842_v32 = vld [vmem:[#allocation0 + $0xf0] sm:$0x3] }
 0x139   :  { %1636 = vst.msk [vmem:[#allocation0 + $0x152] sm:$0xc0] %vm1459_vm8, %v1627_v27   ;;  %2226 = vst [vmem:[%s3602_s1 + $0x36] sm:$0x3] %v1824_v28  ;;  %v1848_v33 = vld [vmem:[#allocation0 + $0xf8] sm:$0x3] }
 0x13a   :  { %2227 = vst [vmem:[%s3602_s1 + $0x38] sm:$0x3] %v1830_v29  ;;  %2228 = vst [vmem:[%s3602_s1 + $0x3a] sm:$0x3] %v1836_v30  ;;  %v1854_v34 = vld [vmem:[#allocation0 + $0x100] sm:$0x3] }
 0x13b   :  { %1647 = vst.msk [vmem:[#allocation0 + $0x160] sm:$0x3] %vm1459_vm8, %v1644_v31   ;;  %1649 = vst.msk [vmem:[#allocation0 + $0x166] sm:$0xc] %vm1459_vm8, %v1644_v31   ;;  %v1860_v35 = vld [vmem:[#allocation0 + $0x108] sm:$0x3] }
 0x13c   :  { %1651 = vst.msk [vmem:[#allocation0 + $0x16c] sm:$0x30] %vm1459_vm8, %v1644_v31   ;;  %1653 = vst.msk [vmem:[#allocation0 + $0x172] sm:$0xc0] %vm1459_vm8, %v1644_v31   ;;  %v1866_v36 = vld [vmem:[#allocation0 + $0x110] sm:$0x3] }
 0x13d   :  { %2229 = vst [vmem:[%s3602_s1 + $0x3c] sm:$0x3] %v1842_v32  ;;  %2230 = vst [vmem:[%s3602_s1 + $0x3e] sm:$0x3] %v1848_v33  ;;  %v1872_v38 = vld [vmem:[#allocation0 + $0x118] sm:$0x3] }
 0x13e   :  { %2231 = vst [vmem:[%s3602_s1 + $0x40] sm:$0x3] %v1854_v34  ;;  %2232 = vst [vmem:[%s3602_s1 + $0x42] sm:$0x3] %v1860_v35  ;;  %v1878_v39 = vld [vmem:[#allocation0 + $0x120] sm:$0x3] }
 0x13f   :  { %2233 = vst [vmem:[%s3602_s1 + $0x44] sm:$0x3] %v1866_v36  ;;  %v1884_v40 = vld [vmem:[#allocation0 + $0x128] sm:$0x3]  ;;  %1661 = vst.msk [vmem:[#allocation0 + $0x180] sm:$0x3] %vm1459_vm8, %v1658_v37  }
 0x140   :  { %2234 = vst [vmem:[%s3602_s1 + $0x46] sm:$0x3] %v1872_v38  ;;  %2235 = vst [vmem:[%s3602_s1 + $0x48] sm:$0x3] %v1878_v39  ;;  %v1890_v41 = vld [vmem:[#allocation0 + $0x130] sm:$0x3] }
 0x141   :  { %2236 = vst [vmem:[%s3602_s1 + $0x4a] sm:$0x3] %v1884_v40  ;;  %v1896_v42 = vld [vmem:[#allocation0 + $0x138] sm:$0x3]  ;;  %2237 = vst [vmem:[%s3602_s1 + $0x4c] sm:$0x3] %v1890_v41 }
 0x142   :  { %2238 = vst [vmem:[%s3602_s1 + $0x4e] sm:$0x3] %v1896_v42  ;;  %v1902_v43 = vld [vmem:[#allocation0 + $0x140] sm:$0x3]  ;;  %v1908_v44 = vld [vmem:[#allocation0 + $0x148] sm:$0x3] }
 0x143   :  { %v1914_v45 = vld [vmem:[#allocation0 + $0x150] sm:$0x3]  ;;  %2239 = vst [vmem:[%s3602_s1 + $0x50] sm:$0x3] %v1902_v43  ;;  %2240 = vst [vmem:[%s3602_s1 + $0x52] sm:$0x3] %v1908_v44 }
 0x144   :  { %2241 = vst [vmem:[%s3602_s1 + $0x54] sm:$0x3] %v1914_v45  ;;  %v1920_v46 = vld [vmem:[#allocation0 + $0x158] sm:$0x3]  ;;  %v1926_v47 = vld [vmem:[#allocation0 + $0x160] sm:$0x3] }
 0x145   :  { %v1932_v48 = vld [vmem:[#allocation0 + $0x168] sm:$0x3]  ;;  %2242 = vst [vmem:[%s3602_s1 + $0x56] sm:$0x3] %v1920_v46  ;;  %2243 = vst [vmem:[%s3602_s1 + $0x58] sm:$0x3] %v1926_v47 }
 0x146   :  { %2244 = vst [vmem:[%s3602_s1 + $0x5a] sm:$0x3] %v1932_v48  ;;  %v1938_v49 = vld [vmem:[#allocation0 + $0x170] sm:$0x3]  ;;  %v1944_v50 = vld [vmem:[#allocation0 + $0x178] sm:$0x3] }
 0x147   :  { %2245 = vst [vmem:[%s3602_s1 + $0x5c] sm:$0x3] %v1938_v49  ;;  %2246 = vst [vmem:[%s3602_s1 + $0x5e] sm:$0x3] %v1944_v50  ;;  %v1950_v51 = vld [vmem:[#allocation0 + $0x180] sm:$0x3] }
 0x148   :  { %2247 = vst [vmem:[%s3602_s1 + $0x60] sm:$0x3] %v1950_v51 }

</bundles_post_ra>
